<compile_context>
chip_gen: v7x
topology: tpu7x:2x2x1
jax: 0.10.0
libtpu: 0.0.40
codegen_flags: <defaults>
</compile_context>

<pallas_src>
import functools
import numpy as np
import jax
import jax.numpy as jnp
from jax.experimental import pallas as pl
from jax.experimental.pallas import tpu as pltpu

# ----------------------------- constants -----------------------------------
INPUT_SEQUENCE_LENGTH = 6
POS_DIM = 6                 # pred[:, 3:] is rasterized -> state dim > 3
F_HIST = INPUT_SEQUENCE_LENGTH * POS_DIM
LATENT_DIM = 128            # simulator latent / mlp hidden dim
STEPS = 2
N_PARTICLES = 64
H = W = 16                  # small stand-in for the 128x128 raster
M = H * W                   # 256 pixels -> lane-dense (2 full vregs per row)
RASTER_RADIUS = 0.2         # NDC splat radius of the surrogate rasterizer
NOISE_STD = 0.00067

PROJ_MATRIX = np.array(
    [[1.73205081, 0.0, 0.0, 0.0],
     [0.0, 1.73205081, 0.0, 0.0],
     [0.0, 0.0, -1.0, -0.1],
     [0.0, 0.0, -1.0, 0.0]], dtype=np.float32)
PROJ_MATRIX_INV = np.array(
    [[0.57735027, 0.0, -0.0, 0.0],
     [0.0, 0.57735027, -0.0, 0.0],
     [0.0, 0.0, -0.0, -10.0],
     [0.0, 0.0, -1.0, 10.0]], dtype=np.float32)
P22 = float(PROJ_MATRIX[2, 2])
P23 = float(PROJ_MATRIX[2, 3])
P32 = float(PROJ_MATRIX[3, 2])

# camera: model_view^{-1} @ rotx(90), baked as compile-time constants.
# TODO(synk): original code builds `model_view * rotx(90)` with numpy
# elementwise `*` and a separate `perspective(pi/3,...)`; we use a proper
# matrix product and the module's proj_matrix so projection/unprojection match.
_MV = np.linalg.inv(np.array([[1, 0, 0, 0.5], [0, 1, 0, -0.5],
                              [0, 0, 1, 0.7], [0, 0, 0, 1]], np.float64))
_ROTX90 = np.array([[1, 0, 0, 0], [0, 0, -1, 0],
                    [0, 1, 0, 0], [0, 0, 0, 1]], np.float64)
VIEW_ROWS = [[float(v) for v in row] for row in (_MV @ _ROTX90)]
PROJ_ROWS = [[float(v) for v in row] for row in PROJ_MATRIX]
PINV_ROWS = [[float(v) for v in row] for row in PROJ_MATRIX_INV]


# ------------------------------ helpers -------------------------------------
def _mat4_apply(rows, x, y, z, w):
    o = [rows[r][0] * x + rows[r][1] * y + rows[r][2] * z + rows[r][3] * w
         for r in range(4)]
    return o[0], o[1], o[2], o[3]


def _pixel_ndc_rows():
    # lane-dense pixel-centre NDC coords [1, M]
    # (same convention as unproject_torch's meshgrid, row-major flatten)
    idx = jax.lax.broadcasted_iota(jnp.int32, (1, M), 1).astype(jnp.float32)
    row = jnp.floor(idx * (1.0 / W))
    col = idx - row * W
    px = (col + 0.5) * (2.0 / W) - 1.0
    py = ((H - 1.0 - row) + 0.5) * (2.0 / H) - 1.0
    return px, py


def _unproject(depth, px, py):
    # unproject_torch: z = P22*d + P23 ; w = P32*d ; ndc = [x, y, z/w, 1]
    # pos = ndc @ proj_inv.T ; points = pos[:3] / pos[3]
    z_ndc = (P22 * depth + P23) / (P32 * depth)
    c0, c1, c2, c3 = _mat4_apply(PINV_ROWS, px, py, z_ndc, jnp.ones_like(depth))
    inv_w = 1.0 / c3
    return c0 * inv_w, c1 * inv_w, c2 * inv_w


# --------------- single fused kernel: rollout + depth + chamfer -------------
# TODO(synk): the real Simulator.predict_positions is a radius-graph GNN with
# 10 message-passing steps + particle-type embedding; here it is replaced by a
# per-particle encoder MLP (same latent_dim) with Euler integration, so the hot
# path (matmuls + masking + losses) runs fused on the MXU/VPU in one kernel.
# TODO(synk): the original CUDA PointRasterizer (radius splatting at 128x128)
# is not available; the raster here is a gather-form z-buffer: every pixel
# keeps the nearest (max view-space z) point whose NDC centre lies within
# RASTER_RADIUS; empty pixels get -1e9 (<= -100000 sentinel) then -100.
# TODO(synk): at the real 128x128 raster (M=16384) the [M,M] d2 product must
# NOT be materialized: stream column tiles of the Q stack (2048-4096 cols on
# v7x's 64 MiB VMEM, 4096-8192 on v5e/v6e's 128 MiB) with running min_true /
# min_pred accumulators, set pltpu.CompilerParams(vmem_limit_bytes=...) and
# on v7x split steps/row-tiles over a "parallel" grid axis so both
# TensorCores stay busy (keep the chamfer in a separate pallas_call there).
def _fused_forward_kernel(n_kin,
                          init_hist_ref, w1_ref, b1_ref, w2_ref, b2_ref,
                          gt_ref, kin_ref, gtd_ref,
                          pred_ref, loss_ref, depth_ref, cham_ref,
                          hist_ref, tstk_ref, qstk_ref):
    step = pl.program_id(0)
    last_step = pl.num_programs(0) - 1
    keep = (INPUT_SEQUENCE_LENGTH - 1) * POS_DIM

    @pl.when(step == 0)
    def _():
        hist_ref[...] = init_hist_ref[...]          # prime the carried history
        loss_ref[...] = jnp.zeros_like(loss_ref)    # resident accumulators
        cham_ref[...] = jnp.zeros_like(cham_ref)
        tstk_ref[...] = jnp.zeros_like(tstk_ref)    # rows 5..7 stay zero
        qstk_ref[...] = jnp.zeros_like(qstk_ref)

    hist = hist_ref[...]                            # [N, ISL*D] f32

    # ---- encoder MLP (surrogate GNN), bf16 operands on the MXU -------------
    # step-context contribution is pre-folded into b1 in the XLA wrapper.
    h = jnp.dot(hist.astype(jnp.bfloat16), w1_ref[...],
                preferred_element_type=jnp.float32)
    h = jnp.maximum(h + b1_ref[...], 0.0)
    acc = jnp.dot(h.astype(jnp.bfloat16), w2_ref[...],
                  preferred_element_type=jnp.float32) + b2_ref[...]

    last = hist[:, keep:]                           # position at t
    prev = hist[:, keep - POS_DIM:keep]             # position at t-1
    gt = gt_ref[...]                                # [N, D]
    kin = kin_ref[...]                              # [N, 1] (type == 3)
    pred = last + (last - prev) + acc               # Euler integration
    pred = jnp.where(kin > 0.5, gt, pred)           # clamp kinematic particles
    # TODO(synk): at large N emit predictions lane-dense ([S,1,N*D]) to avoid
    # masked vst; at N=64/D=6 the relayout would cost more than it saves.
    pred_ref[...] = pred

    # masked position loss accumulated across grid steps (sum over all steps,
    # normalized once by the non-kinematic particle count — matches torch).
    diff = pred - gt
    sq = jnp.sum(diff * diff, axis=-1, keepdims=True)      # [N, 1]
    nonkin = 1.0 - kin
    loss_ref[...] = loss_ref[...] + jnp.sum(sq * nonkin)

    @pl.when(step == last_step)
    def _():
        loss_ref[...] = loss_ref[...] / jnp.sum(1.0 - kin_ref[...])

    # shift the history window (drop oldest frame, append clamped prediction).
    # TODO(synk): at larger ISL*D switch to a ring-buffer scratch (or
    # pltpu.roll + single store) instead of the two masked partial stores.
    hist_ref[:, :keep] = hist[:, POS_DIM:]
    hist_ref[:, keep:] = pred

    # ---------------- camera transform of the kinetic subset ----------------
    pts = pred[:n_kin, 3:]                          # [Np, 3] (static slice)
    x = pts[:, 0:1]
    y = pts[:, 1:2]
    z = pts[:, 2:3]
    cx, cy, cz, cw = _mat4_apply(VIEW_ROWS, x, y, z, 1.0)
    kx, ky, kz, kw = _mat4_apply(PROJ_ROWS, cx, cy, cz, cw)
    inv_kw = 1.0 / kw
    ndc_x = kx * inv_kw
    ndc_y = ky * inv_kw

    # lane-dense pixel centres [1, M] (full 128-lane vregs)
    px, py = _pixel_ndc_rows()

    # surrogate z-buffer rasterizer: [Np, M] cover matrix, max view-space z
    cover = (jnp.abs(px - ndc_x) <= RASTER_RADIUS) & \
            (jnp.abs(py - ndc_y) <= RASTER_RADIUS)
    cand = jnp.where(cover, cz, -1e9)
    depth_pred = jnp.max(cand, axis=0, keepdims=True)              # [1, M]
    depth_pred = jnp.where(depth_pred <= -100000.0, -100.0, depth_pred)
    depth_ref[...] = depth_pred                                    # lane-dense

    # unproject predicted + ground-truth depth, both lane-dense [1, M]
    qx, qy, qz = _unproject(depth_pred, px, py)
    dt = gtd_ref[...]                                              # [1, M]
    dt = jnp.where(dt == 0.0, -100.0, dt)
    tx, ty, tz = _unproject(dt, px, py)

    # ------------- chamfer: d2 = |t|^2 + |q|^2 - 2 t.q on the MXU -----------
    # stacks: T rows = [tx, ty, tz, 1, |t|^2, 0, 0, 0]
    #         Q rows = [-2qx, -2qy, -2qz, |q|^2, 1, 0, 0, 0]
    tstk_ref[0:1, :] = tx
    tstk_ref[1:2, :] = ty
    tstk_ref[2:3, :] = tz
    tstk_ref[3:4, :] = jnp.ones_like(tx)
    tstk_ref[4:5, :] = tx * tx + ty * ty + tz * tz
    qstk_ref[0:1, :] = -2.0 * qx
    qstk_ref[1:2, :] = -2.0 * qy
    qstk_ref[2:3, :] = -2.0 * qz
    qstk_ref[3:4, :] = qx * qx + qy * qy + qz * qz
    qstk_ref[4:5, :] = jnp.ones_like(qx)

    # single [8,M]->[M,8] relayout feeds one [M,8]x[8,M] MXU matmul
    d2 = jnp.dot(tstk_ref[...].T, qstk_ref[...],
                 preferred_element_type=jnp.float32)               # [M, M]
    min_true = jnp.min(d2, axis=1, keepdims=True)                  # [M, 1]
    min_pred = jnp.min(d2, axis=0, keepdims=True)                  # [1, M]
    cham_ref[...] = (cham_ref[...]
                     + jnp.mean(min_true, keepdims=True)
                     + jnp.mean(min_pred, keepdims=True))


def fused_forward(init_hist, w1_bf16, b1_eff, w2_bf16, b2,
                  gt_perm, kin_mask, gtd_rows, n_kinetic):
    steps, n, d = gt_perm.shape
    f_hist = init_hist.shape[1]
    lat = w1_bf16.shape[1]
    kernel = functools.partial(_fused_forward_kernel, n_kinetic)
    preds, loss_pos, depth_flat, cham_sum = pl.pallas_call(
        kernel,
        out_shape=(jax.ShapeDtypeStruct((steps, n, d), jnp.float32),
                   jax.ShapeDtypeStruct((1, 1), jnp.float32),
                   jax.ShapeDtypeStruct((steps, 1, M), jnp.float32),
                   jax.ShapeDtypeStruct((1, 1), jnp.float32)),
        grid_spec=pltpu.PrefetchScalarGridSpec(
            num_scalar_prefetch=0,
            grid=(steps,),
            in_specs=[
                pl.BlockSpec((n, f_hist), lambda s: (0, 0)),       # init hist
                pl.BlockSpec((f_hist, lat), lambda s: (0, 0)),     # w1 (bf16)
                pl.BlockSpec((1, lat), lambda s: (0, 0)),          # b1 (+ctx)
                pl.BlockSpec((lat, d), lambda s: (0, 0)),          # w2 (bf16)
                pl.BlockSpec((1, d), lambda s: (0, 0)),            # b2
                pl.BlockSpec((None, n, d), lambda s: (s, 0, 0)),   # gt per step
                pl.BlockSpec((n, 1), lambda s: (0, 0)),            # kin mask
                pl.BlockSpec((None, 1, M), lambda s: (s, 0, 0)),   # gt depth
            ],
            out_specs=[
                pl.BlockSpec((None, n, d), lambda s: (s, 0, 0)),   # predictions
                pl.BlockSpec((1, 1), lambda s: (0, 0)),            # pos loss
                pl.BlockSpec((None, 1, M), lambda s: (s, 0, 0)),   # pred depth
                pl.BlockSpec((1, 1), lambda s: (0, 0)),            # chamfer sum
            ],
            scratch_shapes=[
                pltpu.VMEM((n, f_hist), jnp.float32),              # history
                pltpu.VMEM((8, M), jnp.float32),                   # T stack
                pltpu.VMEM((8, M), jnp.float32),                   # Q stack
            ],
        ),
        # steps carry history + resident accumulators -> serial ("arbitrary").
        compiler_params=pltpu.CompilerParams(
            dimension_semantics=("arbitrary",)),
    )(init_hist, w1_bf16, b1_eff, w2_bf16, b2, gt_perm, kin_mask, gtd_rows)
    return preds, loss_pos, depth_flat, cham_sum


# ------------------------------ params / wrapper -----------------------------
def init_params(key):
    f_in = F_HIST + 3          # history + step_context
    k1, k2 = jax.random.split(key)
    w1 = jax.random.normal(k1, (f_in, LATENT_DIM), jnp.float32) / np.sqrt(f_in)
    b1 = jnp.zeros((1, LATENT_DIM), jnp.float32)
    w2 = jax.random.normal(k2, (LATENT_DIM, POS_DIM), jnp.float32) / np.sqrt(LATENT_DIM)
    b2 = jnp.zeros((1, POS_DIM), jnp.float32)
    # normalization_stats: fold acceleration de-normalization into output layer
    acc_mean = jnp.zeros((1, POS_DIM), jnp.float32)
    acc_std = jnp.sqrt(jnp.full((1, POS_DIM), 0.01, jnp.float32) ** 2 + NOISE_STD ** 2)
    w2 = w2 * acc_std
    b2 = b2 * acc_std + acc_mean
    return dict(w1_hist=w1[:F_HIST], w1_ctx=w1[F_HIST:], b1=b1, w2=w2, b2=b2)


def simulator_rollout_forward(features, params, steps=STEPS):
    positions = jnp.asarray(features['position'], jnp.float32)        # [N, T, D]
    particle_type = np.asarray(features['particle_type'])             # [N] ints
    step_context = jnp.asarray(features['step_context'], jnp.float32)
    depths = jnp.asarray(features['depths'], jnp.float32)             # [T, H, W]
    # n_particles_per_example only feeds the GNN batching; unused by surrogate.

    # reproduce the in-place step_context writes
    step_context = step_context.at[0, 0].set(0.5).at[0, 1].set(0.00025).at[0, 2].set(0.2)

    initial_positions = positions[:, :INPUT_SEQUENCE_LENGTH]
    ground_truth_positions = positions[:, INPUT_SEQUENCE_LENGTH:INPUT_SEQUENCE_LENGTH + steps]
    ground_truth_depths = depths[INPUT_SEQUENCE_LENGTH:INPUT_SEQUENCE_LENGTH + steps]

    n = positions.shape[0]
    kin_mask = jnp.asarray(particle_type == 3, jnp.float32).reshape(n, 1)
    # matches torch: `pred[:n_kinetic_particles, 3:]` (first rows assumed type 1)
    n_kinetic = int(np.sum(particle_type == 1))

    # fold the (step-constant) context path into the first-layer bias, and
    # cast the MXU weights to bf16 once (accumulation stays f32 in-kernel).
    ctx_row = step_context[0:1, :3]                                    # [1, 3]
    b1_eff = params['b1'] + jnp.dot(ctx_row, params['w1_ctx'])         # [1, L]
    w1_bf16 = params['w1_hist'].astype(jnp.bfloat16)
    w2_bf16 = params['w2'].astype(jnp.bfloat16)

    init_hist = initial_positions.reshape(n, F_HIST)
    gt_perm = jnp.transpose(ground_truth_positions, (1, 0, 2))         # [S, N, D]
    gtd_rows = ground_truth_depths.reshape(steps, 1, M)                # lane-dense

    # --- single fused kernel: rollout + position loss + raster + chamfer ---
    predictions, loss_pos, depth_flat, cham_sum = fused_forward(
        init_hist, w1_bf16, b1_eff, w2_bf16, params['b2'],
        gt_perm, kin_mask, gtd_rows, n_kinetic)

    loss_positions = loss_pos[0, 0]
    loss = cham_sum[0, 0] / steps
    predicted_depths = depth_flat.reshape(steps, H, W)

    # reproduce the in-place depth fixups visible in the returned gt depths
    ground_truth_depths = jnp.where(ground_truth_depths == 0.0, -100.0,
                                    ground_truth_depths)
    return (loss, loss_positions, predictions, gt_perm,
            predicted_depths, ground_truth_depths)


# ---------------------------------- main -------------------------------------
if __name__ == "__main__":
    key = jax.random.PRNGKey(0)
    kpos, kdepth, kparam = jax.random.split(key, 3)

    T_total = INPUT_SEQUENCE_LENGTH + STEPS
    positions = jax.random.uniform(kpos, (N_PARTICLES, T_total, POS_DIM),
                                   jnp.float32, minval=0.0, maxval=0.4)
    particle_type = np.zeros((N_PARTICLES,), np.int32)
    particle_type[:16] = 1     # kinetic particles (rasterized subset)
    particle_type[16:24] = 3   # kinematic particles (clamped to ground truth)
    depths = jax.random.uniform(kdepth, (T_total, H, W), jnp.float32,
                                minval=-1.0, maxval=-0.3)
    depths = jnp.where(depths > -0.35, 0.0, depths)  # some "empty" (== 0) pixels
    features = {
        'position': positions,
        'n_particles_per_example': jnp.array([N_PARTICLES], jnp.int32),
        'particle_type': particle_type,
        'step_context': jnp.zeros((1, 3), jnp.float32),
        'depths': depths,
    }

    params = init_params(kparam)
    outs = simulator_rollout_forward(features, params, STEPS)
    outs = jax.block_until_ready(outs)
    loss, loss_positions, preds, gt, pdepths, gdepths = outs

    assert preds.shape == (STEPS, N_PARTICLES, POS_DIM)
    assert gt.shape == (STEPS, N_PARTICLES, POS_DIM)
    assert pdepths.shape == (STEPS, H, W)
    assert gdepths.shape == (STEPS, H, W)
    assert np.isfinite(float(loss)) and np.isfinite(float(loss_positions))
    assert np.all(np.isfinite(np.asarray(preds)))
    assert np.all(np.isfinite(np.asarray(pdepths)))
    print("KERNEL_OK")
</pallas_src>

<mosaic_0001>
module attributes {stable_mosaic.version = 11 : i64} {
  func.func @_fused_forward_kernel(%arg0: i32, %arg1: memref<64x36xf32, #tpu.memory_space<vmem>>, %arg2: memref<36x128xbf16, #tpu.memory_space<vmem>>, %arg3: memref<1x128xf32, #tpu.memory_space<vmem>>, %arg4: memref<128x6xbf16, #tpu.memory_space<vmem>>, %arg5: memref<1x6xf32, #tpu.memory_space<vmem>>, %arg6: memref<1x64x6xf32, #tpu.memory_space<vmem>>, %arg7: memref<64x1xf32, #tpu.memory_space<vmem>>, %arg8: memref<1x1x256xf32, #tpu.memory_space<vmem>>, %arg9: memref<1x64x6xf32, #tpu.memory_space<vmem>>, %arg10: memref<1x1xf32, #tpu.memory_space<vmem>>, %arg11: memref<1x1x256xf32, #tpu.memory_space<vmem>>, %arg12: memref<1x1xf32, #tpu.memory_space<vmem>>, %arg13: memref<64x36xf32, #tpu.memory_space<vmem>>, %arg14: memref<8x256xf32, #tpu.memory_space<vmem>>, %arg15: memref<8x256xf32, #tpu.memory_space<vmem>>) attributes {dimension_semantics = [#tpu.dimension_semantics<arbitrary>], iteration_bounds = array<i64: 2>, scalar_prefetch = 0 : i64, scratch_operands = 3 : i64, tpu.core_type = #tpu.core_type<tc>, window_params = [{pipeline_mode = #tpu.pipeline_mode<synchronous>, transform_indices = @transform_0, window_bounds = array<i64: 64, 36>}, {pipeline_mode = #tpu.pipeline_mode<synchronous>, transform_indices = @transform_1, window_bounds = array<i64: 36, 128>}, {pipeline_mode = #tpu.pipeline_mode<synchronous>, transform_indices = @transform_2, window_bounds = array<i64: 1, 128>}, {pipeline_mode = #tpu.pipeline_mode<synchronous>, transform_indices = @transform_3, window_bounds = array<i64: 128, 6>}, {pipeline_mode = #tpu.pipeline_mode<synchronous>, transform_indices = @transform_4, window_bounds = array<i64: 1, 6>}, {transform_indices = @transform_5, window_bounds = array<i64: 1, 64, 6>}, {pipeline_mode = #tpu.pipeline_mode<synchronous>, transform_indices = @transform_6, window_bounds = array<i64: 64, 1>}, {transform_indices = @transform_7, window_bounds = array<i64: 1, 1, 256>}, {transform_indices = @transform_8, window_bounds = array<i64: 1, 64, 6>}, {pipeline_mode = #tpu.pipeline_mode<synchronous>, transform_indices = @transform_9, window_bounds = array<i64: 1, 1>}, {transform_indices = @transform_10, window_bounds = array<i64: 1, 1, 256>}, {pipeline_mode = #tpu.pipeline_mode<synchronous>, transform_indices = @transform_11, window_bounds = array<i64: 1, 1>}]} {
    %c0_i32 = arith.constant 0 : i32
    %0 = arith.cmpi eq, %arg0, %c0_i32 : i32
    %1 = arith.extui %0 : i1 to i32
    %c0_i32_0 = arith.constant 0 : i32
    %2 = arith.cmpi ne, %1, %c0_i32_0 : i32
    scf.if %2 {
      %c0_162 = arith.constant 0 : index
      %c0_163 = arith.constant 0 : index
      %358 = vector.load %arg1[%c0_162, %c0_163] : memref<64x36xf32, #tpu.memory_space<vmem>>, vector<64x36xf32>
      %c0_164 = arith.constant 0 : index
      %c0_165 = arith.constant 0 : index
      %359 = vector.load %arg13[%c0_164, %c0_165] : memref<64x36xf32, #tpu.memory_space<vmem>>, vector<64x36xf32>
      tpu.vector_store %arg13[%c0_164, %c0_165], %358 {strides = array<i32>} : memref<64x36xf32, #tpu.memory_space<vmem>>, vector<64x36xf32>,
      %cst_166 = arith.constant 0.000000e+00 : f32
      %360 = vector.broadcast %cst_166 : f32 to vector<1x1xf32>
      %c0_167 = arith.constant 0 : index
      %c0_168 = arith.constant 0 : index
      %361 = vector.load %arg10[%c0_167, %c0_168] : memref<1x1xf32, #tpu.memory_space<vmem>>, vector<1x1xf32>
      tpu.vector_store %arg10[%c0_167, %c0_168], %360 {strides = array<i32>} : memref<1x1xf32, #tpu.memory_space<vmem>>, vector<1x1xf32>,
      %cst_169 = arith.constant 0.000000e+00 : f32
      %362 = vector.broadcast %cst_169 : f32 to vector<1x1xf32>
      %c0_170 = arith.constant 0 : index
      %c0_171 = arith.constant 0 : index
      %363 = vector.load %arg12[%c0_170, %c0_171] : memref<1x1xf32, #tpu.memory_space<vmem>>, vector<1x1xf32>
      tpu.vector_store %arg12[%c0_170, %c0_171], %362 {strides = array<i32>} : memref<1x1xf32, #tpu.memory_space<vmem>>, vector<1x1xf32>,
      %cst_172 = arith.constant 0.000000e+00 : f32
      %364 = vector.broadcast %cst_172 : f32 to vector<8x256xf32>
      %c0_173 = arith.constant 0 : index
      %c0_174 = arith.constant 0 : index
      %365 = vector.load %arg14[%c0_173, %c0_174] : memref<8x256xf32, #tpu.memory_space<vmem>>, vector<8x256xf32>
      tpu.vector_store %arg14[%c0_173, %c0_174], %364 {strides = array<i32>} : memref<8x256xf32, #tpu.memory_space<vmem>>, vector<8x256xf32>,
      %cst_175 = arith.constant 0.000000e+00 : f32
      %366 = vector.broadcast %cst_175 : f32 to vector<8x256xf32>
      %c0_176 = arith.constant 0 : index
      %c0_177 = arith.constant 0 : index
      %367 = vector.load %arg15[%c0_176, %c0_177] : memref<8x256xf32, #tpu.memory_space<vmem>>, vector<8x256xf32>
      tpu.vector_store %arg15[%c0_176, %c0_177], %366 {strides = array<i32>} : memref<8x256xf32, #tpu.memory_space<vmem>>, vector<8x256xf32>,
    } else {
    }
    %c0 = arith.constant 0 : index
    %c0_1 = arith.constant 0 : index
    %3 = vector.load %arg13[%c0, %c0_1] : memref<64x36xf32, #tpu.memory_space<vmem>>, vector<64x36xf32>
    %4 = arith.truncf %3 : vector<64x36xf32> to vector<64x36xbf16>
    %c0_2 = arith.constant 0 : index
    %c0_3 = arith.constant 0 : index
    %5 = vector.load %arg2[%c0_2, %c0_3] : memref<36x128xbf16, #tpu.memory_space<vmem>>, vector<36x128xbf16>
    %cst = arith.constant dense<0.000000e+00> : vector<64x128xf32>
    %6 = tpu.matmul %4, %5, %cst {dimension_numbers = #tpu.dot_dimension_numbers<[1], [0], [0], [1], [0, 0, 1, 1], [], []>} : vector<64x36xbf16>, vector<36x128xbf16>, vector<64x128xf32> -> vector<64x128xf32>
    %c0_4 = arith.constant 0 : index
    %c0_5 = arith.constant 0 : index
    %7 = vector.load %arg3[%c0_4, %c0_5] : memref<1x128xf32, #tpu.memory_space<vmem>>, vector<1x128xf32>
    %8 = vector.broadcast %7 : vector<1x128xf32> to vector<64x128xf32>
    %9 = arith.addf %6, %8 : vector<64x128xf32>
    %cst_6 = arith.constant 0.000000e+00 : f32
    %10 = vector.broadcast %cst_6 : f32 to vector<64x128xf32>
    %11 = arith.maximumf %9, %10 : vector<64x128xf32>
    %12 = arith.truncf %11 : vector<64x128xf32> to vector<64x128xbf16>
    %c0_7 = arith.constant 0 : index
    %c0_8 = arith.constant 0 : index
    %13 = vector.load %arg4[%c0_7, %c0_8] : memref<128x6xbf16, #tpu.memory_space<vmem>>, vector<128x6xbf16>
    %cst_9 = arith.constant dense<0.000000e+00> : vector<64x6xf32>
    %14 = tpu.matmul %12, %13, %cst_9 {dimension_numbers = #tpu.dot_dimension_numbers<[1], [0], [0], [1], [0, 0, 1, 1], [], []>} : vector<64x128xbf16>, vector<128x6xbf16>, vector<64x6xf32> -> vector<64x6xf32>
    %c0_10 = arith.constant 0 : index
    %c0_11 = arith.constant 0 : index
    %15 = vector.load %arg5[%c0_10, %c0_11] : memref<1x6xf32, #tpu.memory_space<vmem>>, vector<1x6xf32>
    %16 = vector.broadcast %15 : vector<1x6xf32> to vector<64x6xf32>
    %17 = arith.addf %14, %16 : vector<64x6xf32>
    %18 = vector.extract_strided_slice %3 {offsets = [0, 30], sizes = [64, 6], strides = [1, 1]} : vector<64x36xf32> to vector<64x6xf32>
    %19 = vector.extract_strided_slice %3 {offsets = [0, 24], sizes = [64, 6], strides = [1, 1]} : vector<64x36xf32> to vector<64x6xf32>
    %c0_12 = arith.constant 0 : index
    %c0_13 = arith.constant 0 : index
    %c0_14 = arith.constant 0 : index
    %20 = vector.load %arg6[%c0_12, %c0_13, %c0_14] : memref<1x64x6xf32, #tpu.memory_space<vmem>>, vector<1x64x6xf32>
    %21 = vector.shape_cast %20 : vector<1x64x6xf32> to vector<64x6xf32>
    %c0_15 = arith.constant 0 : index
    %c0_16 = arith.constant 0 : index
    %22 = vector.load %arg7[%c0_15, %c0_16] : memref<64x1xf32, #tpu.memory_space<vmem>>, vector<64x1xf32>
    %23 = arith.subf %18, %19 : vector<64x6xf32>
    %24 = arith.addf %18, %23 : vector<64x6xf32>
    %25 = arith.addf %24, %17 : vector<64x6xf32>
    %cst_17 = arith.constant 5.000000e-01 : f32
    %26 = vector.broadcast %cst_17 : f32 to vector<64x1xf32>
    %27 = arith.cmpf ogt, %22, %26 : vector<64x1xf32>
    %28 = vector.shape_cast %27 : vector<64x1xi1> to vector<64x1xi1>
    %29 = vector.broadcast %28 : vector<64x1xi1> to vector<64x6xi1>
    %30 = arith.select %29, %21, %25 : vector<64x6xi1>, vector<64x6xf32>
    %c0_18 = arith.constant 0 : index
    %c0_19 = arith.constant 0 : index
    %c0_20 = arith.constant 0 : index
    %31 = vector.load %arg9[%c0_18, %c0_19, %c0_20] : memref<1x64x6xf32, #tpu.memory_space<vmem>>, vector<1x64x6xf32>
    %32 = vector.shape_cast %31 : vector<1x64x6xf32> to vector<64x6xf32>
    %33 = vector.shape_cast %30 : vector<64x6xf32> to vector<1x64x6xf32>
    tpu.vector_store %arg9[%c0_18, %c0_19, %c0_20], %33 {strides = array<i32>} : memref<1x64x6xf32, #tpu.memory_space<vmem>>, vector<1x64x6xf32>,
    %34 = arith.subf %30, %21 : vector<64x6xf32>
    %35 = arith.mulf %34, %34 : vector<64x6xf32>
    %cst_21 = arith.constant dense<0.000000e+00> : vector<64xf32>
    %36 = vector.multi_reduction <add>, %35, %cst_21 [1] : vector<64x6xf32> to vector<64xf32>
    %37 = vector.shape_cast %36 : vector<64xf32> to vector<64x1xf32>
    %cst_22 = arith.constant 1.000000e+00 : f32
    %38 = vector.broadcast %cst_22 : f32 to vector<64x1xf32>
    %39 = arith.subf %38, %22 : vector<64x1xf32>
    %c0_23 = arith.constant 0 : index
    %c0_24 = arith.constant 0 : index
    %40 = vector.load %arg10[%c0_23, %c0_24] : memref<1x1xf32, #tpu.memory_space<vmem>>, vector<1x1xf32>
    %41 = arith.mulf %37, %39 : vector<64x1xf32>
    %42 = vector.shape_cast %41 : vector<64x1xf32> to vector<1x64x1xf32>
    %cst_25 = arith.constant dense<0.000000e+00> : vector<1xf32>
    %43 = vector.multi_reduction <add>, %42, %cst_25 [1, 2] : vector<1x64x1xf32> to vector<1xf32>
    %44 = vector.shape_cast %43 : vector<1xf32> to vector<1x1x1xf32>
    %45 = vector.extract %44[0, 0, 0] : f32 from vector<1x1x1xf32>
    %46 = vector.broadcast %45 : f32 to vector<1x1xf32>
    %47 = arith.addf %40, %46 : vector<1x1xf32>
    %c0_26 = arith.constant 0 : index
    %c0_27 = arith.constant 0 : index
    %48 = vector.load %arg10[%c0_26, %c0_27] : memref<1x1xf32, #tpu.memory_space<vmem>>, vector<1x1xf32>
    tpu.vector_store %arg10[%c0_26, %c0_27], %47 {strides = array<i32>} : memref<1x1xf32, #tpu.memory_space<vmem>>, vector<1x1xf32>,
    %c1_i32 = arith.constant 1 : i32
    %49 = arith.cmpi eq, %arg0, %c1_i32 : i32
    %50 = arith.extui %49 : i1 to i32
    %c0_i32_28 = arith.constant 0 : i32
    %51 = arith.cmpi ne, %50, %c0_i32_28 : i32
    scf.if %51 {
      %c0_162 = arith.constant 0 : index
      %c0_163 = arith.constant 0 : index
      %358 = vector.load %arg10[%c0_162, %c0_163] : memref<1x1xf32, #tpu.memory_space<vmem>>, vector<1x1xf32>
      %c0_164 = arith.constant 0 : index
      %c0_165 = arith.constant 0 : index
      %359 = vector.load %arg7[%c0_164, %c0_165] : memref<64x1xf32, #tpu.memory_space<vmem>>, vector<64x1xf32>
      %cst_166 = arith.constant 1.000000e+00 : f32
      %360 = vector.broadcast %cst_166 : f32 to vector<64x1xf32>
      %361 = arith.subf %360, %359 : vector<64x1xf32>
      %362 = vector.shape_cast %361 : vector<64x1xf32> to vector<1x64x1xf32>
      %cst_167 = arith.constant dense<0.000000e+00> : vector<1xf32>
      %363 = vector.multi_reduction <add>, %362, %cst_167 [1, 2] : vector<1x64x1xf32> to vector<1xf32>
      %364 = vector.shape_cast %363 : vector<1xf32> to vector<1x1x1xf32>
      %365 = vector.extract %364[0, 0, 0] : f32 from vector<1x1x1xf32>
      %366 = vector.broadcast %365 : f32 to vector<1x1xf32>
      %367 = arith.divf %358, %366 : vector<1x1xf32>
      %c0_168 = arith.constant 0 : index
      %c0_169 = arith.constant 0 : index
      %368 = vector.load %arg10[%c0_168, %c0_169] : memref<1x1xf32, #tpu.memory_space<vmem>>, vector<1x1xf32>
      tpu.vector_store %arg10[%c0_168, %c0_169], %367 {strides = array<i32>} : memref<1x1xf32, #tpu.memory_space<vmem>>, vector<1x1xf32>,
    } else {
    }
    %52 = vector.extract_strided_slice %3 {offsets = [0, 6], sizes = [64, 30], strides = [1, 1]} : vector<64x36xf32> to vector<64x30xf32>
    %c0_29 = arith.constant 0 : index
    %c0_30 = arith.constant 0 : index
    %53 = vector.load %arg13[%c0_29, %c0_30] : memref<64x36xf32, #tpu.memory_space<vmem>>, vector<64x30xf32>
    tpu.vector_store %arg13[%c0_29, %c0_30], %52 {strides = array<i32>} : memref<64x36xf32, #tpu.memory_space<vmem>>, vector<64x30xf32>,
    %c0_31 = arith.constant 0 : index
    %c30 = arith.constant 30 : index
    %54 = vector.load %arg13[%c0_31, %c30] : memref<64x36xf32, #tpu.memory_space<vmem>>, vector<64x6xf32>
    tpu.vector_store %arg13[%c0_31, %c30], %30 {strides = array<i32>} : memref<64x36xf32, #tpu.memory_space<vmem>>, vector<64x6xf32>,
    %55 = vector.extract_strided_slice %30 {offsets = [0, 3], sizes = [16, 3], strides = [1, 1]} : vector<64x6xf32> to vector<16x3xf32>
    %56 = vector.extract_strided_slice %55 {offsets = [0, 0], sizes = [16, 1], strides = [1, 1]} : vector<16x3xf32> to vector<16x1xf32>
    %57 = vector.extract_strided_slice %55 {offsets = [0, 1], sizes = [16, 1], strides = [1, 1]} : vector<16x3xf32> to vector<16x1xf32>
    %58 = vector.extract_strided_slice %55 {offsets = [0, 2], sizes = [16, 1], strides = [1, 1]} : vector<16x3xf32> to vector<16x1xf32>
    %cst_32 = arith.constant 1.000000e+00 : f32
    %59 = vector.broadcast %cst_32 : f32 to vector<16x1xf32>
    %60 = arith.mulf %59, %56 : vector<16x1xf32>
    %cst_33 = arith.constant 0.000000e+00 : f32
    %61 = vector.broadcast %cst_33 : f32 to vector<16x1xf32>
    %62 = arith.mulf %61, %57 : vector<16x1xf32>
    %63 = arith.addf %60, %62 : vector<16x1xf32>
    %cst_34 = arith.constant 0.000000e+00 : f32
    %64 = vector.broadcast %cst_34 : f32 to vector<16x1xf32>
    %65 = arith.mulf %64, %58 : vector<16x1xf32>
    %66 = arith.addf %63, %65 : vector<16x1xf32>
    %cst_35 = arith.constant -5.000000e-01 : f32
    %67 = vector.broadcast %cst_35 : f32 to vector<16x1xf32>
    %68 = arith.addf %66, %67 : vector<16x1xf32>
    %cst_36 = arith.constant 0.000000e+00 : f32
    %69 = vector.broadcast %cst_36 : f32 to vector<16x1xf32>
    %70 = arith.mulf %69, %56 : vector<16x1xf32>
    %cst_37 = arith.constant 0.000000e+00 : f32
    %71 = vector.broadcast %cst_37 : f32 to vector<16x1xf32>
    %72 = arith.mulf %71, %57 : vector<16x1xf32>
    %73 = arith.addf %70, %72 : vector<16x1xf32>
    %cst_38 = arith.constant -1.000000e+00 : f32
    %74 = vector.broadcast %cst_38 : f32 to vector<16x1xf32>
    %75 = arith.mulf %74, %58 : vector<16x1xf32>
    %76 = arith.addf %73, %75 : vector<16x1xf32>
    %cst_39 = arith.constant 5.000000e-01 : f32
    %77 = vector.broadcast %cst_39 : f32 to vector<16x1xf32>
    %78 = arith.addf %76, %77 : vector<16x1xf32>
    %cst_40 = arith.constant 0.000000e+00 : f32
    %79 = vector.broadcast %cst_40 : f32 to vector<16x1xf32>
    %80 = arith.mulf %79, %56 : vector<16x1xf32>
    %cst_41 = arith.constant 1.000000e+00 : f32
    %81 = vector.broadcast %cst_41 : f32 to vector<16x1xf32>
    %82 = arith.mulf %81, %57 : vector<16x1xf32>
    %83 = arith.addf %80, %82 : vector<16x1xf32>
    %cst_42 = arith.constant 0.000000e+00 : f32
    %84 = vector.broadcast %cst_42 : f32 to vector<16x1xf32>
    %85 = arith.mulf %84, %58 : vector<16x1xf32>
    %86 = arith.addf %83, %85 : vector<16x1xf32>
    %cst_43 = arith.constant -0.699999988 : f32
    %87 = vector.broadcast %cst_43 : f32 to vector<16x1xf32>
    %88 = arith.addf %86, %87 : vector<16x1xf32>
    %cst_44 = arith.constant 0.000000e+00 : f32
    %89 = vector.broadcast %cst_44 : f32 to vector<16x1xf32>
    %90 = arith.mulf %89, %56 : vector<16x1xf32>
    %cst_45 = arith.constant 0.000000e+00 : f32
    %91 = vector.broadcast %cst_45 : f32 to vector<16x1xf32>
    %92 = arith.mulf %91, %57 : vector<16x1xf32>
    %93 = arith.addf %90, %92 : vector<16x1xf32>
    %cst_46 = arith.constant 0.000000e+00 : f32
    %94 = vector.broadcast %cst_46 : f32 to vector<16x1xf32>
    %95 = arith.mulf %94, %58 : vector<16x1xf32>
    %96 = arith.addf %93, %95 : vector<16x1xf32>
    %cst_47 = arith.constant 1.000000e+00 : f32
    %97 = vector.broadcast %cst_47 : f32 to vector<16x1xf32>
    %98 = arith.addf %96, %97 : vector<16x1xf32>
    %cst_48 = arith.constant 1.73205078 : f32
    %99 = vector.broadcast %cst_48 : f32 to vector<16x1xf32>
    %100 = arith.mulf %99, %68 : vector<16x1xf32>
    %cst_49 = arith.constant 0.000000e+00 : f32
    %101 = vector.broadcast %cst_49 : f32 to vector<16x1xf32>
    %102 = arith.mulf %101, %78 : vector<16x1xf32>
    %103 = arith.addf %100, %102 : vector<16x1xf32>
    %cst_50 = arith.constant 0.000000e+00 : f32
    %104 = vector.broadcast %cst_50 : f32 to vector<16x1xf32>
    %105 = arith.mulf %104, %88 : vector<16x1xf32>
    %106 = arith.addf %103, %105 : vector<16x1xf32>
    %cst_51 = arith.constant 0.000000e+00 : f32
    %107 = vector.broadcast %cst_51 : f32 to vector<16x1xf32>
    %108 = arith.mulf %107, %98 : vector<16x1xf32>
    %109 = arith.addf %106, %108 : vector<16x1xf32>
    %cst_52 = arith.constant 0.000000e+00 : f32
    %110 = vector.broadcast %cst_52 : f32 to vector<16x1xf32>
    %111 = arith.mulf %110, %68 : vector<16x1xf32>
    %cst_53 = arith.constant 1.73205078 : f32
    %112 = vector.broadcast %cst_53 : f32 to vector<16x1xf32>
    %113 = arith.mulf %112, %78 : vector<16x1xf32>
    %114 = arith.addf %111, %113 : vector<16x1xf32>
    %cst_54 = arith.constant 0.000000e+00 : f32
    %115 = vector.broadcast %cst_54 : f32 to vector<16x1xf32>
    %116 = arith.mulf %115, %88 : vector<16x1xf32>
    %117 = arith.addf %114, %116 : vector<16x1xf32>
    %cst_55 = arith.constant 0.000000e+00 : f32
    %118 = vector.broadcast %cst_55 : f32 to vector<16x1xf32>
    %119 = arith.mulf %118, %98 : vector<16x1xf32>
    %120 = arith.addf %117, %119 : vector<16x1xf32>
    %cst_56 = arith.constant 0.000000e+00 : f32
    %121 = vector.broadcast %cst_56 : f32 to vector<16x1xf32>
    %122 = arith.mulf %121, %68 : vector<16x1xf32>
    %cst_57 = arith.constant 0.000000e+00 : f32
    %123 = vector.broadcast %cst_57 : f32 to vector<16x1xf32>
    %124 = arith.mulf %123, %78 : vector<16x1xf32>
    %125 = arith.addf %122, %124 : vector<16x1xf32>
    %cst_58 = arith.constant -1.000000e+00 : f32
    %126 = vector.broadcast %cst_58 : f32 to vector<16x1xf32>
    %127 = arith.mulf %126, %88 : vector<16x1xf32>
    %128 = arith.addf %125, %127 : vector<16x1xf32>
    %cst_59 = arith.constant 0.000000e+00 : f32
    %129 = vector.broadcast %cst_59 : f32 to vector<16x1xf32>
    %130 = arith.mulf %129, %98 : vector<16x1xf32>
    %131 = arith.addf %128, %130 : vector<16x1xf32>
    %cst_60 = arith.constant 1.000000e+00 : f32
    %132 = vector.broadcast %cst_60 : f32 to vector<16x1xf32>
    %133 = arith.divf %132, %131 : vector<16x1xf32>
    %134 = arith.mulf %109, %133 : vector<16x1xf32>
    %135 = arith.mulf %120, %133 : vector<16x1xf32>
    %136 = tpu.iota {dimensions = array<i32: 1>} : vector<1x256xi32>
    %137 = arith.sitofp %136 : vector<1x256xi32> to vector<1x256xf32>
    %cst_61 = arith.constant 6.250000e-02 : f32
    %138 = vector.broadcast %cst_61 : f32 to vector<1x256xf32>
    %139 = arith.mulf %137, %138 : vector<1x256xf32>
    %140 = math.floor %139 : vector<1x256xf32>
    %cst_62 = arith.constant 1.600000e+01 : f32
    %141 = vector.broadcast %cst_62 : f32 to vector<1x256xf32>
    %142 = arith.mulf %140, %141 : vector<1x256xf32>
    %143 = arith.subf %137, %142 : vector<1x256xf32>
    %cst_63 = arith.constant 5.000000e-01 : f32
    %144 = vector.broadcast %cst_63 : f32 to vector<1x256xf32>
    %145 = arith.addf %143, %144 : vector<1x256xf32>
    %cst_64 = arith.constant 1.250000e-01 : f32
    %146 = vector.broadcast %cst_64 : f32 to vector<1x256xf32>
    %147 = arith.mulf %145, %146 : vector<1x256xf32>
    %cst_65 = arith.constant 1.000000e+00 : f32
    %148 = vector.broadcast %cst_65 : f32 to vector<1x256xf32>
    %149 = arith.subf %147, %148 : vector<1x256xf32>
    %cst_66 = arith.constant 1.500000e+01 : f32
    %150 = vector.broadcast %cst_66 : f32 to vector<1x256xf32>
    %151 = arith.subf %150, %140 : vector<1x256xf32>
    %cst_67 = arith.constant 5.000000e-01 : f32
    %152 = vector.broadcast %cst_67 : f32 to vector<1x256xf32>
    %153 = arith.addf %151, %152 : vector<1x256xf32>
    %cst_68 = arith.constant 1.250000e-01 : f32
    %154 = vector.broadcast %cst_68 : f32 to vector<1x256xf32>
    %155 = arith.mulf %153, %154 : vector<1x256xf32>
    %cst_69 = arith.constant 1.000000e+00 : f32
    %156 = vector.broadcast %cst_69 : f32 to vector<1x256xf32>
    %157 = arith.subf %155, %156 : vector<1x256xf32>
    %158 = vector.broadcast %149 : vector<1x256xf32> to vector<16x256xf32>
    %159 = vector.broadcast %134 : vector<16x1xf32> to vector<16x256xf32>
    %160 = arith.subf %158, %159 : vector<16x256xf32>
    %161 = math.absf %160 : vector<16x256xf32>
    %cst_70 = arith.constant 2.000000e-01 : f32
    %162 = vector.broadcast %cst_70 : f32 to vector<16x256xf32>
    %163 = arith.cmpf ole, %161, %162 : vector<16x256xf32>
    %164 = vector.broadcast %157 : vector<1x256xf32> to vector<16x256xf32>
    %165 = vector.broadcast %135 : vector<16x1xf32> to vector<16x256xf32>
    %166 = arith.subf %164, %165 : vector<16x256xf32>
    %167 = math.absf %166 : vector<16x256xf32>
    %cst_71 = arith.constant 2.000000e-01 : f32
    %168 = vector.broadcast %cst_71 : f32 to vector<16x256xf32>
    %169 = arith.cmpf ole, %167, %168 : vector<16x256xf32>
    %170 = arith.andi %163, %169 : vector<16x256xi1>
    %cst_72 = arith.constant -1.000000e+09 : f32
    %171 = vector.shape_cast %88 : vector<16x1xf32> to vector<16x1xf32>
    %172 = vector.broadcast %171 : vector<16x1xf32> to vector<16x256xf32>
    %173 = vector.broadcast %cst_72 : f32 to vector<16x256xf32>
    %174 = arith.select %170, %172, %173 : vector<16x256xi1>, vector<16x256xf32>
    %cst_73 = arith.constant dense<0xFF800000> : vector<256xf32>
    %175 = vector.multi_reduction <maximumf>, %174, %cst_73 [0] : vector<16x256xf32> to vector<256xf32>
    %176 = vector.shape_cast %175 : vector<256xf32> to vector<1x256xf32>
    %cst_74 = arith.constant -1.000000e+05 : f32
    %177 = vector.broadcast %cst_74 : f32 to vector<1x256xf32>
    %178 = arith.cmpf ole, %176, %177 : vector<1x256xf32>
    %cst_75 = arith.constant -1.000000e+02 : f32
    %179 = vector.broadcast %cst_75 : f32 to vector<1x256xf32>
    %180 = arith.select %178, %179, %176 : vector<1x256xi1>, vector<1x256xf32>
    %c0_76 = arith.constant 0 : index
    %c0_77 = arith.constant 0 : index
    %c0_78 = arith.constant 0 : index
    %181 = vector.load %arg11[%c0_76, %c0_77, %c0_78] : memref<1x1x256xf32, #tpu.memory_space<vmem>>, vector<1x1x256xf32>
    %182 = vector.shape_cast %181 : vector<1x1x256xf32> to vector<1x256xf32>
    %183 = vector.shape_cast %180 : vector<1x256xf32> to vector<1x1x256xf32>
    tpu.vector_store %arg11[%c0_76, %c0_77, %c0_78], %183 {strides = array<i32>} : memref<1x1x256xf32, #tpu.memory_space<vmem>>, vector<1x1x256xf32>,
    %cst_79 = arith.constant -1.000000e+00 : f32
    %184 = vector.broadcast %cst_79 : f32 to vector<1x256xf32>
    %185 = arith.mulf %184, %180 : vector<1x256xf32>
    %cst_80 = arith.constant -1.000000e-01 : f32
    %186 = vector.broadcast %cst_80 : f32 to vector<1x256xf32>
    %187 = arith.addf %185, %186 : vector<1x256xf32>
    %cst_81 = arith.constant -1.000000e+00 : f32
    %188 = vector.broadcast %cst_81 : f32 to vector<1x256xf32>
    %189 = arith.mulf %188, %180 : vector<1x256xf32>
    %190 = arith.divf %187, %189 : vector<1x256xf32>
    %cst_82 = arith.constant 1.000000e+00 : f32
    %191 = vector.broadcast %cst_82 : f32 to vector<1x256xf32>
    %cst_83 = arith.constant 0.577350259 : f32
    %192 = vector.broadcast %cst_83 : f32 to vector<1x256xf32>
    %193 = arith.mulf %192, %149 : vector<1x256xf32>
    %cst_84 = arith.constant 0.000000e+00 : f32
    %194 = vector.broadcast %cst_84 : f32 to vector<1x256xf32>
    %195 = arith.mulf %194, %157 : vector<1x256xf32>
    %196 = arith.addf %193, %195 : vector<1x256xf32>
    %cst_85 = arith.constant -0.000000e+00 : f32
    %197 = vector.broadcast %cst_85 : f32 to vector<1x256xf32>
    %198 = arith.mulf %197, %190 : vector<1x256xf32>
    %199 = arith.addf %196, %198 : vector<1x256xf32>
    %cst_86 = arith.constant 0.000000e+00 : f32
    %200 = vector.broadcast %cst_86 : f32 to vector<1x256xf32>
    %201 = arith.mulf %200, %191 : vector<1x256xf32>
    %202 = arith.addf %199, %201 : vector<1x256xf32>
    %cst_87 = arith.constant 0.000000e+00 : f32
    %203 = vector.broadcast %cst_87 : f32 to vector<1x256xf32>
    %204 = arith.mulf %203, %149 : vector<1x256xf32>
    %cst_88 = arith.constant 0.577350259 : f32
    %205 = vector.broadcast %cst_88 : f32 to vector<1x256xf32>
    %206 = arith.mulf %205, %157 : vector<1x256xf32>
    %207 = arith.addf %204, %206 : vector<1x256xf32>
    %cst_89 = arith.constant -0.000000e+00 : f32
    %208 = vector.broadcast %cst_89 : f32 to vector<1x256xf32>
    %209 = arith.mulf %208, %190 : vector<1x256xf32>
    %210 = arith.addf %207, %209 : vector<1x256xf32>
    %cst_90 = arith.constant 0.000000e+00 : f32
    %211 = vector.broadcast %cst_90 : f32 to vector<1x256xf32>
    %212 = arith.mulf %211, %191 : vector<1x256xf32>
    %213 = arith.addf %210, %212 : vector<1x256xf32>
    %cst_91 = arith.constant 0.000000e+00 : f32
    %214 = vector.broadcast %cst_91 : f32 to vector<1x256xf32>
    %215 = arith.mulf %214, %149 : vector<1x256xf32>
    %cst_92 = arith.constant 0.000000e+00 : f32
    %216 = vector.broadcast %cst_92 : f32 to vector<1x256xf32>
    %217 = arith.mulf %216, %157 : vector<1x256xf32>
    %218 = arith.addf %215, %217 : vector<1x256xf32>
    %cst_93 = arith.constant -0.000000e+00 : f32
    %219 = vector.broadcast %cst_93 : f32 to vector<1x256xf32>
    %220 = arith.mulf %219, %190 : vector<1x256xf32>
    %221 = arith.addf %218, %220 : vector<1x256xf32>
    %cst_94 = arith.constant -1.000000e+01 : f32
    %222 = vector.broadcast %cst_94 : f32 to vector<1x256xf32>
    %223 = arith.mulf %222, %191 : vector<1x256xf32>
    %224 = arith.addf %221, %223 : vector<1x256xf32>
    %cst_95 = arith.constant 0.000000e+00 : f32
    %225 = vector.broadcast %cst_95 : f32 to vector<1x256xf32>
    %226 = arith.mulf %225, %149 : vector<1x256xf32>
    %cst_96 = arith.constant 0.000000e+00 : f32
    %227 = vector.broadcast %cst_96 : f32 to vector<1x256xf32>
    %228 = arith.mulf %227, %157 : vector<1x256xf32>
    %229 = arith.addf %226, %228 : vector<1x256xf32>
    %cst_97 = arith.constant -1.000000e+00 : f32
    %230 = vector.broadcast %cst_97 : f32 to vector<1x256xf32>
    %231 = arith.mulf %230, %190 : vector<1x256xf32>
    %232 = arith.addf %229, %231 : vector<1x256xf32>
    %cst_98 = arith.constant 1.000000e+01 : f32
    %233 = vector.broadcast %cst_98 : f32 to vector<1x256xf32>
    %234 = arith.mulf %233, %191 : vector<1x256xf32>
    %235 = arith.addf %232, %234 : vector<1x256xf32>
    %cst_99 = arith.constant 1.000000e+00 : f32
    %236 = vector.broadcast %cst_99 : f32 to vector<1x256xf32>
    %237 = arith.divf %236, %235 : vector<1x256xf32>
    %238 = arith.mulf %202, %237 : vector<1x256xf32>
    %239 = arith.mulf %213, %237 : vector<1x256xf32>
    %240 = arith.mulf %224, %237 : vector<1x256xf32>
    %c0_100 = arith.constant 0 : index
    %c0_101 = arith.constant 0 : index
    %c0_102 = arith.constant 0 : index
    %241 = vector.load %arg8[%c0_100, %c0_101, %c0_102] : memref<1x1x256xf32, #tpu.memory_space<vmem>>, vector<1x1x256xf32>
    %242 = vector.shape_cast %241 : vector<1x1x256xf32> to vector<1x256xf32>
    %cst_103 = arith.constant 0.000000e+00 : f32
    %243 = vector.broadcast %cst_103 : f32 to vector<1x256xf32>
    %244 = arith.cmpf oeq, %242, %243 : vector<1x256xf32>
    %cst_104 = arith.constant -1.000000e+02 : f32
    %245 = vector.broadcast %cst_104 : f32 to vector<1x256xf32>
    %246 = arith.select %244, %245, %242 : vector<1x256xi1>, vector<1x256xf32>
    %cst_105 = arith.constant -1.000000e+00 : f32
    %247 = vector.broadcast %cst_105 : f32 to vector<1x256xf32>
    %248 = arith.mulf %247, %246 : vector<1x256xf32>
    %cst_106 = arith.constant -1.000000e-01 : f32
    %249 = vector.broadcast %cst_106 : f32 to vector<1x256xf32>
    %250 = arith.addf %248, %249 : vector<1x256xf32>
    %cst_107 = arith.constant -1.000000e+00 : f32
    %251 = vector.broadcast %cst_107 : f32 to vector<1x256xf32>
    %252 = arith.mulf %251, %246 : vector<1x256xf32>
    %253 = arith.divf %250, %252 : vector<1x256xf32>
    %cst_108 = arith.constant 1.000000e+00 : f32
    %254 = vector.broadcast %cst_108 : f32 to vector<1x256xf32>
    %cst_109 = arith.constant 0.577350259 : f32
    %255 = vector.broadcast %cst_109 : f32 to vector<1x256xf32>
    %256 = arith.mulf %255, %149 : vector<1x256xf32>
    %cst_110 = arith.constant 0.000000e+00 : f32
    %257 = vector.broadcast %cst_110 : f32 to vector<1x256xf32>
    %258 = arith.mulf %257, %157 : vector<1x256xf32>
    %259 = arith.addf %256, %258 : vector<1x256xf32>
    %cst_111 = arith.constant -0.000000e+00 : f32
    %260 = vector.broadcast %cst_111 : f32 to vector<1x256xf32>
    %261 = arith.mulf %260, %253 : vector<1x256xf32>
    %262 = arith.addf %259, %261 : vector<1x256xf32>
    %cst_112 = arith.constant 0.000000e+00 : f32
    %263 = vector.broadcast %cst_112 : f32 to vector<1x256xf32>
    %264 = arith.mulf %263, %254 : vector<1x256xf32>
    %265 = arith.addf %262, %264 : vector<1x256xf32>
    %cst_113 = arith.constant 0.000000e+00 : f32
    %266 = vector.broadcast %cst_113 : f32 to vector<1x256xf32>
    %267 = arith.mulf %266, %149 : vector<1x256xf32>
    %cst_114 = arith.constant 0.577350259 : f32
    %268 = vector.broadcast %cst_114 : f32 to vector<1x256xf32>
    %269 = arith.mulf %268, %157 : vector<1x256xf32>
    %270 = arith.addf %267, %269 : vector<1x256xf32>
    %cst_115 = arith.constant -0.000000e+00 : f32
    %271 = vector.broadcast %cst_115 : f32 to vector<1x256xf32>
    %272 = arith.mulf %271, %253 : vector<1x256xf32>
    %273 = arith.addf %270, %272 : vector<1x256xf32>
    %cst_116 = arith.constant 0.000000e+00 : f32
    %274 = vector.broadcast %cst_116 : f32 to vector<1x256xf32>
    %275 = arith.mulf %274, %254 : vector<1x256xf32>
    %276 = arith.addf %273, %275 : vector<1x256xf32>
    %cst_117 = arith.constant 0.000000e+00 : f32
    %277 = vector.broadcast %cst_117 : f32 to vector<1x256xf32>
    %278 = arith.mulf %277, %149 : vector<1x256xf32>
    %cst_118 = arith.constant 0.000000e+00 : f32
    %279 = vector.broadcast %cst_118 : f32 to vector<1x256xf32>
    %280 = arith.mulf %279, %157 : vector<1x256xf32>
    %281 = arith.addf %278, %280 : vector<1x256xf32>
    %cst_119 = arith.constant -0.000000e+00 : f32
    %282 = vector.broadcast %cst_119 : f32 to vector<1x256xf32>
    %283 = arith.mulf %282, %253 : vector<1x256xf32>
    %284 = arith.addf %281, %283 : vector<1x256xf32>
    %cst_120 = arith.constant -1.000000e+01 : f32
    %285 = vector.broadcast %cst_120 : f32 to vector<1x256xf32>
    %286 = arith.mulf %285, %254 : vector<1x256xf32>
    %287 = arith.addf %284, %286 : vector<1x256xf32>
    %cst_121 = arith.constant 0.000000e+00 : f32
    %288 = vector.broadcast %cst_121 : f32 to vector<1x256xf32>
    %289 = arith.mulf %288, %149 : vector<1x256xf32>
    %cst_122 = arith.constant 0.000000e+00 : f32
    %290 = vector.broadcast %cst_122 : f32 to vector<1x256xf32>
    %291 = arith.mulf %290, %157 : vector<1x256xf32>
    %292 = arith.addf %289, %291 : vector<1x256xf32>
    %cst_123 = arith.constant -1.000000e+00 : f32
    %293 = vector.broadcast %cst_123 : f32 to vector<1x256xf32>
    %294 = arith.mulf %293, %253 : vector<1x256xf32>
    %295 = arith.addf %292, %294 : vector<1x256xf32>
    %cst_124 = arith.constant 1.000000e+01 : f32
    %296 = vector.broadcast %cst_124 : f32 to vector<1x256xf32>
    %297 = arith.mulf %296, %254 : vector<1x256xf32>
    %298 = arith.addf %295, %297 : vector<1x256xf32>
    %cst_125 = arith.constant 1.000000e+00 : f32
    %299 = vector.broadcast %cst_125 : f32 to vector<1x256xf32>
    %300 = arith.divf %299, %298 : vector<1x256xf32>
    %301 = arith.mulf %265, %300 : vector<1x256xf32>
    %302 = arith.mulf %276, %300 : vector<1x256xf32>
    %303 = arith.mulf %287, %300 : vector<1x256xf32>
    %c0_126 = arith.constant 0 : index
    %c0_127 = arith.constant 0 : index
    %304 = vector.load %arg14[%c0_126, %c0_127] : memref<8x256xf32, #tpu.memory_space<vmem>>, vector<1x256xf32>
    tpu.vector_store %arg14[%c0_126, %c0_127], %301 {strides = array<i32>} : memref<8x256xf32, #tpu.memory_space<vmem>>, vector<1x256xf32>,
    %c1 = arith.constant 1 : index
    %c0_128 = arith.constant 0 : index
    %305 = vector.load %arg14[%c1, %c0_128] : memref<8x256xf32, #tpu.memory_space<vmem>>, vector<1x256xf32>
    tpu.vector_store %arg14[%c1, %c0_128], %302 {strides = array<i32>} : memref<8x256xf32, #tpu.memory_space<vmem>>, vector<1x256xf32>,
    %c2 = arith.constant 2 : index
    %c0_129 = arith.constant 0 : index
    %306 = vector.load %arg14[%c2, %c0_129] : memref<8x256xf32, #tpu.memory_space<vmem>>, vector<1x256xf32>
    tpu.vector_store %arg14[%c2, %c0_129], %303 {strides = array<i32>} : memref<8x256xf32, #tpu.memory_space<vmem>>, vector<1x256xf32>,
    %cst_130 = arith.constant 1.000000e+00 : f32
    %307 = vector.broadcast %cst_130 : f32 to vector<1x256xf32>
    %c3 = arith.constant 3 : index
    %c0_131 = arith.constant 0 : index
    %308 = vector.load %arg14[%c3, %c0_131] : memref<8x256xf32, #tpu.memory_space<vmem>>, vector<1x256xf32>
    tpu.vector_store %arg14[%c3, %c0_131], %307 {strides = array<i32>} : memref<8x256xf32, #tpu.memory_space<vmem>>, vector<1x256xf32>,
    %309 = arith.mulf %301, %301 : vector<1x256xf32>
    %310 = arith.mulf %302, %302 : vector<1x256xf32>
    %311 = arith.addf %309, %310 : vector<1x256xf32>
    %312 = arith.mulf %303, %303 : vector<1x256xf32>
    %313 = arith.addf %311, %312 : vector<1x256xf32>
    %c4 = arith.constant 4 : index
    %c0_132 = arith.constant 0 : index
    %314 = vector.load %arg14[%c4, %c0_132] : memref<8x256xf32, #tpu.memory_space<vmem>>, vector<1x256xf32>
    tpu.vector_store %arg14[%c4, %c0_132], %313 {strides = array<i32>} : memref<8x256xf32, #tpu.memory_space<vmem>>, vector<1x256xf32>,
    %cst_133 = arith.constant -2.000000e+00 : f32
    %315 = vector.broadcast %cst_133 : f32 to vector<1x256xf32>
    %316 = arith.mulf %315, %238 : vector<1x256xf32>
    %c0_134 = arith.constant 0 : index
    %c0_135 = arith.constant 0 : index
    %317 = vector.load %arg15[%c0_134, %c0_135] : memref<8x256xf32, #tpu.memory_space<vmem>>, vector<1x256xf32>
    tpu.vector_store %arg15[%c0_134, %c0_135], %316 {strides = array<i32>} : memref<8x256xf32, #tpu.memory_space<vmem>>, vector<1x256xf32>,
    %cst_136 = arith.constant -2.000000e+00 : f32
    %318 = vector.broadcast %cst_136 : f32 to vector<1x256xf32>
    %319 = arith.mulf %318, %239 : vector<1x256xf32>
    %c1_137 = arith.constant 1 : index
    %c0_138 = arith.constant 0 : index
    %320 = vector.load %arg15[%c1_137, %c0_138] : memref<8x256xf32, #tpu.memory_space<vmem>>, vector<1x256xf32>
    tpu.vector_store %arg15[%c1_137, %c0_138], %319 {strides = array<i32>} : memref<8x256xf32, #tpu.memory_space<vmem>>, vector<1x256xf32>,
    %cst_139 = arith.constant -2.000000e+00 : f32
    %321 = vector.broadcast %cst_139 : f32 to vector<1x256xf32>
    %322 = arith.mulf %321, %240 : vector<1x256xf32>
    %c2_140 = arith.constant 2 : index
    %c0_141 = arith.constant 0 : index
    %323 = vector.load %arg15[%c2_140, %c0_141] : memref<8x256xf32, #tpu.memory_space<vmem>>, vector<1x256xf32>
    tpu.vector_store %arg15[%c2_140, %c0_141], %322 {strides = array<i32>} : memref<8x256xf32, #tpu.memory_space<vmem>>, vector<1x256xf32>,
    %324 = arith.mulf %238, %238 : vector<1x256xf32>
    %325 = arith.mulf %239, %239 : vector<1x256xf32>
    %326 = arith.addf %324, %325 : vector<1x256xf32>
    %327 = arith.mulf %240, %240 : vector<1x256xf32>
    %328 = arith.addf %326, %327 : vector<1x256xf32>
    %c3_142 = arith.constant 3 : index
    %c0_143 = arith.constant 0 : index
    %329 = vector.load %arg15[%c3_142, %c0_143] : memref<8x256xf32, #tpu.memory_space<vmem>>, vector<1x256xf32>
    tpu.vector_store %arg15[%c3_142, %c0_143], %328 {strides = array<i32>} : memref<8x256xf32, #tpu.memory_space<vmem>>, vector<1x256xf32>,
    %cst_144 = arith.constant 1.000000e+00 : f32
    %330 = vector.broadcast %cst_144 : f32 to vector<1x256xf32>
    %c4_145 = arith.constant 4 : index
    %c0_146 = arith.constant 0 : index
    %331 = vector.load %arg15[%c4_145, %c0_146] : memref<8x256xf32, #tpu.memory_space<vmem>>, vector<1x256xf32>
    tpu.vector_store %arg15[%c4_145, %c0_146], %330 {strides = array<i32>} : memref<8x256xf32, #tpu.memory_space<vmem>>, vector<1x256xf32>,
    %c0_147 = arith.constant 0 : index
    %c0_148 = arith.constant 0 : index
    %332 = vector.load %arg14[%c0_147, %c0_148] : memref<8x256xf32, #tpu.memory_space<vmem>>, vector<8x256xf32>
    %333 = tpu.transpose %332, [1, 0] : vector<8x256xf32> -> vector<256x8xf32>
    %c0_149 = arith.constant 0 : index
    %c0_150 = arith.constant 0 : index
    %334 = vector.load %arg15[%c0_149, %c0_150] : memref<8x256xf32, #tpu.memory_space<vmem>>, vector<8x256xf32>
    %cst_151 = arith.constant dense<0.000000e+00> : vector<256x256xf32>
    %335 = tpu.matmul %333, %334, %cst_151 {dimension_numbers = #tpu.dot_dimension_numbers<[1], [0], [0], [1], [0, 0, 1, 1], [], []>} : vector<256x8xf32>, vector<8x256xf32>, vector<256x256xf32> -> vector<256x256xf32>
    %cst_152 = arith.constant dense<0x7F800000> : vector<256xf32>
    %336 = vector.multi_reduction <minimumf>, %335, %cst_152 [1] : vector<256x256xf32> to vector<256xf32>
    %337 = vector.shape_cast %336 : vector<256xf32> to vector<256x1xf32>
    %cst_153 = arith.constant dense<0x7F800000> : vector<256xf32>
    %338 = vector.multi_reduction <minimumf>, %335, %cst_153 [0] : vector<256x256xf32> to vector<256xf32>
    %339 = vector.shape_cast %338 : vector<256xf32> to vector<1x256xf32>
    %c0_154 = arith.constant 0 : index
    %c0_155 = arith.constant 0 : index
    %340 = vector.load %arg12[%c0_154, %c0_155] : memref<1x1xf32, #tpu.memory_space<vmem>>, vector<1x1xf32>
    %341 = vector.shape_cast %337 : vector<256x1xf32> to vector<1x256x1xf32>
    %cst_156 = arith.constant dense<0.000000e+00> : vector<1xf32>
    %342 = vector.multi_reduction <add>, %341, %cst_156 [1, 2] : vector<1x256x1xf32> to vector<1xf32>
    %343 = vector.shape_cast %342 : vector<1xf32> to vector<1x1x1xf32>
    %344 = vector.extract %343[0, 0, 0] : f32 from vector<1x1x1xf32>
    %345 = vector.broadcast %344 : f32 to vector<1x1xf32>
    %cst_157 = arith.constant 2.560000e+02 : f32
    %346 = vector.broadcast %cst_157 : f32 to vector<1x1xf32>
    %347 = arith.divf %345, %346 : vector<1x1xf32>
    %348 = arith.addf %340, %347 : vector<1x1xf32>
    %349 = vector.shape_cast %339 : vector<1x256xf32> to vector<1x1x256xf32>
    %cst_158 = arith.constant dense<0.000000e+00> : vector<1xf32>
    %350 = vector.multi_reduction <add>, %349, %cst_158 [1, 2] : vector<1x1x256xf32> to vector<1xf32>
    %351 = vector.shape_cast %350 : vector<1xf32> to vector<1x1x1xf32>
    %352 = vector.extract %351[0, 0, 0] : f32 from vector<1x1x1xf32>
    %353 = vector.broadcast %352 : f32 to vector<1x1xf32>
    %cst_159 = arith.constant 2.560000e+02 : f32
    %354 = vector.broadcast %cst_159 : f32 to vector<1x1xf32>
    %355 = arith.divf %353, %354 : vector<1x1xf32>
    %356 = arith.addf %348, %355 : vector<1x1xf32>
    %c0_160 = arith.constant 0 : index
    %c0_161 = arith.constant 0 : index
    %357 = vector.load %arg12[%c0_160, %c0_161] : memref<1x1xf32, #tpu.memory_space<vmem>>, vector<1x1xf32>
    tpu.vector_store %arg12[%c0_160, %c0_161], %356 {strides = array<i32>} : memref<1x1xf32, #tpu.memory_space<vmem>>, vector<1x1xf32>,
    return
  }
  func.func @transform_0(%arg0: i32) -> (i32, i32) {
    %c0_i32 = arith.constant 0 : i32
    %c0_i32_0 = arith.constant 0 : i32
    %c0_i32_1 = arith.constant 0 : i32
    return %c0_i32, %c0_i32_0 : i32, i32
  }
  func.func @transform_1(%arg0: i32) -> (i32, i32) {
    %c0_i32 = arith.constant 0 : i32
    %c0_i32_0 = arith.constant 0 : i32
    %c0_i32_1 = arith.constant 0 : i32
    return %c0_i32, %c0_i32_0 : i32, i32
  }
  func.func @transform_2(%arg0: i32) -> (i32, i32) {
    %c0_i32 = arith.constant 0 : i32
    %c0_i32_0 = arith.constant 0 : i32
    %c0_i32_1 = arith.constant 0 : i32
    return %c0_i32, %c0_i32_0 : i32, i32
  }
  func.func @transform_3(%arg0: i32) -> (i32, i32) {
    %c0_i32 = arith.constant 0 : i32
    %c0_i32_0 = arith.constant 0 : i32
    %c0_i32_1 = arith.constant 0 : i32
    return %c0_i32, %c0_i32_0 : i32, i32
  }
  func.func @transform_4(%arg0: i32) -> (i32, i32) {
    %c0_i32 = arith.constant 0 : i32
    %c0_i32_0 = arith.constant 0 : i32
    %c0_i32_1 = arith.constant 0 : i32
    return %c0_i32, %c0_i32_0 : i32, i32
  }
  func.func @transform_5(%arg0: i32) -> (i32, i32, i32) {
    %c0_i32 = arith.constant 0 : i32
    %c0_i32_0 = arith.constant 0 : i32
    %c0_i32_1 = arith.constant 0 : i32
    return %arg0, %c0_i32, %c0_i32_0 : i32, i32, i32
  }
  func.func @transform_6(%arg0: i32) -> (i32, i32) {
    %c0_i32 = arith.constant 0 : i32
    %c0_i32_0 = arith.constant 0 : i32
    %c0_i32_1 = arith.constant 0 : i32
    return %c0_i32, %c0_i32_0 : i32, i32
  }
  func.func @transform_7(%arg0: i32) -> (i32, i32, i32) {
    %c0_i32 = arith.constant 0 : i32
    %c0_i32_0 = arith.constant 0 : i32
    %c0_i32_1 = arith.constant 0 : i32
    return %arg0, %c0_i32, %c0_i32_0 : i32, i32, i32
  }
  func.func @transform_8(%arg0: i32) -> (i32, i32, i32) {
    %c0_i32 = arith.constant 0 : i32
    %c0_i32_0 = arith.constant 0 : i32
    %c0_i32_1 = arith.constant 0 : i32
    return %arg0, %c0_i32, %c0_i32_0 : i32, i32, i32
  }
  func.func @transform_9(%arg0: i32) -> (i32, i32) {
    %c0_i32 = arith.constant 0 : i32
    %c0_i32_0 = arith.constant 0 : i32
    %c0_i32_1 = arith.constant 0 : i32
    return %c0_i32, %c0_i32_0 : i32, i32
  }
  func.func @transform_10(%arg0: i32) -> (i32, i32, i32) {
    %c0_i32 = arith.constant 0 : i32
    %c0_i32_0 = arith.constant 0 : i32
    %c0_i32_1 = arith.constant 0 : i32
    return %arg0, %c0_i32, %c0_i32_0 : i32, i32, i32
  }
  func.func @transform_11(%arg0: i32) -> (i32, i32) {
    %c0_i32 = arith.constant 0 : i32
    %c0_i32_0 = arith.constant 0 : i32
    %c0_i32_1 = arith.constant 0 : i32
    return %c0_i32, %c0_i32_0 : i32, i32
  }
}

</mosaic_0001>

<bundles_post_ra>
// kernel: tpu_custom_call.1
= control target key start
LH: loop header
LB: loop body
LE: loop exit
PB: predicated region body
PF: predicated region fallthrough
CT: control target
= control target key end

     0   :  { %17 = vsyncpa [#allocation6], 0  ;;  %s3862_s0 = inlined_call_operand.vmem [shape: f32[64,36], index: 0, kind: input, shape index: {}]   ;;  %s3863_s1 = inlined_call_operand.vmem [shape: bf16[36,128], index: 1, kind: input, shape index: {}]   ;;  %s3864_s2 = inlined_call_operand.vmem [shape: f32[1,128], index: 2, kind: input, shape index: {}]   ;;  %s3865_s3 = inlined_call_operand.vmem [shape: bf16[128,6], index: 3, kind: input, shape index: {}]   ;;  %s3866_s4 = inlined_call_operand.vmem [shape: f32[1,6], index: 4, kind: input, shape index: {}]   ;;  %s3867_s5 = inlined_call_operand.vmem [shape: f32[2,64,6], index: 5, kind: input, shape index: {}]   ;;  %s3868_s6 = inlined_call_operand.vmem [shape: f32[64,1], index: 6, kind: input, shape index: {}]   ;;  %s3869_s7 = inlined_call_operand.vmem [shape: f32[2,1,256], index: 7, kind: input, shape index: {}]   ;;  %s3870_s8 = inlined_call_operand.vmem [shape: f32[2,64,6], index: 8, kind: output, shape index: {0}]   ;;  %s3871_s9 = inlined_call_operand.hbm [shape: f32[1,1], index: 9, kind: output, shape index: {1}]   ;;  %s3872_s10 = inlined_call_operand.hbm [shape: f32[2,1,256], index: 10, kind: output, shape index: {2}]   ;;  %s3873_s11 = inlined_call_operand.hbm [shape: f32[1,1], index: 11, kind: output, shape index: {3}]  }
   0x1   :  { %18 = vsyncpa [#allocation8], 0 }
   0x2   :  { %20 = vsyncpa [#allocation8 + $0x1], 0  ;;  %s2943_s17 = smov 0   ;;  %s2945_s18 = smov 0  }
   0x3   :  { %s2947_s19 = smov 0   ;;  %s2949_s20 = smov 0  }
   0x4 LB: > { %3880 = sst [smem:[#allocation13_spill]] %s2858_s18  ;;  %s2962_s21 = sadd.s32 4294967295, %s2866_s20   ;;  %s2866_s20 = sphi %s2949_s20, %s3904_s20   ;;  %s2862_s19 = sphi %s2947_s19, %s3907_s19   ;;  %s2858_s18 = sphi %s2945_s18, %s3906_s18   ;;  %s2854_s17 = sphi %s2943_s17, %s3905_s17  }
   0x5   : > { %3881 = sst [smem:[#allocation14_spill]] %s2862_s19  ;;  %s3874_s22 = sadd.s32 4294967294, %s2866_s20  }
   0x6   : > { %s2966_s23 = sadd.s32 1, %s2866_s20   ;;  %s258_s24 = sadd.s32 1, %s2862_s19 }
   0x7   : > { %3882 = sst [smem:[#allocation15_spill]] %s2966_s23  ;;  %s255_s25 = ssub.s32 %s2866_s20, %s2966_s23 }
   0x8   : > { %p268_p0 = scmp.ne.s32.totalorder %s2862_s19, %s2858_s18  ;;  %p256_p1 = scmp.eq.s32.totalorder %s255_s25, 0 }
   0x9   : > { %p269_p2 = scmp.eq.s32.totalorder %s2962_s21, 1  ;;  %p274_p3 = scmp.ne.s32.totalorder %s2858_s18, %s2854_s17 }
   0xa   : > { %p275_p4 = scmp.eq.s32.totalorder %s3874_s22, 1  ;;  %p2502_p7 = scmp.ge.s32.totalorder %s2866_s20, 1 }
   0xb   : > { %s2978_s26 = scalar_select %p256_p1, %s2862_s19, %s258_s24  }
   0xc   : > { %p2982_p5 = por %p269_p2, %p268_p0  ;;  %p2986_p6 = por %p275_p4, %p274_p3 }
   0xd   : > { %3883 = sst [smem:[#allocation16_spill]] %s2978_s26  ;;  %p347_p8 = scmp.lt.s32.totalorder %s2866_s20, 3 }
   0xf   : > { %p348_p9 = pnand %p2502_p7, %p347_p8 }
  0x11   : > { %351 = sbr.rel (%p348_p9) target bundleno = 2175 (0x87f), region = 52 }
  0x18   : > { %s391_s29 = sand.u32 1, %s2858_s18   ;;  %p396_p10 = scmp.lt.s32.totalorder %s2962_s21, 1 }
  0x19   : > { %s2994_s30 = sshll.u32 %s391_s29, 1  ;;  %p2509_p11 = scmp.ne.s32.totalorder %s2962_s21, 0 }
  0x1a   : > { %s397_s12 = scalar_select %p396_p10, %s2962_s21, 1 }
  0x1b   : > { %s393_s29 = scalar_lea.vmem [#allocation7], %s2994_s30  ;;  %414 = sbr.rel (%p2509_p11) target bundleno = 35 (0x23), region = 56  ;;  %v415_v0 = vld [vmem:[%s3862_s0] sm:$0xff] (!%p2509_p11)  ;;  %vm423_vm0 = vcmask (!%p2509_p11), 293888   ;;  %v416_v1 = vld [vmem:[%s3862_s0 + $0x8] sm:$0xff] (!%p2509_p11)  ;;  %v417_v2 = vld [vmem:[%s3862_s0 + $0x10] sm:$0xff] (!%p2509_p11) }
  0x1c   : > { %s2573_s13 = sshll.u32 %s397_s12, 6  ;;  %s2506_s14 = sshll.u32 %s397_s12, 1  ;;  %vm432_vm1 = vcmask (!%p2509_p11), 0   ;;  %424 = vst.msk [vmem:[#allocation2] sm:$0xff] (!%p2509_p11), %vm423_vm0, %v415_v0  ;;  %425 = vst.msk [vmem:[#allocation2 + $0x8] sm:$0xff] (!%p2509_p11), %vm423_vm0, %v416_v1  ;;  %v418_v3 = vld [vmem:[%s3862_s0 + $0x18] sm:$0xff] (!%p2509_p11) }
  0x1d   : > { %s3000_s17 = scalar_lea.vmem %s3867_s5, %s2573_s13  ;;  %s3005_s22 = scalar_lea.vmem %s3869_s7, %s2506_s14  ;;  %426 = vst.msk [vmem:[#allocation2 + $0x10] sm:$0xff] (!%p2509_p11), %vm423_vm0, %v417_v2  ;;  %v419_v4 = vld [vmem:[%s3862_s0 + $0x20] sm:$0xff] (!%p2509_p11)  ;;  %v420_v5 = vld [vmem:[%s3862_s0 + $0x28] sm:$0xff] (!%p2509_p11)  ;;  %v2868_v6 = vmov (!%p2509_p11), 0.0   ;;  %427 = vst.msk [vmem:[#allocation2 + $0x18] sm:$0xff] (!%p2509_p11), %vm423_vm0, %v418_v3 }
  0x1e   : > { %s3010_s18 = scalar_lea.vmem %s3870_s8, %s2573_s13  ;;  %433 = vst.msk [vmem:[#allocation5] sm:$0x1] (!%p2509_p11), %vm432_vm1, %v2868_v6  ;;  %434 = vst.msk [vmem:[#allocation9] sm:$0x1] (!%p2509_p11), %vm432_vm1, %v2868_v6  ;;  %v421_v7 = vld [vmem:[%s3862_s0 + $0x30] sm:$0xff] (!%p2509_p11)  ;;  %v422_v8 = vld [vmem:[%s3862_s0 + $0x38] sm:$0xff] (!%p2509_p11) }
  0x1f   : > { %435 = vst [vmem:[#allocation3] sm:$0xff] (!%p2509_p11), %v2868_v6  ;;  %436 = vst [vmem:[#allocation3 + $0x8] sm:$0xff] (!%p2509_p11), %v2868_v6 }
  0x20   : > { %437 = vst [vmem:[#allocation4] sm:$0xff] (!%p2509_p11), %v2868_v6  ;;  %438 = vst [vmem:[#allocation4 + $0x8] sm:$0xff] (!%p2509_p11), %v2868_v6 }
  0x21   : > { %428 = vst.msk [vmem:[#allocation2 + $0x20] sm:$0xff] (!%p2509_p11), %vm423_vm0, %v419_v4  ;;  %429 = vst.msk [vmem:[#allocation2 + $0x28] sm:$0xff] (!%p2509_p11), %vm423_vm0, %v420_v5 }
  0x22   : > { %430 = vst.msk [vmem:[#allocation2 + $0x30] sm:$0xff] %vm423_vm0, %v421_v7  ;;  %431 = vst.msk [vmem:[#allocation2 + $0x38] sm:$0xff] %vm423_vm0, %v422_v8 }
  0x23 PF: > { %v2711_v9 = vld [vmem:[%s3863_s1] sm:$0xff]   ;;  %v2712_v10 = vld [vmem:[%s3863_s1 + $0x8] sm:$0xff]   ;;  %vm478_vm2 = vcmask 293888   ;;  %v2713_v13 = vld [vmem:[%s3863_s1 + $0x10] ss:$0 sps:$4 sm:$0x33]  }
  0x24   : > { %2595 = vmatprep.subr.bf16.mxu0 %v2711_v9  ;;  %v3052_v11 = vld [vmem:[#allocation2] sm:$0xff]  ;;  %v3054_v12 = vld [vmem:[#allocation2 + $0x8] sm:$0xff]  ;;  %vm491_vm3 = vcmask 1041408   ;;  %v2716_v23 = vld [vmem:[%s3865_s3 + $0x10] sm:$0xff]   ;;  %s2869_s23 = smov 6   ;;  %v2870_v62 = vmov 0  }
  0x25   : > { %2596 = vmatpush3.bf16.msra.mxu0 %v2711_v9  ;;  %v447_v14 = vpack.c.bf16 %v3054_v12, %v3052_v11  ;;  %v3061_v15 = vld [vmem:[#allocation2 + $0x10] sm:$0xff]  ;;  %v3063_v16 = vld [vmem:[#allocation2 + $0x18] sm:$0xff]  ;;  %v2714_v18 = vld [vmem:[%s3865_s3] sm:$0xff]   ;;  %v493_v20 = vsel %vm491_vm3, %v2713_v13, 0  ;;  %732 = vrot.lane.b32.xlu0 %v3052_v11, %s2869_s23  ;;  %s2871_s16 = smov 30   ;;  %s2872_s12 = smov 98  }
  0x26   : > { %2597 = vmatprep.subr.bf16.mxu0 %v2712_v10  ;;  %v2715_v19 = vld [vmem:[%s3865_s3 + $0x8] sm:$0xff]   ;;  %2609 = vmatprep.subr.bf16.mxu1 %v2714_v18  ;;  %v448_v22 = vpack.c.bf16 %v3063_v16, %v3061_v15  ;;  %v2717_v25 = vld [vmem:[%s3865_s3 + $0x18] sm:$0xff]   ;;  %v2718_v29 = vld [vmem:[%s3865_s3 + $0x20] sm:$0xff]   ;;  %vm900_vm13 = vcmask 48128   ;;  %p2527_p12 = scmp.ne.s32.totalorder %s2962_s21, 1 }
  0x27   : > { %2601 = vmatprep.mubr.msk.bf16.mxu0 %vm478_vm2, %v447_v14  ;;  %2610 = vmatpush3.bf16.msra.mxu1 %v2714_v18  ;;  %v2719_v30 = vld [vmem:[%s3865_s3 + $0x28] sm:$0xff]   ;;  %v2720_v31 = vld [vmem:[%s3865_s3 + $0x30] sm:$0xff]   ;;  %v2721_v32 = vld [vmem:[%s3865_s3 + $0x38] sm:$0xff]  }
  0x28   : > { %2611 = vmatprep.subr.bf16.mxu1 %v2715_v19  ;;  %736 = vrot.lane.b32.xlu1 %v3061_v15, %s2869_s23  ;;  %v2510_v33 = vld [vmem:[%s3864_s2] ss:$0 sm:$0xff] }
  0x29   : > { %v3066_v17 = vld [vmem:[#allocation2 + $0x20] sm:$0xff]  ;;  %2598 = vmatpush3.bf16.msra.mxu0 %v2712_v10  ;;  %v3074_v21 = vld [vmem:[#allocation2 + $0x28] sm:$0xff]  ;;  %v3088_v26 = vld [vmem:[#allocation2 + $0x30] sm:$0xff]  ;;  %734 = vrot.lane.b32.xlu0 %v3054_v12, %s2869_s23 }
  0x2a   : > { %2635 = vmatprep.subr.msk.bf16.mxu0 %vm491_vm3, %v2713_v13  ;;  %v449_v24 = vpack.c.bf16 %v3074_v21, %v3066_v17  ;;  %v3090_v27 = vld [vmem:[#allocation2 + $0x38] sm:$0xff]  ;;  %2710 = vset.pattern.permute.xlu1 %v2870_v62  ;;  %v2518_v63 = vld [vmem:[%s3866_s4] ss:$0 sm:$0xff] }
  0x2b   : > { %2612 = vmatpush3.bf16.msra.mxu1 %v2715_v19  ;;  %v450_v28 = vpack.c.bf16 %v3090_v27, %v3088_v26  ;;  %2709 = vset.pattern.permute.xlu0 %v2870_v62  ;;  %v3136_v18 = vld [vmem:[%s3868_s6] sm:$0xff] }
  0x2c   : > { %2613 = vmatprep.subr.bf16.mxu1 %v2716_v23  ;;  %738 = vrot.lane.b32.xlu1 %v3063_v16, %s2869_s23  ;;  %vm812_vm4 = vcmp.gt.f32.partialorder %v3136_v18, 0.5 }
  0x2d   : > { %2600 = vmatpush3.bf16.msra.mxu0 %v493_v20  ;;  %740 = vrot.lane.b32.xlu0 %v3066_v17, %s2869_s23 }
  0x2f   : > { %2614 = vmatpush3.bf16.msra.mxu1 %v2716_v23  ;;  %v820_v23 = vsel %vm812_vm4, 1, %v2870_v62 }
  0x30   : > { %2602 = vmatmul.mubr.msk.bf16.vlgmr.msra.gmra.mrb[0].mxu0 %vm478_vm2, %v448_v22  ;;  %2615 = vmatprep.subr.bf16.mxu1 %v2717_v25  ;;  %v3145_v22 = vld [vmem:[%s3868_s6 + $0x18] sm:$0xff] }
  0x31   : > { %2605 = vmatprep.mubr.msk.bf16.mxu0 %vm478_vm2, %v449_v24  ;;  %742 = vrot.lane.b32.xlu0 %v3074_v21, %s2869_s23  ;;  %v3152_v24 = vld [vmem:[%s3868_s6 + $0x8] sm:$0xff]  ;;  %vm815_vm5 = vcmp.gt.f32.partialorder %v3145_v22, 0.5 }
  0x32   : > { %vm813_vm6 = vcmp.gt.f32.partialorder %v3152_v24, 0.5 }
  0x33   : > { %2616 = vmatpush3.bf16.msra.mxu1 %v2717_v25  ;;  %v3159_v25 = vld [vmem:[%s3868_s6 + $0x28] sm:$0xff] }
  0x34   : > { %2617 = vmatprep.subr.bf16.mxu1 %v2718_v29  ;;  %vm817_vm7 = vcmp.gt.f32.partialorder %v3159_v25, 0.5 }
  0x37   : > { %2618 = vmatpush3.bf16.msra.mxu1 %v2718_v29  ;;  %v823_v29 = vsel %vm815_vm5, 1, %v2870_v62  ;;  %vm966_vm5 = vcmask 7168  }
  0x38   : > { %2606 = vmatmul.mubr.msk.bf16.gmra.mrb[4].mxu0 %vm478_vm2, %v450_v28  ;;  %2619 = vmatprep.subr.bf16.mxu1 %v2719_v30 }
  0x3b   : > { %2620 = vmatpush3.bf16.msra.mxu1 %v2719_v30  ;;  %v3166_v30 = vld [vmem:[%s3868_s6 + $0x10] sm:$0xff] }
  0x3c   : > { %2621 = vmatprep.subr.bf16.mxu1 %v2720_v31  ;;  %vm814_vm8 = vcmp.gt.f32.partialorder %v3166_v30, 0.5 }
  0x3f   : > { %2622 = vmatpush3.bf16.msra.mxu1 %v2720_v31  ;;  %v821_v31 = vsel %vm813_vm6, 1, %v2870_v62  ;;  %vm993_vm6 = vcmask 0  }
  0x40   : > { %2623 = vmatprep.subr.bf16.mxu1 %v2721_v32 }
  0x43   : > { %2624 = vmatpush3.bf16.msra.mxu1 %v2721_v32  ;;  %v825_v32 = vsel %vm817_vm7, 1, %v2870_v62 }
 0x103   : > { %v2603_v34 = vpop.f32.mrb[0].mxu0 }
 0x104   : > { %v538_v35 = vadd.f32 %v2603_v34, %v2510_v33  ;;  %v529_v36 = vpop.f32.mrb[1].mxu0  ;;  %v822_v34 = vsel %vm814_vm8, 1, %v2870_v62 }
 0x105   : > { %v530_v37 = vadd.f32 %v2510_v33, %v529_v36  ;;  %v2604_v38 = vpop.f32.mrb[2].mxu0 }
 0x106   : > { %v541_v39 = vadd.f32 %v2604_v38, %v2510_v33  ;;  %v532_v40 = vpop.f32.mrb[3].mxu0  ;;  %v562_v42 = vmax.f32 %v538_v35, 0.0  ;;  %v3183_v35 = vld [vmem:[%s3868_s6 + $0x30] sm:$0xff]  ;;  %v733_v38 = vpop.permute.xlu0 %732 }
 0x107   : > { %v533_v41 = vadd.f32 %v2510_v33, %v532_v40  ;;  %v560_v44 = vmax.f32 %v530_v37, 0.0  ;;  %vm818_vm10 = vcmp.gt.f32.partialorder %v3183_v35, 0.5  ;;  %v737_v40 = vpop.permute.xlu1 %736 }
 0x108   : > { %v563_v43 = vmax.f32 %v541_v39, 0.0  ;;  %v826_v37 = vsel %vm818_vm10, 1, %v2870_v62 }
 0x109   : > { %v561_v45 = vmax.f32 %v533_v41, 0.0 }
 0x10a   : > { %v569_v46 = vpack.c.bf16 %v563_v43, %v562_v42  ;;  %v735_v39 = vpop.permute.xlu0 %734  ;;  %v758_v42 = vsub.f32 %v3061_v15, %v737_v40 }
 0x10b   : > { %v568_v47 = vpack.c.bf16 %v561_v45, %v560_v44  ;;  %v2607_v48 = vpop.f32.mrb[4].mxu0  ;;  %v739_v43 = vpop.permute.xlu1 %738  ;;  %v756_v45 = vsub.f32 %v3052_v11, %v733_v38  ;;  %v710_v38 = vld [vmem:[%s3000_s17 + $0x10] sm:$0xff] }
 0x10c   : > { %v554_v49 = vadd.f32 %v2607_v48, %v2510_v33  ;;  %v545_v50 = vpop.f32.mrb[5].mxu0 }
 0x10d   : > { %2625 = vmatprep.mubr.bf16.mxu1 %v568_v47  ;;  %v546_v51 = vadd.f32 %v2510_v33, %v545_v50  ;;  %v2608_v52 = vpop.f32.mrb[6].mxu0  ;;  %v3194_v47 = vld [vmem:[%s3868_s6 + $0x38] sm:$0xff] }
 0x10e   : > { %v566_v53 = vmax.f32 %v554_v49, 0.0  ;;  %2626 = vmatmul.mubr.bf16.vlgmr.msra.gmra.mrb[0].mxu1 %v569_v46  ;;  %v557_v54 = vadd.f32 %v2608_v52, %v2510_v33  ;;  %v548_v55 = vpop.f32.mrb[7].mxu0  ;;  %v741_v41 = vpop.permute.xlu0 %740  ;;  %v766_v46 = vadd.f32 %v758_v42, %v3061_v15  ;;  %v764_v49 = vadd.f32 %v756_v45, %v3052_v11 }
 0x10f   : > { %v564_v56 = vmax.f32 %v546_v51, 0.0  ;;  %v549_v57 = vadd.f32 %v2510_v33, %v548_v55  ;;  %v3176_v33 = vld [vmem:[%s3868_s6 + $0x20] sm:$0xff]  ;;  %vm819_vm11 = vcmp.gt.f32.partialorder %v3194_v47, 0.5  ;;  %v759_v55 = vsub.f32 %v3063_v16, %v739_v43 }
 0x110   : > { %v567_v58 = vmax.f32 %v557_v54, 0.0  ;;  %vm816_vm9 = vcmp.gt.f32.partialorder %v3176_v33, 0.5 }
 0x111   : > { %v565_v59 = vmax.f32 %v549_v57, 0.0  ;;  %v824_v36 = vsel %vm816_vm9, 1, %v2870_v62  ;;  %v827_v57 = vsel %vm819_vm11, 1, %v2870_v62 }
 0x112   : > { %v571_v60 = vpack.c.bf16 %v567_v58, %v566_v53  ;;  %v743_v44 = vpop.permute.xlu0 %742  ;;  %v757_v53 = vsub.f32 %v3054_v12, %v735_v39  ;;  %v760_v58 = vsub.f32 %v3066_v17, %v741_v41  ;;  %v708_v39 = vld [vmem:[%s3000_s17] sm:$0xff] }
 0x113   : > { %v570_v61 = vpack.c.bf16 %v565_v59, %v564_v56 }
 0x115   : > { %2629 = vmatprep.mubr.bf16.mxu1 %v570_v61 }
 0x116   : > { %2630 = vmatmul.mubr.bf16.gmra.mrb[4].mxu1 %v571_v60  ;;  %v765_v60 = vadd.f32 %v757_v53, %v3054_v12  ;;  %v711_v53 = vld [vmem:[%s3000_s17 + $0x18] sm:$0xff] }
 0x1e1   : > { %v2627_v0 = vpop.f32.mrb[0].mxu1 }
 0x1e2   : > { %v686_v1 = vadd.f32 %v2627_v0, %v2518_v63  ;;  %v677_v2 = vpop.f32.mrb[1].mxu1 }
 0x1e3   : > { %v678_v3 = vadd.f32 %v2518_v63, %v677_v2  ;;  %v2628_v4 = vpop.f32.mrb[2].mxu1  ;;  %v761_v2 = vsub.f32 %v3074_v21, %v743_v44 }
 0x1e4   : > { %784 = vrot.lane.b32.xlu1 %v686_v1, %s2871_s16  ;;  %v680_v5 = vpop.f32.mrb[3].mxu1  ;;  %v689_v6 = vadd.f32 %v2628_v4, %v2518_v63 }
 0x1e5   : > { %780 = vrot.lane.b32.xlu0 %v678_v3, %s2871_s16  ;;  %v681_v8 = vadd.f32 %v2518_v63, %v680_v5  ;;  %v768_v3 = vadd.f32 %v760_v58, %v3066_v17 }
 0x1e8   : > { %786 = vrot.lane.b32.xlu1 %v689_v6, %s2871_s16 }
 0x1e9   : > { %744 = vrot.lane.b32.xlu0 %v3088_v26, %s2869_s23  ;;  %v2631_v7 = vpop.f32.mrb[4].mxu1 }
 0x1ea   : > { %v693_v9 = vpop.f32.mrb[5].mxu1  ;;  %v702_v19 = vadd.f32 %v2631_v7, %v2518_v63 }
 0x1eb   : > { %v2632_v10 = vpop.f32.mrb[6].mxu1  ;;  %v694_v13 = vadd.f32 %v2518_v63, %v693_v9 }
 0x1ec   : > { %782 = vrot.lane.b32.xlu1 %v681_v8, %s2871_s16  ;;  %v696_v14 = vpop.f32.mrb[7].mxu1  ;;  %v705_v28 = vadd.f32 %v2632_v10, %v2518_v63  ;;  %v769_v10 = vadd.f32 %v761_v2, %v3074_v21 }
 0x1ed   : > { %746 = vrot.lane.b32.xlu0 %v3090_v27, %s2869_s23  ;;  %v697_v20 = vadd.f32 %v2518_v63, %v696_v14  ;;  %v767_v63 = vadd.f32 %v759_v55, %v3063_v16 }
 0x1f0   : > { %788 = vrot.lane.b32.xlu1 %v694_v13, %s2871_s16 }
 0x1f1   : > { %792 = vrot.lane.b32.xlu0 %v702_v19, %s2871_s16 }
 0x1f4   : > { %790 = vrot.lane.b32.xlu1 %v697_v20, %s2871_s16 }
 0x1f5   : > { %829 = vperm.xlu0 %2709, %v820_v23  }
 0x1f8   : > { %794 = vrot.lane.b32.xlu1 %v705_v28, %s2871_s16 }
 0x1f9   : > { %838 = vperm.xlu0 %2709, %v823_v29  }
 0x1fc   : > { %832 = vperm.xlu1 %2710, %v821_v31  }
 0x1fd   : > { %844 = vperm.xlu0 %2709, %v825_v32  }
 0x200   : > { %835 = vperm.xlu1 %2710, %v822_v34  }
 0x204   : > { %841 = vperm.xlu1 %2710, %v824_v36  }
 0x208   : > { %847 = vperm.xlu1 %2710, %v826_v37  }
 0x256   : > { %v785_v48 = vpop.permute.xlu1 %784 }
 0x257   : > { %v806_v50 = vadd.f32 %v785_v48, %v766_v46  ;;  %v781_v51 = vpop.permute.xlu0 %780  ;;  %v709_v46 = vld [vmem:[%s3000_s17 + $0x8] sm:$0xff] }
 0x258   : > { %v804_v52 = vadd.f32 %v781_v51, %v764_v49 }
 0x259   : > { %872 = vrot.lane.b32.xlu0 %v806_v50, %s2872_s12 }
 0x25a   : > { %v787_v54 = vpop.permute.xlu1 %786  ;;  %868 = vrot.lane.b32.xlu1 %v804_v52, %s2872_s12 }
 0x25b   : > { %v745_v56 = vpop.permute.xlu0 %744  ;;  %v807_v5 = vadd.f32 %v787_v54, %v767_v63 }
 0x25c   : > { %v762_v59 = vsub.f32 %v3088_v26, %v745_v56 }
 0x25e   : > { %v783_v61 = vpop.permute.xlu1 %782  ;;  %850 = vperm.xlu1 %2710, %v827_v57   ;;  %v770_v62 = vadd.f32 %v762_v59, %v3088_v26  ;;  %v713_v59 = vld [vmem:[%s3000_s17 + $0x28] sm:$0xff] }
 0x25f   : > { %v805_v0 = vadd.f32 %v783_v61, %v765_v60  ;;  %v747_v1 = vpop.permute.xlu0 %746 }
 0x260   : > { %v763_v6 = vsub.f32 %v3090_v27, %v747_v1 }
 0x261   : > { %870 = vrot.lane.b32.xlu0 %v805_v0, %s2872_s12 }
 0x262   : > { %v789_v4 = vpop.permute.xlu1 %788  ;;  %v771_v19 = vadd.f32 %v763_v6, %v3090_v27  ;;  %v712_v6 = vld [vmem:[%s3000_s17 + $0x20] sm:$0xff] }
 0x263   : > { %v808_v7 = vadd.f32 %v789_v4, %v768_v3  ;;  %v793_v8 = vpop.permute.xlu0 %792  ;;  %v715_v4 = vld [vmem:[%s3000_s17 + $0x38] sm:$0xff] }
 0x264   : > { %v810_v9 = vadd.f32 %v793_v8, %v770_v62 }
 0x265   : > { %874 = vrot.lane.b32.xlu0 %v807_v5, %s2872_s12  ;;  %876 = vrot.lane.b32.xlu1 %v808_v7, %s2872_s12 }
 0x266   : > { %v791_v13 = vpop.permute.xlu1 %790 }
 0x267   : > { %v809_v14 = vadd.f32 %v791_v13, %v769_v10 }
 0x269   : > { %878 = vrot.lane.b32.xlu0 %v809_v14, %s2872_s12  ;;  %880 = vrot.lane.b32.xlu1 %v810_v9, %s2872_s12 }
 0x26a   : > { %v795_v20 = vpop.permute.xlu1 %794 }
 0x26b   : > { %v811_v23 = vadd.f32 %v795_v20, %v771_v19  ;;  %v714_v20 = vld [vmem:[%s3000_s17 + $0x30] sm:$0xff] }
 0x26d   : > { %882 = vrot.lane.b32.xlu0 %v811_v23, %s2872_s12 }
 0x274   : > { %v830_v29 = vpop.permute.xlu0 %829 }
 0x275   : > { %vm852_vm14 = vcmp.eq.s32.totalorder %v830_v29, 1 }
 0x278   : > { %v839_v32 = vpop.permute.xlu0 %838 }
 0x279   : > { %vm855_vm0 = vcmp.eq.s32.totalorder %v839_v32, 1 }
 0x27b   : > { %v833_v28 = vpop.permute.xlu1 %832 }
 0x27c   : > { %v845_v36 = vpop.permute.xlu0 %844  ;;  %vm853_vm15 = vcmp.eq.s32.totalorder %v833_v28, 1 }
 0x27d   : > { %vm857_vm1 = vcmp.eq.s32.totalorder %v845_v36, 1 }
 0x27f   : > { %v836_v31 = vpop.permute.xlu1 %835 }
 0x280   : > { %vm854_vm12 = vcmp.eq.s32.totalorder %v836_v31, 1 }
 0x283   : > { %v842_v34 = vpop.permute.xlu1 %841 }
 0x284   : > { %vm856_vm3 = vcmp.eq.s32.totalorder %v842_v34, 1 }
 0x287   : > { %v3219_v37 = vpop.permute.xlu1 %847 }
 0x288   : > { %vm858_vm4 = vcmp.eq.s32.totalorder %v3219_v37, 1  ;;  %v950_v37 = vsub.f32 1.0, %v3152_v24 }
 0x2cb   : > { %v873_v40 = vpop.permute.xlu0 %872 }
 0x2cc   : > { %v3223_v41 = vsel %vm854_vm12, %v710_v38, %v873_v40  ;;  %v869_v42 = vpop.permute.xlu1 %868 }
 0x2cd   : > { %903 = vst.msk [vmem:[%s3010_s18 + $0x10] sm:$0xff] %vm900_vm13, %v3223_v41  ;;  %v3228_v43 = vsel %vm852_vm14, %v708_v39, %v869_v42  ;;  %v911_v51 = vsub.f32 %v3223_v41, %v710_v38 }
 0x2ce   : > { %901 = vst.msk [vmem:[%s3010_s18] sm:$0xff] %vm900_vm13, %v3228_v43  ;;  %v909_v44 = vsub.f32 %v3228_v43, %v708_v39 }
 0x2cf   : > { %v919_v60 = vmul.f32 %v911_v51, %v911_v51 }
 0x2d0   : > { %v917_v45 = vmul.f32 %v909_v44, %v909_v44  ;;  %v949_v44 = vsub.f32 1.0, %v3136_v18  ;;  %v954_v18 = vsub.f32 1.0, %v3159_v25 }
 0x2d1   : > { %v931_v3 = vsel %vm900_vm13, %v919_v60, 0.0 }
 0x2d2   : > { %v925_v48 = vsel %vm900_vm13, %v917_v45, 0.0  ;;  %v951_v45 = vsub.f32 1.0, %v3166_v30  ;;  %v953_v30 = vsub.f32 1.0, %v3176_v33 }
 0x2d3   : > { %926 = vadd.xlane.f32.xlu1 %v925_v48  ;;  %v871_v49 = vpop.permute.xlu0 %870 }
 0x2d4   : > { %v3236_v50 = vsel %vm853_vm15, %v709_v46, %v871_v49 }
 0x2d5   : > { %902 = vst.msk [vmem:[%s3010_s18 + $0x8] sm:$0xff] %vm900_vm13, %v3236_v50  ;;  %v910_v52 = vsub.f32 %v3236_v50, %v709_v46 }
 0x2d7   : > { %v875_v54 = vpop.permute.xlu0 %874  ;;  %v918_v55 = vmul.f32 %v910_v52, %v910_v52 }
 0x2d8   : > { %v3244_v56 = vsel %vm855_vm0, %v711_v53, %v875_v54  ;;  %v952_v54 = vsub.f32 1.0, %v3145_v22  ;;  %v955_v22 = vsub.f32 1.0, %v3183_v35 }
 0x2d9   : > { %904 = vst.msk [vmem:[%s3010_s18 + $0x18] sm:$0xff] %vm900_vm13, %v3244_v56  ;;  %v912_v57 = vsub.f32 %v3244_v56, %v711_v53  ;;  %v928_v58 = vsel %vm900_vm13, %v918_v55, 0.0 }
 0x2da   : > { %929 = vadd.xlane.f32.xlu0 %v928_v58 }
 0x2db   : > { %v879_v61 = vpop.permute.xlu0 %878  ;;  %v920_v63 = vmul.f32 %v912_v57, %v912_v57 }
 0x2dc   : > { %v3252_v0 = vsel %vm857_vm1, %v713_v59, %v879_v61  ;;  %v956_v61 = vsub.f32 1.0, %v3194_v47 }
 0x2dd   : > { %906 = vst.msk [vmem:[%s3010_s18 + $0x28] sm:$0xff] %vm900_vm13, %v3252_v0  ;;  %v914_v1 = vsub.f32 %v3252_v0, %v713_v59  ;;  %v851_v2 = vpop.permute.xlu1 %850  ;;  %v934_v62 = vsel %vm900_vm13, %v920_v63, 0.0 }
 0x2de   : > { %vm859_vm2 = vcmp.eq.s32.totalorder %v851_v2, 1  ;;  %932 = vadd.xlane.f32.xlu0 %v931_v3  ;;  %935 = vadd.xlane.f32.xlu1 %v934_v62 }
 0x2df   : > { %v883_v5 = vpop.permute.xlu0 %882  ;;  %v922_v7 = vmul.f32 %v914_v1, %v914_v1 }
 0x2e0   : > { %v3262_v8 = vsel %vm859_vm2, %v715_v4, %v883_v5 }
 0x2e1   : > { %3886 = vst [vmem:[#allocation17_spill] sm:$0xff] %v3262_v8  ;;  %908 = vst.msk [vmem:[%s3010_s18 + $0x38] sm:$0xff] %vm900_vm13, %v3262_v8  ;;  %v916_v9 = vsub.f32 %v3262_v8, %v715_v4  ;;  %v877_v10 = vpop.permute.xlu1 %876  ;;  %v940_v13 = vsel %vm900_vm13, %v922_v7, 0.0 }
 0x2e2   : > { %v3269_v14 = vsel %vm856_vm3, %v712_v6, %v877_v10  ;;  %941 = vadd.xlane.f32.xlu1 %v940_v13 }
 0x2e3   : > { %905 = vst.msk [vmem:[%s3010_s18 + $0x20] sm:$0xff] %vm900_vm13, %v3269_v14  ;;  %v913_v19 = vsub.f32 %v3269_v14, %v712_v6  ;;  %v924_v23 = vmul.f32 %v916_v9, %v916_v9 }
 0x2e5   : > { %v881_v28 = vpop.permute.xlu1 %880  ;;  %v946_v29 = vsel %vm900_vm13, %v924_v23, 0.0  ;;  %v921_v31 = vmul.f32 %v913_v19, %v913_v19 }
 0x2e6   : > { %v3278_v32 = vsel %vm858_vm4, %v714_v20, %v881_v28  ;;  %947 = vadd.xlane.f32.xlu1 %v946_v29 }
 0x2e7   : > { %907 = vst.msk [vmem:[%s3010_s18 + $0x30] sm:$0xff] %vm900_vm13, %v3278_v32  ;;  %v915_v34 = vsub.f32 %v3278_v32, %v714_v20  ;;  %v937_v36 = vsel %vm900_vm13, %v921_v31, 0.0 }
 0x2e8   : > { %938 = vadd.xlane.f32.xlu0 %v937_v36 }
 0x2e9   : > { %v923_v38 = vmul.f32 %v915_v34, %v915_v34 }
 0x2eb   : > { %v943_v39 = vsel %vm900_vm13, %v923_v38, 0.0  ;;  %v957_v38 = vld [vmem:[#allocation5] sm:$0x1] }
 0x2ec   : > { %944 = vadd.xlane.f32.xlu0 %v943_v39 }
 0x360   : > { %v927_v40 = vpop.xlane.xlu1 %926 }
 0x361   : > { %v958_v51 = vmul.f32 %v949_v44, %v927_v40  ;;  %v1000_v40 = vld [vmem:[%s3868_s6] sm:$0xff] (!%p2527_p12)  ;;  %v1002_v44 = vld [vmem:[%s3868_s6 + $0x10] sm:$0xff] (!%p2527_p12) }
 0x363   : > { %v967_v55 = vsel %vm966_vm5, %v958_v51, 0.0  ;;  %v1010_v51 = vsub.f32 (!%p2527_p12), 1.0, %v1002_v44 }
 0x367   : > { %v930_v42 = vpop.xlane.xlu0 %929 }
 0x368   : > { %v959_v46 = vmul.f32 %v950_v37, %v930_v42  ;;  %v1001_v42 = vld [vmem:[%s3868_s6 + $0x8] sm:$0xff] (!%p2527_p12) }
 0x36a   : > { %v968_v53 = vsel %vm966_vm5, %v959_v46, 0.0  ;;  %v1004_v46 = vld [vmem:[%s3868_s6 + $0x20] sm:$0xff] (!%p2527_p12) }
 0x36b   : > { %v936_v48 = vpop.xlane.xlu1 %935  ;;  %v933_v49 = vpop.xlane.xlu0 %932  ;;  %v969_v57 = vadd.f32 %v968_v53, %v967_v55 }
 0x36c   : > { %v960_v52 = vmul.f32 %v951_v45, %v933_v49  ;;  %v961_v59 = vmul.f32 %v952_v54, %v936_v48  ;;  %v1003_v45 = vld [vmem:[%s3868_s6 + $0x18] sm:$0xff] (!%p2527_p12)  ;;  %v1008_v48 = vsub.f32 (!%p2527_p12), 1.0, %v1000_v40  ;;  %v1009_v49 = vsub.f32 (!%p2527_p12), 1.0, %v1001_v42 }
 0x36d   : > { %v1011_v53 = vsub.f32 (!%p2527_p12), 1.0, %v1003_v45  ;;  %v1012_v54 = vsub.f32 (!%p2527_p12), 1.0, %v1004_v46 }
 0x36e   : > { %v970_v24 = vsel %vm966_vm5, %v960_v52, 0.0  ;;  %v972_v1 = vsel %vm966_vm5, %v961_v59, 0.0  ;;  %v1005_v52 = vld [vmem:[%s3868_s6 + $0x28] sm:$0xff] (!%p2527_p12)  ;;  %v1016_v55 = vsel (!%p2527_p12), %vm966_vm5, %v1008_v48, 0.0  ;;  %v1019_v59 = vsel (!%p2527_p12), %vm966_vm5, %v1010_v51, 0.0 }
 0x36f   : > { %v942_v58 = vpop.xlane.xlu1 %941  ;;  %v971_v60 = vadd.f32 %v970_v24, %v969_v57  ;;  %v1017_v24 = vsel (!%p2527_p12), %vm966_vm5, %v1009_v49, 0.0  ;;  %v1006_v57 = vld [vmem:[%s3868_s6 + $0x30] sm:$0xff] (!%p2527_p12) }
 0x370   : > { %v963_v2 = vmul.f32 %v954_v18, %v942_v58  ;;  %v1018_v58 = vadd.f32 (!%p2527_p12), %v1017_v24, %v1016_v55  ;;  %v1013_v18 = vsub.f32 (!%p2527_p12), 1.0, %v1005_v52 }
 0x371   : > { %v973_v4 = vadd.f32 %v972_v1, %v971_v60  ;;  %v1007_v60 = vld [vmem:[%s3868_s6 + $0x38] sm:$0xff] (!%p2527_p12)  ;;  %v1023_v1 = vsel (!%p2527_p12), %vm966_vm5, %v1012_v54, 0.0 }
 0x372   : > { %v976_v25 = vsel %vm966_vm5, %v963_v2, 0.0 }
 0x373   : > { %v948_v62 = vpop.xlane.xlu1 %947 }
 0x374   : > { %v965_v9 = vmul.f32 %v956_v61, %v948_v62  ;;  %v1020_v61 = vadd.f32 (!%p2527_p12), %v1019_v59, %v1018_v58 }
 0x375   : > { %v939_v63 = vpop.xlane.xlu0 %938 }
 0x376   : > { %v962_v3 = vmul.f32 %v953_v30, %v939_v63  ;;  %v980_v19 = vsel %vm966_vm5, %v965_v9, 0.0  ;;  %v1021_v30 = vsel (!%p2527_p12), %vm966_vm5, %v1011_v53, 0.0  ;;  %v1014_v63 = vsub.f32 (!%p2527_p12), 1.0, %v1006_v57 }
 0x377   : > { %v1022_v2 = vadd.f32 (!%p2527_p12), %v1021_v30, %v1020_v61 }
 0x378   : > { %v974_v5 = vsel %vm966_vm5, %v962_v3, 0.0  ;;  %v1015_v3 = vsub.f32 (!%p2527_p12), 1.0, %v1007_v60 }
 0x379   : > { %v975_v6 = vadd.f32 %v974_v5, %v973_v4  ;;  %v945_v7 = vpop.xlane.xlu0 %944  ;;  %v1024_v62 = vadd.f32 (!%p2527_p12), %v1023_v1, %v1022_v2  ;;  %v1027_v4 = vsel (!%p2527_p12), %vm966_vm5, %v1014_v63, 0.0 }
 0x37a   : > { %v964_v33 = vmul.f32 %v955_v22, %v945_v7  ;;  %v1025_v22 = vsel (!%p2527_p12), %vm966_vm5, %v1013_v18, 0.0 }
 0x37b   : > { %v977_v10 = vadd.f32 %v976_v25, %v975_v6  ;;  %v1026_v5 = vadd.f32 (!%p2527_p12), %v1025_v22, %v1024_v62  ;;  %v1029_v6 = vsel (!%p2527_p12), %vm966_vm5, %v1015_v3, 0.0 }
 0x37c   : > { %v978_v47 = vsel %vm966_vm5, %v964_v33, 0.0 }
 0x37d   : > { %v979_v13 = vadd.f32 %v978_v47, %v977_v10  ;;  %v1028_v7 = vadd.f32 (!%p2527_p12), %v1027_v4, %v1026_v5 }
 0x37f   : > { %v981_v20 = vadd.f32 %v980_v19, %v979_v13  ;;  %v1030_v25 = vadd.f32 (!%p2527_p12), %v1029_v6, %v1028_v7 }
 0x381   : > { %982 = vadd.xlane.f32.xlu0 %v981_v20 }
 0x385   : > { %1031 = vadd.xlane.f32.xlu0 (!%p2527_p12), %v1030_v25 }
 0x40e   : > { %v983_v23 = vpop.xlane.xlu0 %982 }
 0x40f   : > { %v984_v35 = vrot.slane %v983_v23, 4 }
 0x411   : > { %v985_v28 = vadd.f32 %v984_v35, %v983_v23 }
 0x412   : > { %v1032_v9 = vpop.xlane.xlu0 (!%p2527_p12), %1031 }
 0x413   : > { %v986_v29 = vrot.slane %v985_v28, 2  ;;  %v1033_v33 = vrot.slane (!%p2527_p12), %v1032_v9, 4 }
 0x415   : > { %v987_v31 = vadd.f32 %v986_v29, %v985_v28  ;;  %v1034_v10 = vadd.f32 (!%p2527_p12), %v1033_v33, %v1032_v9 }
 0x417   : > { %v988_v34 = vrot.slane %v987_v31, 1  ;;  %v1035_v47 = vrot.slane (!%p2527_p12), %v1034_v10, 2 }
 0x419   : > { %v989_v36 = vadd.f32 %v988_v34, %v987_v31  ;;  %v1036_v13 = vadd.f32 (!%p2527_p12), %v1035_v47, %v1034_v10 }
 0x41b   : > { %2636 = vpush %v989_v36  ;;  %v1037_v19 = vrot.slane (!%p2527_p12), %v1036_v13, 1 }
 0x41d   : > { %v1038_v20 = vadd.f32 (!%p2527_p12), %v1037_v19, %v1036_v13 }
 0x41f   : > { %2638 = vpush (!%p2527_p12), %v1038_v20 }
 0x44a   : > { %998 = sbr.rel (%p2527_p12) target bundleno = 1120 (0x460), region = 60 }
 0x44c   : > { %s2637_s18 = spop %2636 }
 0x44d   : > { %v991_v39 = vstv %s2637_s18 }
 0x44e   : > { %v992_v37 = vadd.f32 %v991_v39, %v957_v38 }
 0x450   : > { %994 = vst.msk [vmem:[#allocation5] sm:$0x1] %vm993_vm6, %v992_v37  ;;  %s2639_s26 = spop (!%p2527_p12), %2638 }
 0x451   : > { %v1040_v23 = vstv %s2639_s26 }
 0x452   : > { %2722 = vrcp.f32 %v1040_v23 }
 0x457   : > { %v999_v35 = vld [vmem:[#allocation5] sm:$0x1] }
 0x45c   : > { %v2723_v28 = vpop.eup %2722 }
 0x45d   : > { %v1042_v29 = vmul.f32 %v2723_v28, %v999_v35 }
 0x45f   : > { %1043 = vst.msk [vmem:[#allocation5] sm:$0x1] %vm993_vm6, %v1042_v29 }
 0x460 PF: > { %v3338_v31 = vmul.f32 0.0, %v3228_v43  ;;  %s2873_s13 = smov 126   ;;  %s2874_s25 = smov 127   ;;  %v3343_v34 = vmul.f32 0.0, %v3236_v50  ;;  %v1143_v36 = vmul.f32 -1.0, %v3236_v50  ;;  %v1142_v38 = vmul.f32 -1.0, %v3228_v43 }
 0x461   : > { %v2875_v39 = vmov 3   ;;  %v1212_v37 = vlaneseq  ;;  %v1394_v40 = vld [vmem:[%s3005_s22] sm:$0x3]  ;;  %v2876_v48 = vmov 1.0   ;;  %s2879_s22 = smov 122   ;;  %s2340_s23 = sand.u32 1, %s2962_s21  }
 0x462   : > { %1130 = vrot.lane.b32.xlu1 %v3338_v31, %s2873_s13  ;;  %1122 = vrot.lane.b32.xlu0 %v3338_v31, %s2874_s25  ;;  %vm1395_vm7 = vcmp.eq.f32.partialorder %v1394_v40, 0.0  ;;  %s2575_s12 = sshll.u32 %s2962_s21, 5  ;;  %s2369_s14 = sshll.u32 %s393_s29, 4  ;;  %s3760_s14 = int_to_ptr.vmem [resolvable:$true] %s2369_s14 }
 0x463   : > { %2725 = vset.pattern.permute.xlu1 %v2875_v39  ;;  %2724 = vset.pattern.permute.xlu0 %v2875_v39  ;;  %v1213_v42 = vand.u32 127, %v1212_v37  ;;  %vm3352_vm8 = vcmp.lt.s32.totalorder %v1212_v37, 256  ;;  %v1396_v45 = vsel %vm1395_vm7, -100.0, %v1394_v40  ;;  %v1326_v61 = vshrl.u32 %v1212_v37, 7  ;;  %s3756_s15 = scalar_lea.hbm %s3872_s10, %s2575_s12  ;;  %s2341_s19 = scalar_lea.sflag [#allocation8], %s2340_s23 }
 0x464   : > { %v1397_v46 = vmul.f32 -1.0, %v1396_v45  ;;  %1514 = vst.msk [vmem:[#allocation3 + $0x3] ss:$8 sm:$0x3] %vm3352_vm8, %v2876_v48  ;;  %s2744_s26 = scalar_lea.vmem %s3760_s14, 32 }
 0x465   : > { %1647 = vst.msk [vmem:[#allocation4 + $0x4] ss:$8 sm:$0x3] %vm3352_vm8, %v2876_v48  ;;  %v1214_v49 = vadd.s32 128, %v1213_v42  ;;  %v1215_v51 = vcvt.s32.f32 %v1213_v42  ;;  %v1405_v9 = vsub.s32 0, %v1326_v61  ;;  %v1409_v19 = vsub.s32 1, %v1326_v61  ;;  %p2745_p13 = scmp.ne.s32.totalorder %s3760_s14, %s2744_s26 }
 0x466   : > { %1132 = vrot.lane.b32.xlu1 %v3343_v34, %s2873_s13  ;;  %1124 = vrot.lane.b32.xlu0 %v3343_v34, %s2874_s25  ;;  %2726 = vrcp.f32 %v1397_v46  ;;  %v1398_v63 = vadd.f32 -0.1, %v1397_v46 }
 0x467   : > { %v1216_v52 = vcvt.s32.f32 %v1214_v49  ;;  %v1217_v53 = vmul.f32 0.0625, %v1215_v51  ;;  %p2746_p0 = pnand %p2745_p13, %p2982_p5 }
 0x469   : > { %v1218_v54 = vmul.f32 0.0625, %v1216_v52  ;;  %v1219_v55 = vfloor.f32 %v1217_v53  ;;  %p2747_p1 = pneg %p2746_p0 }
 0x46a   : > { %1148 = vrot.lane.b32.xlu1 %v1143_v36, %s2873_s13  ;;  %1146 = vrot.lane.b32.xlu0 %v1142_v38, %s2873_s13  ;;  %s2881_s13 = smov [#allocation7]  }
 0x46b   : > { %v1220_v24 = vfloor.f32 %v1218_v54  ;;  %v1221_v57 = vmul.f32 16.0, %v1219_v55  ;;  %v1231_v58 = vsub.f32 15.0, %v1219_v55  ;;  %s2748_s30 = sshll.u32 %s2881_s13, 4  ;;  %s2749_s30 = int_to_ptr.vmem [resolvable:$false] %s2748_s30 }
 0x46c   : > { %p2751_p3 = scmp.lt.s32.totalorder %s3760_s14, %s2749_s30 }
 0x46d   : > { %v1222_v59 = vmul.f32 16.0, %v1220_v24  ;;  %v1223_v18 = vsub.f32 %v1215_v51, %v1221_v57  ;;  %v1232_v30 = vsub.f32 15.0, %v1220_v24  ;;  %v1233_v60 = vadd.f32 0.5, %v1231_v58 }
 0x46e   : > { %1158 = vrot.lane.b32.xlu1 %v3236_v50, %s2874_s25  ;;  %1156 = vrot.lane.b32.xlu0 %v3228_v43, %s2874_s25 }
 0x46f   : > { %v1224_v1 = vsub.f32 %v1216_v52, %v1222_v59  ;;  %v1225_v2 = vadd.f32 0.5, %v1223_v18  ;;  %v1234_v3 = vadd.f32 0.5, %v1232_v30  ;;  %v1235_v22 = vmul.f32 0.125, %v1233_v60 }
 0x470   : > { %v2727_v62 = vpop.eup %2726  ;;  %v2877_v59 = vmov 1966171168  }
 0x471   : > { %v1226_v4 = vadd.f32 0.5, %v1224_v1  ;;  %v1227_v5 = vmul.f32 0.125, %v1225_v2  ;;  %v1236_v6 = vmul.f32 0.125, %v1234_v3  ;;  %v3360_v7 = vadd.f32 -1.0, %v1235_v22 }
 0x472   : > { %v1400_v25 = vmul.f32 %v2727_v62, %v1398_v63  ;;  %v1323_v18 = vunpack.c.l.s4 %v2877_v59 }
 0x473   : > { %v1228_v33 = vmul.f32 0.125, %v1226_v4  ;;  %v3362_v10 = vadd.f32 -1.0, %v1227_v5  ;;  %v3364_v47 = vadd.f32 -1.0, %v1236_v6  ;;  %v1352_v13 = vmul.f32 0.0, %v3360_v7 }
 0x474   : > { %v1425_v20 = vmul.f32 -1.0, %v1400_v25  ;;  %v1401_v40 = vmul.f32 -0.0, %v1400_v25  ;;  %v1364_v49 = vmul.f32 0.57735026, %v3360_v7  ;;  %v1324_v22 = vunpack.c.0.s8 %v1323_v18 }
 0x475   : > { %v3367_v23 = vadd.f32 -1.0, %v1228_v33  ;;  %v1353_v35 = vmul.f32 0.0, %v3364_v47  ;;  %v1362_v28 = vmul.f32 0.0, %v3362_v10  ;;  %v1350_v48 = vmul.f32 0.57735026, %v3362_v10 }
 0x476   : > { %v1430_v29 = vrot.slane %v1425_v20, %v1405_v9  ;;  %v1434_v39 = vrot.slane %v1425_v20, %v1409_v19  ;;  %v1406_v51 = vrot.slane %v1401_v40, %v1405_v9  ;;  %v1365_v54 = vmul.f32 0.57735026, %v3364_v47 }
 0x477   : > { %v1363_v36 = vmul.f32 0.0, %v3367_v23  ;;  %v3372_v38 = vadd.f32 %v1362_v28, %v1352_v13  ;;  %v1351_v53 = vmul.f32 0.57735026, %v3367_v23  ;;  %v1410_v55 = vrot.slane %v1401_v40, %v1409_v19 }
 0x478   : > { %v3382_v24 = vadd.f32 %v1352_v13, %v1350_v48  ;;  %v3384_v57 = vadd.f32 %v1364_v49, %v1362_v28  ;;  %v3396_v19 = vsub.s32 %v1324_v22, %v1326_v61 }
 0x479   : > { %v3374_v37 = vadd.f32 %v1363_v36, %v1353_v35  ;;  %v1437_v42 = vadd.f32 %v1430_v29, %v3372_v38  ;;  %v1421_v58 = vadd.f32 %v1406_v51, %v3372_v38  ;;  %v3387_v30 = vadd.f32 %v1353_v35, %v1351_v53 }
 0x47a   : > { %v3389_v60 = vadd.f32 %v1365_v54, %v1363_v36  ;;  %v1413_v1 = vadd.f32 %v1406_v51, %v3382_v24  ;;  %v1417_v2 = vadd.f32 %v1406_v51, %v3384_v57 }
 0x47b   : > { %v1438_v45 = vadd.f32 %v1434_v39, %v3374_v37  ;;  %v1439_v46 = vadd.f32 10.0, %v1437_v42  ;;  %v1422_v63 = vadd.f32 %v1410_v55, %v3374_v37  ;;  %v1423_v3 = vadd.f32 -10.0, %v1421_v58 }
 0x47c   : > { %v1414_v62 = vadd.f32 %v1410_v55, %v3387_v30  ;;  %v1418_v4 = vadd.f32 %v1410_v55, %v3389_v60 }
 0x47d   : > { %v1440_v52 = vadd.f32 10.0, %v1438_v45  ;;  %2728 = vrcp.f32 %v1439_v46  ;;  %v1424_v5 = vadd.f32 -10.0, %v1422_v63 }
 0x47f   : > { %2730 = vrcp.f32 %v1440_v52 }
 0x487   : > { %v2729_v6 = vpop.eup %2728 }
 0x488   : > { %v1445_v9 = vmul.f32 %v2729_v6, %v1413_v1  ;;  %v1447_v33 = vmul.f32 %v2729_v6, %v1417_v2  ;;  %v1449_v13 = vmul.f32 %v2729_v6, %v1423_v3 }
 0x489   : > { %v2731_v25 = vpop.eup %2730 }
 0x48a   : > { %v1446_v20 = vmul.f32 %v2731_v25, %v1414_v62  ;;  %v1448_v35 = vmul.f32 %v2731_v25, %v1418_v4  ;;  %v1450_v28 = vmul.f32 %v2731_v25, %v1424_v5  ;;  %v1516_v29 = vmul.f32 %v1445_v9, %v1445_v9 }
 0x48b   : > { %v1518_v36 = vmul.f32 %v1447_v33, %v1447_v33  ;;  %v1522_v39 = vmul.f32 %v1449_v13, %v1449_v13 }
 0x48c   : > { %v1453_v40 = vcombine.low %v1445_v9, %v1446_v20  ;;  %v1473_v42 = vcombine.low %v1447_v33, %v1448_v35  ;;  %v1494_v45 = vcombine.low %v1449_v13, %v1450_v28  ;;  %v1517_v46 = vmul.f32 %v1446_v20, %v1446_v20 }
 0x48d   : > { %v1519_v48 = vmul.f32 %v1448_v35, %v1448_v35  ;;  %v1520_v49 = vadd.f32 %v1518_v36, %v1516_v29  ;;  %v1523_v51 = vmul.f32 %v1450_v28, %v1450_v28 }
 0x48e   : > { %v1460_v52 = vrot.slane %v1453_v40, %v3396_v19  ;;  %v1480_v53 = vrot.slane %v1473_v42, %v3396_v19  ;;  %v1501_v61 = vrot.slane %v1494_v45, %v3396_v19 }
 0x48f   : > { %v1521_v54 = vadd.f32 %v1519_v48, %v1517_v46  ;;  %v1524_v55 = vadd.f32 %v1522_v39, %v1520_v49 }
 0x490   : > { %v1467_v58 = vrot.slane %v1460_v52, %v3396_v19  ;;  %v1487_v59 = vrot.slane %v1480_v53, %v3396_v19  ;;  %v1508_v18 = vrot.slane %v1501_v61, %v3396_v19 }
 0x491   : > { %v1525_v63 = vadd.f32 %v1523_v51, %v1521_v54 }
 0x492   : > { %1469 = vst.msk [vmem:[#allocation3] ss:$8 sm:$0x3] %vm3352_vm8, %v1467_v58  ;;  %1490 = vst.msk [vmem:[#allocation3 + $0x1] ss:$8 sm:$0x3] %vm3352_vm8, %v1487_v59 }
 0x493   : > { %1511 = vst.msk [vmem:[#allocation3 + $0x2] ss:$8 sm:$0x3] %vm3352_vm8, %v1508_v18  ;;  %v1528_v1 = vcombine.low %v1524_v55, %v1525_v63 }
 0x495   : > { %v1535_v2 = vrot.slane %v1528_v1, %v3396_v19 }
 0x497   : > { %v1542_v3 = vrot.slane %v1535_v2, %v3396_v19 }
 0x499   : > { %1545 = vst.msk [vmem:[#allocation3 + $0x4] ss:$8 sm:$0x3] %vm3352_vm8, %v1542_v3 }
 0x4d4   : > { %v1131_v22 = vpop.permute.xlu1 %1130  ;;  %v1123_v62 = vpop.permute.xlu0 %1122 }
 0x4d5   : > { %v1128_v6 = vadd.f32 %v1123_v62, %v3228_v43  ;;  %v1140_v9 = vadd.f32 %v1123_v62, %v3338_v31 }
 0x4d7   : > { %v1136_v35 = vadd.f32 %v1131_v22, %v1128_v6  ;;  %v1168_v48 = vadd.f32 %v1140_v9, %v1131_v22 }
 0x4d8   : > { %v1133_v4 = vpop.permute.xlu1 %1132  ;;  %v1125_v5 = vpop.permute.xlu0 %1124 }
 0x4d9   : > { %v1129_v25 = vadd.f32 %v1125_v5, %v3236_v50  ;;  %v1141_v33 = vadd.f32 %v1125_v5, %v3343_v34  ;;  %v1138_v46 = vadd.f32 -0.5, %v1136_v35  ;;  %v1170_v59 = vadd.f32 1.0, %v1168_v48 }
 0x4db   : > { %v1137_v36 = vadd.f32 %v1133_v4, %v1129_v25  ;;  %v1169_v51 = vadd.f32 %v1141_v33, %v1133_v4  ;;  %v1186_v18 = vmul.f32 0.0, %v1138_v46 }
 0x4dc   : > { %v1149_v13 = vpop.permute.xlu1 %1148  ;;  %v1147_v20 = vpop.permute.xlu0 %1146 }
 0x4dd   : > { %v1153_v28 = vadd.f32 %v1149_v13, %v1141_v33  ;;  %v1152_v29 = vadd.f32 %v1147_v20, %v1140_v9  ;;  %v1139_v49 = vadd.f32 -0.5, %v1137_v36  ;;  %v1171_v63 = vadd.f32 1.0, %v1169_v51 }
 0x4de   : > { %v1182_v9 = vmul.f32 0.0, %v1170_v59 }
 0x4df   : > { %v1155_v39 = vadd.f32 0.5, %v1153_v28  ;;  %v1154_v40 = vadd.f32 0.5, %v1152_v29  ;;  %v1187_v1 = vmul.f32 0.0, %v1139_v49  ;;  %v1183_v33 = vmul.f32 0.0, %v1171_v63 }
 0x4e0   : > { %v1159_v42 = vpop.permute.xlu1 %1158  ;;  %v1157_v45 = vpop.permute.xlu0 %1156  ;;  %v1173_v35 = vmul.f32 1.7320508, %v1139_v49 }
 0x4e1   : > { %v1163_v52 = vadd.f32 %v1159_v42, %v3343_v34  ;;  %v1162_v53 = vadd.f32 %v1157_v45, %v3338_v31  ;;  %v1175_v61 = vmul.f32 0.0, %v1155_v39  ;;  %v1174_v54 = vmul.f32 0.0, %v1154_v40 }
 0x4e2   : > { %v1188_v36 = vmul.f32 1.7320508, %v1154_v40  ;;  %v1189_v42 = vmul.f32 1.7320508, %v1155_v39  ;;  %v1650_v39 = vld [vmem:[#allocation3 + $0x8] sm:$0xff] }
 0x4e3   : > { %v1165_v55 = vadd.f32 %v1163_v52, %v1133_v4  ;;  %v1164_v58 = vadd.f32 %v1162_v53, %v1131_v22  ;;  %v1197_v62 = vadd.f32 %v1187_v1, %v1175_v61  ;;  %v1196_v5 = vadd.f32 %v1186_v18, %v1174_v54 }
 0x4e4   : > { %v1172_v22 = vmul.f32 1.7320508, %v1138_v46  ;;  %v1177_v29 = vadd.f32 %v1175_v61, %v1173_v35  ;;  %v1190_v52 = vadd.f32 %v1188_v36, %v1186_v18  ;;  %v1191_v53 = vadd.f32 %v1189_v42, %v1187_v1 }
 0x4e5   : > { %v1167_v2 = vadd.f32 -0.7, %v1165_v55  ;;  %v1166_v3 = vadd.f32 -0.7, %v1164_v58  ;;  %v2878_v18 = vmov 0.0  }
 0x4e6   : > { %v1176_v45 = vadd.f32 %v1174_v54, %v1172_v22  ;;  %v1649_v54 = vld [vmem:[#allocation3] sm:$0xff]  ;;  %1878 = vmatprep.mubr.f32.mxu0 %v2878_v18  ;;  %1992 = vmatprep.mubr.f32.mxu1 %v2878_v18 }
 0x4e7   : > { %v1199_v6 = vmul.f32 -1.0, %v1167_v2  ;;  %v1198_v25 = vmul.f32 -1.0, %v1166_v3  ;;  %v1179_v4 = vmul.f32 0.0, %v1167_v2  ;;  %v1178_v28 = vmul.f32 0.0, %v1166_v3 }
 0x4e9   : > { %v1201_v13 = vadd.f32 %v1199_v6, %v1197_v62  ;;  %v1200_v34 = vadd.f32 %v1198_v25, %v1196_v5  ;;  %v1181_v48 = vadd.f32 %v1179_v4, %v1177_v29  ;;  %v1180_v51 = vadd.f32 %v1178_v28, %v1176_v45 }
 0x4ea   : > { %v1192_v58 = vadd.f32 %v1190_v52, %v1178_v28  ;;  %v1193_v62 = vadd.f32 %v1191_v53, %v1179_v4 }
 0x4eb   : > { %v1203_v20 = vadd.f32 %v1201_v13, %v1183_v33  ;;  %v1202_v31 = vadd.f32 %v1200_v34, %v1182_v9  ;;  %v1185_v55 = vadd.f32 %v1183_v33, %v1181_v48  ;;  %v1184_v63 = vadd.f32 %v1182_v9, %v1180_v51 }
 0x4ec   : > { %v1194_v25 = vadd.f32 %v1192_v58, %v1182_v9  ;;  %v1195_v46 = vadd.f32 %v1193_v62, %v1183_v33 }
 0x4ed   : > { %2732 = vrcp.f32 %v1203_v20 }
 0x4ee   : > { %2734 = vrcp.f32 %v1202_v31 }
 0x4f7   : > { %v2733_v59 = vpop.eup %2732 }
 0x4f8   : > { %v2735_v5 = vpop.eup %2734  ;;  %v1209_v6 = vmul.f32 %v2733_v59, %v1185_v55  ;;  %v1211_v40 = vmul.f32 %v2733_v59, %v1195_v46 }
 0x4f9   : > { %v1208_v49 = vmul.f32 %v2735_v5, %v1184_v63  ;;  %v1210_v61 = vmul.f32 %v2735_v5, %v1194_v25 }
 0x4fa   : > { %1246 = vperm.xlu1 %2725, %v1209_v6  }
 0x4fb   : > { %1241 = vperm.xlu0 %2724, %v1208_v49  }
 0x4fe   : > { %1263 = vperm.xlu1 %2725, %v1210_v61  }
 0x4ff   : > { %1268 = vperm.xlu0 %2724, %v1211_v40  }
 0x502   : > { %1289 = vperm.xlu1 %2725, %v1166_v3  }
 0x503   : > { %1294 = vperm.xlu0 %2724, %v1167_v2  }
 0x521   : > { %1683 = vxpose.xlu0.b32.start.end [1/1] (short) %v1650_v39, 128 }
 0x52b   : > { %1651 = vxpose.xlu1.b32.start.end [1/1] (short) %v1649_v54, 128 }
 0x579   : > { %v1247_v1 = vpop.permute.xlu1 %1246 }
 0x57a   : > { %v1242_v13 = vpop.permute.xlu0 %1241  ;;  %v1251_v34 = vsub.f32 %v3362_v10, %v1247_v1  ;;  %v1252_v3 = vsub.f32 %v3367_v23, %v1247_v1 }
 0x57b   : > { %v1249_v9 = vsub.f32 %v3362_v10, %v1242_v13  ;;  %v1250_v33 = vsub.f32 %v3367_v23, %v1242_v13 }
 0x57c   : > { %v1255_v36 = vand.u32 2147483647, %v1251_v34  ;;  %v1256_v48 = vand.u32 2147483647, %v1252_v3 }
 0x57d   : > { %v1264_v2 = vpop.permute.xlu1 %1263  ;;  %v1253_v20 = vand.u32 2147483647, %v1249_v9  ;;  %v1254_v22 = vand.u32 2147483647, %v1250_v33 }
 0x57e   : > { %v1271_v31 = vsub.f32 %v3360_v7, %v1264_v2  ;;  %v1272_v35 = vsub.f32 %v3364_v47, %v1264_v2  ;;  %v1269_v4 = vpop.permute.xlu0 %1268  ;;  %vm1259_vm0 = vcmp.le.f32.partialorder %v1255_v36, 0.2  ;;  %vm1260_vm2 = vcmp.le.f32.partialorder %v1256_v48, 0.2 }
 0x57f   : > { %v1273_v28 = vsub.f32 %v3360_v7, %v1269_v4  ;;  %v1274_v29 = vsub.f32 %v3364_v47, %v1269_v4  ;;  %vm1257_vm9 = vcmp.le.f32.partialorder %v1253_v20, 0.2  ;;  %vm1258_vm12 = vcmp.le.f32.partialorder %v1254_v22, 0.2 }
 0x580   : > { %v1275_v42 = vand.u32 2147483647, %v1271_v31  ;;  %v1276_v45 = vand.u32 2147483647, %v1272_v35 }
 0x581   : > { %v1277_v51 = vand.u32 2147483647, %v1273_v28  ;;  %v1278_v10 = vand.u32 2147483647, %v1274_v29  ;;  %v1290_v23 = vpop.permute.xlu1 %1289 }
 0x582   : > { %vm1279_vm10 = vcmp.le.f32.partialorder %v1275_v42, 0.2  ;;  %vm1280_vm11 = vcmp.le.f32.partialorder %v1276_v45, 0.2  ;;  %v1295_v47 = vpop.permute.xlu0 %1294 }
 0x583   : > { %vm1281_vm13 = vcmp.le.f32.partialorder %v1277_v51, 0.2  ;;  %vm1282_vm14 = vcmp.le.f32.partialorder %v1278_v10, 0.2  ;;  %vm1283_vm15 = vmand %vm1257_vm9, %vm1279_vm10  ;;  %vm1717_vm10 = vcmask 64512  }
 0x584   : > { %vm1284_vm1 = vmand %vm1258_vm12, %vm1280_vm11  ;;  %v1297_v52 = vsel %vm1283_vm15, %v1290_v23, -1e+09  ;;  %vm1068_vm11 = vcmask 244736  }
 0x585   : > { %v1298_v7 = vsel %vm1284_vm1, %v1290_v23, -1e+09  ;;  %vm1285_vm3 = vmand %vm1259_vm0, %vm1281_vm13 }
 0x586   : > { %vm1286_vm4 = vmand %vm1260_vm2, %vm1282_vm14  ;;  %v1299_v53 = vsel %vm1285_vm3, %v1295_v47, -1e+09 }
 0x587   : > { %v1300_v55 = vsel %vm1286_vm4, %v1295_v47, -1e+09  ;;  %v1301_v58 = vmax.f32 %v1297_v52, %v1299_v53 }
 0x588   : > { %v1308_v59 = vmax.f32 %v1298_v7, %v1300_v55 }
 0x589   : > { %v1302_v63 = vrot.slane %v1301_v58, 4 }
 0x58a   : > { %v1309_v62 = vrot.slane %v1308_v59, 4 }
 0x58b   : > { %v1303_v5 = vmax.f32 %v1301_v58, %v1302_v63 }
 0x58c   : > { %v1310_v6 = vmax.f32 %v1308_v59, %v1309_v62 }
 0x58d   : > { %v1304_v49 = vrot.slane %v1303_v5, 2 }
 0x58e   : > { %v1311_v25 = vrot.slane %v1310_v6, 2 }
 0x58f   : > { %v1305_v46 = vmax.f32 %v1303_v5, %v1304_v49 }
 0x590   : > { %v1312_v61 = vmax.f32 %v1310_v6, %v1311_v25 }
 0x591   : > { %v1306_v40 = vrot.slane %v1305_v46, 1 }
 0x592   : > { %v1313_v39 = vrot.slane %v1312_v61, 1 }
 0x593   : > { %v1307_v54 = vmax.f32 %v1305_v46, %v1306_v40 }
 0x594   : > { %v1314_v1 = vmax.f32 %v1312_v61, %v1313_v39 }
 0x595   : > { %vm1315_vm7 = vcmp.le.f32.partialorder %v1307_v54, -100000.0 }
 0x596   : > { %vm1316_vm9 = vcmp.le.f32.partialorder %v1314_v1, -100000.0  ;;  %v1317_v13 = vsel %vm1315_vm7, -100.0, %v1307_v54 }
 0x597   : > { %v1318_v9 = vsel %vm1316_vm9, -100.0, %v1314_v1  ;;  %v1342_v33 = vmul.f32 -1.0, %v1317_v13 }
 0x598   : > { %v1343_v34 = vmul.f32 -1.0, %v1318_v9  ;;  %v1321_v3 = vcombine.low %v1317_v13, %v1318_v9 }
 0x599   : > { %2736 = vrcp.f32 %v1342_v33  ;;  %v1344_v31 = vadd.f32 -0.1, %v1342_v33 }
 0x59a   : > { %2738 = vrcp.f32 %v1343_v34  ;;  %v1328_v2 = vrot.slane %v1321_v3, %v3396_v19  ;;  %v1345_v4 = vadd.f32 -0.1, %v1343_v34 }
 0x59c   : > { %v1335_v20 = vrot.slane %v1328_v2, %v3396_v19 }
 0x59e   : > { %1341 = vst.msk [vmem:[%s393_s29] sm:$0x3] %vm3352_vm8, %v1335_v20  ;;  %s2750_s29 = scalar_lea.vmem %s2749_s30, 64 }
 0x59f   : > { %p2752_p4 = scmp.lt.s32.totalorder %s2750_s29, %s2744_s26 }
 0x5a1   : > { %v3436_v29 = vpop.trf.xlu0  ;;  %p2753_p7 = por %p2752_p4, %p2751_p3 }
 0x5a3   : > { %v2737_v35 = vpop.eup %2736  ;;  %p2754_p8 = pnand %p2753_p7, %p2747_p1 }
 0x5a4   : > { %v2739_v22 = vpop.eup %2738  ;;  %v1347_v28 = vmul.f32 %v2737_v35, %v1344_v31 }
 0x5a5   : > { %v1349_v36 = vmul.f32 %v2739_v22, %v1345_v4  ;;  %v3440_v23 = vpop.trf.xlu0 }
 0x5a6   : > { %v1378_v42 = vmul.f32 -1.0, %v1347_v28  ;;  %v1356_v7 = vmul.f32 -0.0, %v1347_v28 }
 0x5a7   : > { %v1379_v45 = vmul.f32 -1.0, %v1349_v36  ;;  %v1357_v47 = vmul.f32 -0.0, %v1349_v36 }
 0x5a8   : > { %v1380_v48 = vadd.f32 %v1378_v42, %v3372_v38  ;;  %v1374_v58 = vadd.f32 %v3372_v38, %v1356_v7  ;;  %v1358_v63 = vadd.f32 %v1356_v7, %v3382_v24  ;;  %v1368_v62 = vadd.f32 %v3384_v57, %v1356_v7 }
 0x5a9   : > { %v1381_v51 = vadd.f32 %v1379_v45, %v3374_v37  ;;  %v3444_v55 = vpop.trf.xlu0  ;;  %v1375_v59 = vadd.f32 %v3374_v37, %v1357_v47  ;;  %v1359_v49 = vadd.f32 %v1357_v47, %v3387_v30  ;;  %v1369_v25 = vadd.f32 %v3389_v60, %v1357_v47 }
 0x5aa   : > { %v1382_v10 = vadd.f32 10.0, %v1380_v48  ;;  %v1376_v5 = vadd.f32 -10.0, %v1374_v58 }
 0x5ab   : > { %v1383_v52 = vadd.f32 10.0, %v1381_v51  ;;  %v3442_v53 = vpop.trf.xlu1  ;;  %v1377_v46 = vadd.f32 -10.0, %v1375_v59 }
 0x5ac   : > { %2740 = vrcp.f32 %v1382_v10 }
 0x5ad   : > { %2742 = vrcp.f32 %v1383_v52  ;;  %v1702_v40 = vpop.trf.xlu0 }
 0x5af   : > { %v1668_v61 = vpop.trf.xlu1 }
 0x5b1   : > { %v1703_v36 = vpop.trf.xlu0 }
 0x5b3   : > { %v1669_v28 = vpop.trf.xlu1 }
 0x5b6   : > { %v2741_v6 = vpop.eup %2740 }
 0x5b7   : > { %v2743_v39 = vpop.eup %2742  ;;  %v1388_v54 = vmul.f32 %v2741_v6, %v1358_v63  ;;  %v1390_v1 = vmul.f32 %v2741_v6, %v1368_v62  ;;  %v1392_v13 = vmul.f32 %v2741_v6, %v1376_v5  ;;  %v1670_v6 = vpop.trf.xlu1 }
 0x5b8   : > { %v1389_v38 = vmul.f32 %v2743_v39, %v1359_v49  ;;  %v1391_v9 = vmul.f32 %v2743_v39, %v1369_v25  ;;  %v1393_v37 = vmul.f32 %v2743_v39, %v1377_v46  ;;  %v1704_v49 = vpop.trf.xlu0 }
 0x5b9   : > { %v1547_v33 = vmul.f32 -2.0, %v1388_v54  ;;  %v1569_v24 = vmul.f32 -2.0, %v1390_v1  ;;  %v1592_v34 = vmul.f32 -2.0, %v1392_v13  ;;  %v1615_v57 = vmul.f32 %v1388_v54, %v1388_v54 }
 0x5ba   : > { %v1548_v3 = vmul.f32 -2.0, %v1389_v38  ;;  %v1570_v2 = vmul.f32 -2.0, %v1391_v9  ;;  %v1593_v20 = vmul.f32 -2.0, %v1393_v37  ;;  %v1616_v30 = vmul.f32 %v1389_v38, %v1389_v38 }
 0x5bb   : > { %v1617_v31 = vmul.f32 %v1390_v1, %v1390_v1  ;;  %v1618_v60 = vmul.f32 %v1391_v9, %v1391_v9  ;;  %v1621_v48 = vmul.f32 %v1392_v13, %v1392_v13  ;;  %v1622_v51 = vmul.f32 %v1393_v37, %v1393_v37  ;;  %v1671_v39 = vpop.trf.xlu1 }
 0x5bc   : > { %v1551_v35 = vcombine.low %v1547_v33, %v1548_v3  ;;  %v1573_v4 = vcombine.low %v1569_v24, %v1570_v2  ;;  %v1596_v22 = vcombine.low %v1592_v34, %v1593_v20  ;;  %v1705_v54 = vpop.trf.xlu0 }
 0x5bd   : > { %v1619_v42 = vadd.f32 %v1617_v31, %v1615_v57  ;;  %v1620_v45 = vadd.f32 %v1618_v60, %v1616_v30 }
 0x5be   : > { %v1558_v10 = vrot.slane %v1551_v35, %v3396_v19  ;;  %v1580_v52 = vrot.slane %v1573_v4, %v3396_v19  ;;  %v1603_v7 = vrot.slane %v1596_v22, %v3396_v19 }
 0x5bf   : > { %v1623_v47 = vadd.f32 %v1621_v48, %v1619_v42  ;;  %v1624_v58 = vadd.f32 %v1622_v51, %v1620_v45  ;;  %v1672_v38 = vpop.trf.xlu1 }
 0x5c0   : > { %v1565_v59 = vrot.slane %v1558_v10, %v3396_v19  ;;  %v1587_v63 = vrot.slane %v1580_v52, %v3396_v19  ;;  %v1610_v62 = vrot.slane %v1603_v7, %v3396_v19  ;;  %v1706_v9 = vpop.trf.xlu0 }
 0x5c1   : > { %v1627_v5 = vcombine.low %v1623_v47, %v1624_v58 }
 0x5c2   : > { %1567 = vst.msk [vmem:[#allocation4] ss:$8 sm:$0x3] %vm3352_vm8, %v1565_v59  ;;  %1590 = vst.msk [vmem:[#allocation4 + $0x1] ss:$8 sm:$0x3] %vm3352_vm8, %v1587_v63 }
 0x5c3   : > { %1613 = vst.msk [vmem:[#allocation4 + $0x2] ss:$8 sm:$0x3] %vm3352_vm8, %v1610_v62  ;;  %v1634_v25 = vrot.slane %v1627_v5, %v3396_v19  ;;  %v1673_v44 = vpop.trf.xlu1 }
 0x5c5   : > { %v1641_v46 = vrot.slane %v1634_v25, %v3396_v19  ;;  %v1707_v19 = vpop.trf.xlu0 }
 0x5c7   : > { %1644 = vst.msk [vmem:[#allocation4 + $0x3] ss:$8 sm:$0x3] %vm3352_vm8, %v1641_v46  ;;  %vm2318_vm8 = vcmask 1040384  }
 0x5ce   : > { %v1716_v1 = vld [vmem:[#allocation4 + $0x8] sm:$0xff]  ;;  %v1715_v13 = vld [vmem:[#allocation4] sm:$0xff] }
 0x5cf   : > { %1814 = vmatprep.subr.mxu0 %v1716_v1  ;;  %2633 = vmatprep.subr.mxu1 %v1716_v1 }
 0x5d0   : > { %1815 = vmatpush1.msra.mxu0 %v1715_v13  ;;  %2634 = vmatpush1.msra.mxu1 %v1715_v13 }
 0x5d1   : > { %2532 = vmatmul.mubr.msk.f32.vlgmr.msra.gmra.mrb[8].mxu0 %vm1717_vm10, %v3442_v53  ;;  %2551 = vmatmul.mubr.msk.f32.vlgmr.msra.gmra.mrb[8].mxu1 %vm1717_vm10, %v1702_v40  ;;  %v1674_v53 = vpop.trf.xlu1  ;;  %v1708_v40 = vpop.trf.xlu0 }
 0x5d2   : > { %1884 = vmatprep.mubr.f32.mxu0 %v2878_v18  ;;  %1998 = vmatprep.mubr.f32.mxu1 %v2878_v18 }
 0x5d5   : > { %2533 = vmatmul.mubr.msk.f32.gmra.mrb[10].mxu0 %vm1717_vm10, %v1668_v61  ;;  %2552 = vmatmul.mubr.msk.f32.gmra.mrb[10].mxu1 %vm1717_vm10, %v1703_v36  ;;  %v1675_v61 = vpop.trf.xlu1  ;;  %v1709_v37 = vpop.trf.xlu0 }
 0x5d6   : > { %1890 = vmatprep.mubr.f32.mxu0 %v2878_v18  ;;  %2004 = vmatprep.mubr.f32.mxu1 %v2878_v18 }
 0x5d9   : > { %2534 = vmatmul.mubr.msk.f32.gmra.mrb[12].mxu0 %vm1717_vm10, %v1669_v28  ;;  %2553 = vmatmul.mubr.msk.f32.gmra.mrb[12].mxu1 %vm1717_vm10, %v1704_v49  ;;  %v1676_v33 = vpop.trf.xlu1  ;;  %v1710_v24 = vpop.trf.xlu0 }
 0x5da   : > { %1896 = vmatprep.mubr.f32.mxu0 %v2878_v18  ;;  %2010 = vmatprep.mubr.f32.mxu1 %v2878_v18 }
 0x5dd   : > { %2535 = vmatmul.mubr.msk.f32.gmra.mrb[14].mxu0 %vm1717_vm10, %v1670_v6  ;;  %2554 = vmatmul.mubr.msk.f32.gmra.mrb[14].mxu1 %vm1717_vm10, %v1705_v54  ;;  %v1677_v34 = vpop.trf.xlu1  ;;  %v1711_v57 = vpop.trf.xlu0 }
 0x5de   : > { %1902 = vmatprep.mubr.f32.mxu0 %v2878_v18  ;;  %2016 = vmatprep.mubr.f32.mxu1 %v2878_v18 }
 0x5e1   : > { %2536 = vmatmul.mubr.msk.f32.gmra.mrb[16].mxu0 %vm1717_vm10, %v1671_v39  ;;  %2555 = vmatmul.mubr.msk.f32.gmra.mrb[16].mxu1 %vm1717_vm10, %v1706_v9  ;;  %v1678_v3 = vpop.trf.xlu1  ;;  %v1712_v2 = vpop.trf.xlu0 }
 0x5e2   : > { %1908 = vmatprep.mubr.f32.mxu0 %v2878_v18  ;;  %2022 = vmatprep.mubr.f32.mxu1 %v2878_v18 }
 0x5e5   : > { %2537 = vmatmul.mubr.msk.f32.gmra.mrb[18].mxu0 %vm1717_vm10, %v1672_v38  ;;  %2556 = vmatmul.mubr.msk.f32.gmra.mrb[18].mxu1 %vm1717_vm10, %v1707_v19  ;;  %v1679_v20 = vpop.trf.xlu1  ;;  %v1713_v30 = vpop.trf.xlu0 }
 0x5e6   : > { %1914 = vmatprep.mubr.f32.mxu0 %v2878_v18  ;;  %2028 = vmatprep.mubr.f32.mxu1 %v2878_v18 }
 0x5e9   : > { %2538 = vmatmul.mubr.msk.f32.gmra.mrb[20].mxu0 %vm1717_vm10, %v1673_v44  ;;  %2557 = vmatmul.mubr.msk.f32.gmra.mrb[20].mxu1 %vm1717_vm10, %v1708_v40  ;;  %v1680_v31 = vpop.trf.xlu1  ;;  %v1714_v60 = vpop.trf.xlu0 }
 0x5ea   : > { %1920 = vmatprep.mubr.f32.mxu0 %v2878_v18  ;;  %2034 = vmatprep.mubr.f32.mxu1 %v2878_v18 }
 0x5ed   : > { %2539 = vmatmul.mubr.msk.f32.gmra.mrb[22].mxu0 %vm1717_vm10, %v1674_v53  ;;  %2558 = vmatmul.mubr.msk.f32.gmra.mrb[22].mxu1 %vm1717_vm10, %v1709_v37  ;;  %v1681_v35 = vpop.trf.xlu1 }
 0x5ee   : > { %1926 = vmatprep.mubr.f32.mxu0 %v2878_v18  ;;  %2040 = vmatprep.mubr.f32.mxu1 %v2878_v18 }
 0x5f1   : > { %2540 = vmatmul.mubr.msk.f32.gmra.mrb[24].mxu0 %vm1717_vm10, %v1675_v61  ;;  %2559 = vmatmul.mubr.msk.f32.gmra.mrb[24].mxu1 %vm1717_vm10, %v1710_v24  ;;  %v1682_v4 = vpop.trf.xlu1 }
 0x5f2   : > { %1932 = vmatprep.mubr.f32.mxu0 %v2878_v18  ;;  %2046 = vmatprep.mubr.f32.mxu1 %v2878_v18 }
 0x5f5   : > { %2541 = vmatmul.mubr.msk.f32.gmra.mrb[26].mxu0 %vm1717_vm10, %v1676_v33  ;;  %2560 = vmatmul.mubr.msk.f32.gmra.mrb[26].mxu1 %vm1717_vm10, %v1711_v57 }
 0x5f6   : > { %1938 = vmatprep.mubr.f32.mxu0 %v2878_v18  ;;  %2052 = vmatprep.mubr.f32.mxu1 %v2878_v18 }
 0x5f9   : > { %2542 = vmatmul.mubr.msk.f32.gmra.mrb[28].mxu0 %vm1717_vm10, %v1677_v34  ;;  %2561 = vmatmul.mubr.msk.f32.gmra.mrb[28].mxu1 %vm1717_vm10, %v1712_v2 }
 0x5fa   : > { %1944 = vmatprep.mubr.f32.mxu0 %v2878_v18  ;;  %2058 = vmatprep.mubr.f32.mxu1 %v2878_v18 }
 0x5fd   : > { %2543 = vmatmul.mubr.msk.f32.gmra.mrb[30].mxu0 %vm1717_vm10, %v1678_v3  ;;  %2562 = vmatmul.mubr.msk.f32.gmra.mrb[30].mxu1 %vm1717_vm10, %v1713_v30 }
 0x5fe   : > { %1950 = vmatprep.mubr.f32.mxu0 %v2878_v18  ;;  %2064 = vmatprep.mubr.f32.mxu1 %v2878_v18 }
 0x601   : > { %2544 = vmatmul.mubr.msk.f32.gmra.mrb[32].mxu0 %vm1717_vm10, %v1679_v20  ;;  %2563 = vmatmul.mubr.msk.f32.gmra.mrb[32].mxu1 %vm1717_vm10, %v1714_v60 }
 0x602   : > { %1956 = vmatprep.mubr.f32.mxu0 %v2878_v18 }
 0x605   : > { %2545 = vmatmul.mubr.msk.f32.gmra.mrb[34].mxu0 %vm1717_vm10, %v1680_v31 }
 0x606   : > { %1962 = vmatprep.mubr.f32.mxu0 %v2878_v18 }
 0x609   : > { %2546 = vmatmul.mubr.msk.f32.gmra.mrb[36].mxu0 %vm1717_vm10, %v1681_v35 }
 0x60a   : > { %1968 = vmatprep.mubr.f32.mxu0 %v2878_v18 }
 0x60d   : > { %2547 = vmatmul.mubr.msk.f32.gmra.mrb[38].mxu0 %vm1717_vm10, %v1682_v4 }
 0x60e   : > { %1974 = vmatprep.mubr.f32.mxu0 %v2878_v18 }
 0x611   : > { %2548 = vmatmul.mubr.msk.f32.gmra.mrb[40].mxu0 %vm1717_vm10, %v3436_v29 }
 0x612   : > { %1980 = vmatprep.mubr.f32.mxu0 %v2878_v18 }
 0x615   : > { %2549 = vmatmul.mubr.msk.f32.gmra.mrb[42].mxu0 %vm1717_vm10, %v3440_v23 }
 0x616   : > { %1986 = vmatprep.mubr.f32.mxu0 %v2878_v18 }
 0x619   : > { %2550 = vmatmul.mubr.msk.f32.gmra.mrb[44].mxu0 %vm1717_vm10, %v3444_v55 }
 0x6a4   : > { %v1880_v22 = vpop.f32.mrb[8].mxu0  ;;  %v3534_v28 = vpop.f32.mrb[8].mxu1 }
 0x6a5   : > { %v1882_v36 = vpop.f32.mrb[9].mxu0  ;;  %v3536_v42 = vpop.f32.mrb[9].mxu1 }
 0x6a6   : > { %v2071_v45 = vmin.f32 %v1880_v22, %v1882_v36 }
 0x6a8   : > { %2072 = vmin.xlane.f32.xlu0 %v2071_v45  ;;  %v1886_v48 = vpop.f32.mrb[10].mxu0  ;;  %v3540_v51 = vpop.f32.mrb[10].mxu1 }
 0x6a9   : > { %v1888_v23 = vpop.f32.mrb[11].mxu0  ;;  %v3542_v10 = vpop.f32.mrb[11].mxu1 }
 0x6aa   : > { %v2074_v18 = vmin.f32 %v1886_v48, %v1888_v23 }
 0x6ac   : > { %2075 = vmin.xlane.f32.xlu1 %v2074_v18  ;;  %v1892_v52 = vpop.f32.mrb[12].mxu0  ;;  %v3546_v7 = vpop.f32.mrb[12].mxu1 }
 0x6ad   : > { %v2167_v47 = vmin.f32 %v1880_v22, %v1892_v52  ;;  %v1894_v58 = vpop.f32.mrb[13].mxu0  ;;  %v3548_v59 = vpop.f32.mrb[13].mxu1 }
 0x6ae   : > { %v2204_v63 = vmin.f32 %v1882_v36, %v1894_v58  ;;  %v2077_v62 = vmin.f32 %v1892_v52, %v1894_v58 }
 0x6b0   : > { %2078 = vmin.xlane.f32.xlu0 %v2077_v62  ;;  %v1898_v6 = vpop.f32.mrb[14].mxu0  ;;  %v3552_v49 = vpop.f32.mrb[14].mxu1 }
 0x6b1   : > { %v2168_v25 = vmin.f32 %v1886_v48, %v1898_v6  ;;  %v1900_v46 = vpop.f32.mrb[15].mxu0  ;;  %v3554_v39 = vpop.f32.mrb[15].mxu1 }
 0x6b2   : > { %v2205_v54 = vmin.f32 %v1888_v23, %v1900_v46  ;;  %v2080_v1 = vmin.f32 %v1898_v6, %v1900_v46 }
 0x6b4   : > { %2081 = vmin.xlane.f32.xlu1 %v2080_v1  ;;  %v1904_v38 = vpop.f32.mrb[16].mxu0  ;;  %v3558_v9 = vpop.f32.mrb[16].mxu1 }
 0x6b5   : > { %v2169_v44 = vmin.f32 %v2167_v47, %v1904_v38  ;;  %v1906_v19 = vpop.f32.mrb[17].mxu0  ;;  %v3560_v53 = vpop.f32.mrb[17].mxu1 }
 0x6b6   : > { %v2206_v40 = vmin.f32 %v2204_v63, %v1906_v19  ;;  %v2083_v61 = vmin.f32 %v1904_v38, %v1906_v19 }
 0x6b8   : > { %2084 = vmin.xlane.f32.xlu0 %v2083_v61  ;;  %v1910_v33 = vpop.f32.mrb[18].mxu0  ;;  %v3564_v24 = vpop.f32.mrb[18].mxu1 }
 0x6b9   : > { %v2170_v34 = vmin.f32 %v2168_v25, %v1910_v33  ;;  %v1912_v57 = vpop.f32.mrb[19].mxu0  ;;  %v3566_v3 = vpop.f32.mrb[19].mxu1 }
 0x6ba   : > { %v2207_v2 = vmin.f32 %v2205_v54, %v1912_v57  ;;  %v2086_v20 = vmin.f32 %v1910_v33, %v1912_v57 }
 0x6bc   : > { %2087 = vmin.xlane.f32.xlu1 %v2086_v20  ;;  %v1916_v31 = vpop.f32.mrb[20].mxu0  ;;  %v3570_v60 = vpop.f32.mrb[20].mxu1 }
 0x6bd   : > { %v2171_v35 = vmin.f32 %v2169_v44, %v1916_v31  ;;  %v1918_v4 = vpop.f32.mrb[21].mxu0  ;;  %v3572_v22 = vpop.f32.mrb[21].mxu1 }
 0x6be   : > { %v2208_v36 = vmin.f32 %v2206_v40, %v1918_v4  ;;  %v2089_v45 = vmin.f32 %v1916_v31, %v1918_v4 }
 0x6c0   : > { %2090 = vmin.xlane.f32.xlu0 %v2089_v45  ;;  %v1922_v23 = vpop.f32.mrb[22].mxu0  ;;  %v3576_v18 = vpop.f32.mrb[22].mxu1 }
 0x6c1   : > { %v2172_v52 = vmin.f32 %v2170_v34, %v1922_v23  ;;  %v1924_v47 = vpop.f32.mrb[23].mxu0  ;;  %v3578_v58 = vpop.f32.mrb[23].mxu1 }
 0x6c2   : > { %v2209_v63 = vmin.f32 %v2207_v2, %v1924_v47  ;;  %v2092_v62 = vmin.f32 %v1922_v23, %v1924_v47 }
 0x6c4   : > { %2093 = vmin.xlane.f32.xlu1 %v2092_v62  ;;  %v1928_v25 = vpop.f32.mrb[24].mxu0  ;;  %v3582_v46 = vpop.f32.mrb[24].mxu1 }
 0x6c5   : > { %v2173_v54 = vmin.f32 %v2171_v35, %v1928_v25  ;;  %v1930_v1 = vpop.f32.mrb[25].mxu0  ;;  %v3584_v38 = vpop.f32.mrb[25].mxu1 }
 0x6c6   : > { %v2210_v44 = vmin.f32 %v2208_v36, %v1930_v1  ;;  %v2095_v19 = vmin.f32 %v1928_v25, %v1930_v1 }
 0x6c8   : > { %2096 = vmin.xlane.f32.xlu0 %v2095_v19  ;;  %v1934_v61 = vpop.f32.mrb[26].mxu0  ;;  %v3588_v33 = vpop.f32.mrb[26].mxu1 }
 0x6c9   : > { %v2174_v34 = vmin.f32 %v2172_v52, %v1934_v61  ;;  %v1936_v57 = vpop.f32.mrb[27].mxu0  ;;  %v3590_v2 = vpop.f32.mrb[27].mxu1 }
 0x6ca   : > { %v2211_v20 = vmin.f32 %v2209_v63, %v1936_v57  ;;  %v2098_v31 = vmin.f32 %v1934_v61, %v1936_v57 }
 0x6cc   : > { %2099 = vmin.xlane.f32.xlu1 %v2098_v31  ;;  %v1940_v4 = vpop.f32.mrb[28].mxu0  ;;  %v3594_v36 = vpop.f32.mrb[28].mxu1 }
 0x6cd   : > { %v2175_v45 = vmin.f32 %v2173_v54, %v1940_v4  ;;  %v1942_v23 = vpop.f32.mrb[29].mxu0  ;;  %v3596_v47 = vpop.f32.mrb[29].mxu1 }
 0x6ce   : > { %v2212_v62 = vmin.f32 %v2210_v44, %v1942_v23  ;;  %v2101_v25 = vmin.f32 %v1940_v4, %v1942_v23 }
 0x6d0   : > { %2102 = vmin.xlane.f32.xlu0 %v2101_v25  ;;  %v1946_v1 = vpop.f32.mrb[30].mxu0  ;;  %v3600_v63 = vpop.f32.mrb[30].mxu1 }
 0x6d1   : > { %v2176_v19 = vmin.f32 %v2174_v34, %v1946_v1  ;;  %v1948_v61 = vpop.f32.mrb[31].mxu0  ;;  %v3602_v57 = vpop.f32.mrb[31].mxu1 }
 0x6d2   : > { %v2213_v31 = vmin.f32 %v2211_v20, %v1948_v61  ;;  %v2104_v35 = vmin.f32 %v1946_v1, %v1948_v61 }
 0x6d4   : > { %2105 = vmin.xlane.f32.xlu1 %v2104_v35  ;;  %v1952_v40 = vpop.f32.mrb[32].mxu0  ;;  %v3606_v44 = vpop.f32.mrb[32].mxu1 }
 0x6d5   : > { %v2177_v4 = vmin.f32 %v2175_v45, %v1952_v40  ;;  %v1954_v23 = vpop.f32.mrb[33].mxu0  ;;  %v3608_v52 = vpop.f32.mrb[33].mxu1 }
 0x6d6   : > { %v2214_v25 = vmin.f32 %v2212_v62, %v1954_v23  ;;  %v2107_v6 = vmin.f32 %v1952_v40, %v1954_v23 }
 0x6d8   : > { %2108 = vmin.xlane.f32.xlu0 %v2107_v6  ;;  %v1958_v48 = vpop.f32.mrb[34].mxu0 }
 0x6d9   : > { %v2178_v20 = vmin.f32 %v2176_v19, %v1958_v48  ;;  %v1960_v1 = vpop.f32.mrb[35].mxu0 }
 0x6da   : > { %v2215_v61 = vmin.f32 %v2213_v31, %v1960_v1  ;;  %v2110_v30 = vmin.f32 %v1958_v48, %v1960_v1 }
 0x6dc   : > { %2111 = vmin.xlane.f32.xlu1 %v2110_v30  ;;  %v1964_v35 = vpop.f32.mrb[36].mxu0 }
 0x6dd   : > { %v2179_v54 = vmin.f32 %v2177_v4, %v1964_v35  ;;  %v1966_v37 = vpop.f32.mrb[37].mxu0 }
 0x6de   : > { %v2216_v13 = vmin.f32 %v2214_v25, %v1966_v37  ;;  %v2113_v45 = vmin.f32 %v1964_v35, %v1966_v37 }
 0x6e0   : > { %2114 = vmin.xlane.f32.xlu0 %v2113_v45  ;;  %v1970_v5 = vpop.f32.mrb[38].mxu0 }
 0x6e1   : > { %v2180_v55 = vmin.f32 %v2178_v20, %v1970_v5  ;;  %v1972_v62 = vpop.f32.mrb[39].mxu0 }
 0x6e2   : > { %v2217_v40 = vmin.f32 %v2215_v61, %v1972_v62  ;;  %v2116_v23 = vmin.f32 %v1970_v5, %v1972_v62  ;;  %v3889_v62 = vmin.f32 %v3534_v28, %v3536_v42 }
 0x6e4   : > { %2117 = vmin.xlane.f32.xlu1 %v2116_v23  ;;  %v1976_v34 = vpop.f32.mrb[40].mxu0 }
 0x6e5   : > { %v2181_v6 = vmin.f32 %v2179_v54, %v1976_v34  ;;  %v1978_v29 = vpop.f32.mrb[41].mxu0 }
 0x6e6   : > { %v2218_v19 = vmin.f32 %v2216_v13, %v1978_v29  ;;  %v2119_v8 = vmin.f32 %v1976_v34, %v1978_v29 }
 0x6e8   : > { %2120 = vmin.xlane.f32.xlu0 %v2119_v8  ;;  %v1982_v48 = vpop.f32.mrb[42].mxu0 }
 0x6e9   : > { %v2182_v30 = vmin.f32 %v2180_v55, %v1982_v48  ;;  %v1984_v31 = vpop.f32.mrb[43].mxu0 }
 0x6ea   : > { %v2219_v4 = vmin.f32 %v2217_v40, %v1984_v31  ;;  %v2122_v1 = vmin.f32 %v1982_v48, %v1984_v31 }
 0x6eb   : > { %v2184_v37 = vmin.f32 %v2182_v30, %v3534_v28  ;;  %v3890_v28 = vmin.f32 %v3540_v51, %v3542_v10 }
 0x6ec   : > { %v2221_v25 = vmin.f32 %v2219_v4, %v3536_v42  ;;  %2123 = vmin.xlane.f32.xlu1 %v2122_v1  ;;  %v1988_v20 = vpop.f32.mrb[44].mxu0  ;;  %v3891_v42 = vmin.f32 %v3546_v7, %v3548_v59 }
 0x6ed   : > { %v2186_v5 = vmin.f32 %v2184_v37, %v3546_v7  ;;  %v2183_v61 = vmin.f32 %v2181_v6, %v1988_v20  ;;  %v1990_v35 = vpop.f32.mrb[45].mxu0  ;;  %v3893_v7 = vmin.f32 %v3558_v9, %v3560_v53 }
 0x6ee   : > { %v2223_v54 = vmin.f32 %v2221_v25, %v3548_v59  ;;  %v2125_v13 = vmin.f32 %v1988_v20, %v1990_v35  ;;  %v2220_v29 = vmin.f32 %v2218_v19, %v1990_v35 }
 0x6ef   : > { %v2188_v8 = vmin.f32 %v2186_v5, %v3558_v9  ;;  %v2185_v55 = vmin.f32 %v2183_v61, %v3540_v51  ;;  %v3896_v9 = vmin.f32 %v3576_v18, %v3578_v58 }
 0x6f0   : > { %v2225_v34 = vmin.f32 %v2223_v54, %v3560_v53  ;;  %v2222_v45 = vmin.f32 %v2220_v29, %v3542_v10  ;;  %2126 = vmin.xlane.f32.xlu0 %v2125_v13  ;;  %2129 = vmin.xlane.f32.xlu1 %v3889_v62  ;;  %v3892_v10 = vmin.f32 %v3552_v49, %v3554_v39 }
 0x6f1   : > { %v2190_v40 = vmin.f32 %v2188_v8, %v3570_v60  ;;  %v2187_v23 = vmin.f32 %v2185_v55, %v3552_v49  ;;  %v3894_v8 = vmin.f32 %v3564_v24, %v3566_v3  ;;  %v3895_v55 = vmin.f32 %v3570_v60, %v3572_v22 }
 0x6f2   : > { %v2227_v6 = vmin.f32 %v2225_v34, %v3572_v22  ;;  %v2224_v19 = vmin.f32 %v2222_v45, %v3554_v39  ;;  %v3897_v53 = vmin.f32 %v3582_v46, %v3584_v38  ;;  %v3899_v60 = vmin.f32 %v3594_v36, %v3596_v47 }
 0x6f3   : > { %v2189_v48 = vmin.f32 %v2187_v23, %v3564_v24  ;;  %v2192_v30 = vmin.f32 %v2190_v40, %v3582_v46  ;;  %v3901_v46 = vmin.f32 %v3606_v44, %v3608_v52 }
 0x6f4   : > { %v2226_v31 = vmin.f32 %v2224_v19, %v3566_v3  ;;  %v2229_v4 = vmin.f32 %v2227_v6, %v3584_v38  ;;  %2132 = vmin.xlane.f32.xlu0 %v3890_v28  ;;  %2135 = vmin.xlane.f32.xlu1 %v3891_v42  ;;  %v3898_v3 = vmin.f32 %v3588_v33, %v3590_v2 }
 0x6f5   : > { %v2191_v1 = vmin.f32 %v2189_v48, %v3576_v18  ;;  %v2194_v37 = vmin.f32 %v2192_v30, %v3594_v36 }
 0x6f6   : > { %v2228_v25 = vmin.f32 %v2226_v31, %v3578_v58  ;;  %v2231_v20 = vmin.f32 %v2229_v4, %v3596_v47  ;;  %v3900_v58 = vmin.f32 %v3600_v63, %v3602_v57 }
 0x6f7   : > { %v2193_v5 = vmin.f32 %v2191_v1, %v3588_v33  ;;  %v2196_v61 = vmin.f32 %v2194_v37, %v3606_v44 }
 0x6f8   : > { %v2230_v35 = vmin.f32 %v2228_v25, %v3590_v2  ;;  %v2233_v51 = vmin.f32 %v2231_v20, %v3608_v52  ;;  %2138 = vmin.xlane.f32.xlu0 %v3892_v10  ;;  %2141 = vmin.xlane.f32.xlu1 %v3893_v7 }
 0x6f9   : > { %v2195_v59 = vmin.f32 %v2193_v5, %v3600_v63 }
 0x6fa   : > { %v2232_v54 = vmin.f32 %v2230_v35, %v3602_v57 }
 0x6fb   : > { %v2197_v13 = vmin.f32 %v2195_v59, %v2196_v61 }
 0x6fc   : > { %v2234_v29 = vmin.f32 %v2232_v54, %v2233_v51  ;;  %2144 = vmin.xlane.f32.xlu0 %v3894_v8  ;;  %2147 = vmin.xlane.f32.xlu1 %v3895_v55 }
 0x6fd   : > { %v2198_v49 = vrot.slane %v2197_v13, 4 }
 0x6fe   : > { %v2235_v39 = vrot.slane %v2234_v29, 4 }
 0x6ff   : > { %v2199_v34 = vmin.f32 %v2197_v13, %v2198_v49 }
 0x700   : > { %v2236_v45 = vmin.f32 %v2234_v29, %v2235_v39  ;;  %2150 = vmin.xlane.f32.xlu0 %v3896_v9  ;;  %2153 = vmin.xlane.f32.xlu1 %v3897_v53 }
 0x701   : > { %v2200_v62 = vrot.slane %v2199_v34, 2 }
 0x702   : > { %v2237_v40 = vrot.slane %v2236_v45, 2 }
 0x703   : > { %v2201_v24 = vmin.f32 %v2199_v34, %v2200_v62 }
 0x704   : > { %2156 = vmin.xlane.f32.xlu0 %v3898_v3  ;;  %2159 = vmin.xlane.f32.xlu1 %v3899_v60  ;;  %v2238_v22 = vmin.f32 %v2236_v45, %v2237_v40 }
 0x705   : > { %v2202_v23 = vrot.slane %v2201_v24, 1 }
 0x706   : > { %v2239_v6 = vrot.slane %v2238_v22, 1 }
 0x707   : > { %v2203_v18 = vmin.f32 %v2201_v24, %v2202_v23 }
 0x708   : > { %2162 = vmin.xlane.f32.xlu0 %v3900_v58  ;;  %2165 = vmin.xlane.f32.xlu1 %v3901_v46  ;;  %v2240_v38 = vmin.f32 %v2238_v22, %v2239_v6 }
 0x709   : > { %v2319_v33 = vsel %vm2318_vm8, %v2203_v18, 0.0 }
 0x70a   : > { %v2320_v2 = vsel %vm2318_vm8, %v2240_v38, 0.0 }
 0x70b   : > { %v2321_v19 = vadd.f32 %v2320_v2, %v2319_v33 }
 0x70d   : > { %2322 = vadd.xlane.f32.xlu1 %v2321_v19 }
 0x71e   : > { %1046 = vrot.lane.b32.xlu1 %v3054_v12, %s2879_s22 }
 0x722   : > { %1048 = vrot.lane.b32.xlu1 %v3061_v15, %s2879_s22 }
 0x726   : > { %1052 = vrot.lane.b32.xlu1 %v3066_v17, %s2879_s22 }
 0x72a   : > { %1056 = vrot.lane.b32.xlu1 %v3088_v26, %s2879_s22 }
 0x72e   : > { %1085 = vrot.lane.b32.xlu1 %v3228_v43, %s2871_s16 }
 0x732   : > { %1089 = vrot.lane.b32.xlu1 %v3223_v41, %s2871_s16 }
 0x735   : > { %v2073_v12 = vpop.xlane.xlu0 %2072 }
 0x736   : > { %1093 = vrot.lane.b32.xlu1 %v3269_v14, %s2871_s16  ;;  %v2242_v26 = vsel %vm966_vm5, %v2073_v12, 0.0 }
 0x739   : > { %v2076_v15 = vpop.xlane.xlu1 %2075 }
 0x73a   : > { %1097 = vrot.lane.b32.xlu1 %v3278_v32, %s2871_s16  ;;  %v2243_v17 = vsel %vm966_vm5, %v2076_v15, 0.0 }
 0x73b   : > { %v2244_v43 = vadd.f32 %v2243_v17, %v2242_v26 }
 0x73d   : > { %v2079_v36 = vpop.xlane.xlu0 %2078 }
 0x73e   : > { %v2245_v52 = vsel %vm966_vm5, %v2079_v36, 0.0 }
 0x73f   : > { %v2246_v57 = vadd.f32 %v2245_v52, %v2244_v43 }
 0x741   : > { %v2082_v47 = vpop.xlane.xlu1 %2081 }
 0x742   : > { %v2247_v41 = vsel %vm966_vm5, %v2082_v47, 0.0 }
 0x743   : > { %v2248_v48 = vadd.f32 %v2247_v41, %v2246_v57 }
 0x745   : > { %v2085_v63 = vpop.xlane.xlu0 %2084 }
 0x746   : > { %v2249_v14 = vsel %vm966_vm5, %v2085_v63, 0.0 }
 0x747   : > { %v2250_v31 = vadd.f32 %v2249_v14, %v2248_v48 }
 0x749   : > { %v2088_v44 = vpop.xlane.xlu1 %2087 }
 0x74a   : > { %v2251_v30 = vsel %vm966_vm5, %v2088_v44, 0.0 }
 0x74b   : > { %v2252_v42 = vadd.f32 %v2251_v30, %v2250_v31 }
 0x74d   : > { %v2091_v32 = vpop.xlane.xlu0 %2090 }
 0x74e   : > { %v2253_v28 = vsel %vm966_vm5, %v2091_v32, 0.0 }
 0x74f   : > { %v2254_v25 = vadd.f32 %v2253_v28, %v2252_v42 }
 0x751   : > { %v2094_v4 = vpop.xlane.xlu1 %2093 }
 0x752   : > { %v2255_v37 = vsel %vm966_vm5, %v2094_v4, 0.0 }
 0x753   : > { %v2256_v61 = vadd.f32 %v2255_v37, %v2254_v25 }
 0x755   : > { %v2097_v1 = vpop.xlane.xlu0 %2096 }
 0x756   : > { %v2257_v5 = vsel %vm966_vm5, %v2097_v1, 0.0 }
 0x757   : > { %v2258_v10 = vadd.f32 %v2257_v5, %v2256_v61 }
 0x759   : > { %v2100_v20 = vpop.xlane.xlu1 %2099 }
 0x75a   : > { %v2259_v51 = vsel %vm966_vm5, %v2100_v20, 0.0 }
 0x75b   : > { %v2260_v54 = vadd.f32 %v2259_v51, %v2258_v10 }
 0x75d   : > { %v2103_v35 = vpop.xlane.xlu0 %2102 }
 0x75e   : > { %v2261_v59 = vsel %vm966_vm5, %v2103_v35, 0.0 }
 0x75f   : > { %v2262_v8 = vadd.f32 %v2261_v59, %v2260_v54 }
 0x761   : > { %v2106_v7 = vpop.xlane.xlu1 %2105 }
 0x762   : > { %v2263_v29 = vsel %vm966_vm5, %v2106_v7, 0.0 }
 0x763   : > { %v2264_v39 = vadd.f32 %v2263_v29, %v2262_v8 }
 0x765   : > { %v2109_v13 = vpop.xlane.xlu0 %2108 }
 0x766   : > { %v2265_v49 = vsel %vm966_vm5, %v2109_v13, 0.0 }
 0x767   : > { %v2266_v9 = vadd.f32 %v2265_v49, %v2264_v39 }
 0x769   : > { %v2112_v55 = vpop.xlane.xlu1 %2111 }
 0x76a   : > { %v2267_v45 = vsel %vm966_vm5, %v2112_v55, 0.0 }
 0x76b   : > { %v2268_v40 = vadd.f32 %v2267_v45, %v2266_v9 }
 0x76d   : > { %v2115_v34 = vpop.xlane.xlu0 %2114 }
 0x76e   : > { %v2269_v62 = vsel %vm966_vm5, %v2115_v34, 0.0 }
 0x76f   : > { %v2270_v60 = vadd.f32 %v2269_v62, %v2268_v40 }
 0x771   : > { %v2118_v53 = vpop.xlane.xlu1 %2117 }
 0x772   : > { %v2271_v3 = vsel %vm966_vm5, %v2118_v53, 0.0 }
 0x773   : > { %v2272_v23 = vadd.f32 %v2271_v3, %v2270_v60 }
 0x775   : > { %v2121_v24 = vpop.xlane.xlu0 %2120 }
 0x776   : > { %v2273_v22 = vsel %vm966_vm5, %v2121_v24, 0.0 }
 0x777   : > { %v2274_v58 = vadd.f32 %v2273_v22, %v2272_v23 }
 0x779   : > { %v2124_v6 = vpop.xlane.xlu1 %2123 }
 0x77a   : > { %v2275_v18 = vsel %vm966_vm5, %v2124_v6, 0.0 }
 0x77b   : > { %v2276_v46 = vadd.f32 %v2275_v18, %v2274_v58 }
 0x77d   : > { %v2130_v38 = vpop.xlane.xlu1 %2129  ;;  %v2127_v33 = vpop.xlane.xlu0 %2126 }
 0x77e   : > { %v2277_v2 = vsel %vm966_vm5, %v2127_v33, 0.0  ;;  %v2279_v12 = vsel %vm966_vm5, %v2130_v38, 0.0 }
 0x77f   : > { %v2278_v19 = vadd.f32 %v2277_v2, %v2276_v46 }
 0x781   : > { %v2136_v15 = vpop.xlane.xlu1 %2135  ;;  %v2280_v36 = vadd.f32 %v2279_v12, %v2278_v19  ;;  %v2133_v17 = vpop.xlane.xlu0 %2132 }
 0x782   : > { %v2281_v47 = vsel %vm966_vm5, %v2133_v17, 0.0  ;;  %v2283_v52 = vsel %vm966_vm5, %v2136_v15, 0.0 }
 0x783   : > { %v2282_v26 = vadd.f32 %v2281_v47, %v2280_v36 }
 0x785   : > { %v2142_v43 = vpop.xlane.xlu1 %2141  ;;  %v2284_v63 = vadd.f32 %v2283_v52, %v2282_v26  ;;  %v2139_v41 = vpop.xlane.xlu0 %2138 }
 0x786   : > { %v2285_v57 = vsel %vm966_vm5, %v2139_v41, 0.0  ;;  %v2287_v14 = vsel %vm966_vm5, %v2142_v43, 0.0 }
 0x787   : > { %v2286_v44 = vadd.f32 %v2285_v57, %v2284_v63 }
 0x789   : > { %v2148_v48 = vpop.xlane.xlu1 %2147  ;;  %v2288_v32 = vadd.f32 %v2287_v14, %v2286_v44  ;;  %v2145_v30 = vpop.xlane.xlu0 %2144 }
 0x78a   : > { %v2289_v31 = vsel %vm966_vm5, %v2145_v30, 0.0  ;;  %v2291_v28 = vsel %vm966_vm5, %v2148_v48, 0.0 }
 0x78b   : > { %v2290_v4 = vadd.f32 %v2289_v31, %v2288_v32 }
 0x78d   : > { %v2154_v42 = vpop.xlane.xlu1 %2153  ;;  %v2292_v1 = vadd.f32 %v2291_v28, %v2290_v4  ;;  %v2151_v37 = vpop.xlane.xlu0 %2150 }
 0x78e   : > { %v2293_v25 = vsel %vm966_vm5, %v2151_v37, 0.0  ;;  %v2295_v5 = vsel %vm966_vm5, %v2154_v42, 0.0 }
 0x78f   : > { %v2294_v20 = vadd.f32 %v2293_v25, %v2292_v1 }
 0x791   : > { %v2160_v61 = vpop.xlane.xlu1 %2159  ;;  %v2296_v35 = vadd.f32 %v2295_v5, %v2294_v20  ;;  %v2157_v51 = vpop.xlane.xlu0 %2156 }
 0x792   : > { %v2297_v10 = vsel %vm966_vm5, %v2157_v51, 0.0  ;;  %v2299_v59 = vsel %vm966_vm5, %v2160_v61, 0.0 }
 0x793   : > { %v2298_v7 = vadd.f32 %v2297_v10, %v2296_v35 }
 0x795   : > { %v2300_v54 = vadd.f32 %v2299_v59, %v2298_v7  ;;  %v2163_v13 = vpop.xlane.xlu0 %2162  ;;  %v2166_v29 = vpop.xlane.xlu1 %2165 }
 0x796   : > { %v2301_v8 = vsel %vm966_vm5, %v2163_v13, 0.0  ;;  %v2303_v55 = vsel %vm966_vm5, %v2166_v29, 0.0  ;;  %vm1109_vm5 = vcmask 294128  }
 0x797   : > { %v2302_v49 = vadd.f32 %v2301_v8, %v2300_v54 }
 0x799   : > { %v2304_v39 = vadd.f32 %v2303_v55, %v2302_v49 }
 0x79a   : > { %v3727_v34 = vpop.xlane.xlu1 %2322 }
 0x79b   : > { %2305 = vadd.xlane.f32.xlu0 %v2304_v39 }
 0x79e   : > { %v1047_v45 = vpop.permute.xlu1 %1046 }
 0x79f   : > { %1070 = vst.msk [vmem:[#allocation2 + $0x8] sm:$0xff] %vm1068_vm11, %v1047_v45 }
 0x7a2   : > { %v1049_v9 = vpop.permute.xlu1 %1048 }
 0x7a3   : > { %1071 = vst.msk [vmem:[#allocation2 + $0x10] sm:$0xff] %vm1068_vm11, %v1049_v9 }
 0x7b1   : > { %1044 = vrot.lane.b32.xlu0 %v3052_v11, %s2879_s22  ;;  %v1053_v11 = vpop.permute.xlu1 %1052 }
 0x7b2   : > { %1073 = vst.msk [vmem:[#allocation2 + $0x20] sm:$0xff] %vm1068_vm11, %v1053_v11 }
 0x7b5   : > { %1050 = vrot.lane.b32.xlu0 %v3063_v16, %s2879_s22  ;;  %v1057_v16 = vpop.permute.xlu1 %1056 }
 0x7b6   : > { %1075 = vst.msk [vmem:[#allocation2 + $0x30] sm:$0xff] %vm1068_vm11, %v1057_v16 }
 0x7b9   : > { %1054 = vrot.lane.b32.xlu0 %v3074_v21, %s2879_s22  ;;  %v3902_v21 = vld [vmem:[#allocation17_spill] sm:$0xff] }
 0x7bd   : > { %1058 = vrot.lane.b32.xlu0 %v3090_v27, %s2879_s22  ;;  %v3747_v27 = vpop.permute.xlu1 %1085 }
 0x7c1   : > { %1087 = vrot.lane.b32.xlu0 %v3236_v50, %s2871_s16  ;;  %v1090_v53 = vpop.permute.xlu1 %1089 }
 0x7c2   : > { %1112 = vst.msk [vmem:[#allocation2 + $0x10] sm:$0xff] %vm1109_vm5, %v1090_v53 }
 0x7c5   : > { %1091 = vrot.lane.b32.xlu0 %v3244_v56, %s2871_s16  ;;  %v1094_v50 = vpop.permute.xlu1 %1093 }
 0x7c6   : > { %1114 = vst.msk [vmem:[#allocation2 + $0x20] sm:$0xff] %vm1109_vm5, %v1094_v50 }
 0x7c9   : > { %1095 = vrot.lane.b32.xlu0 %v3252_v0, %s2871_s16  ;;  %v1098_v56 = vpop.permute.xlu1 %1097 }
 0x7ca   : > { %1116 = vst.msk [vmem:[#allocation2 + $0x30] sm:$0xff] %vm1109_vm5, %v1098_v56 }
 0x7cd   : > { %1099 = vrot.lane.b32.xlu0 %v3902_v21, %s2871_s16  ;;  %s2880_s16 = smov [#allocation5]  }
 0x7ce   : > { %s3763_s24 = sshll.u32 %s2880_s16, 4  ;;  %s2356_s24 = int_to_ptr.vmem [resolvable:$true] %s3763_s24 }
 0x7cf   : > { %2757 = shalt.err (!%p2754_p8)
}
 0x7d0   : > { %s2758_s25 = scalar_lea.hbm %s3756_s15, 32  ;;  %s2762_s12 = scalar_lea.hbm %s3872_s10, 64 }
 0x7d1   : > { %p2759_p9 = scmp.ne.s32.totalorder %s3756_s15, %s2758_s25  ;;  %p2763_p12 = scmp.lt.u32.totalorder %s3756_s15, %s3872_s10 }
 0x7d2   : > { %p2764_p13 = scmp.lt.u32.totalorder %s2762_s12, %s2758_s25  ;;  %p2766_p1 = scmp.lt.u32.totalorder %s2758_s25, %s3756_s15 }
 0x7d3   : > { %p2760_p10 = pnand %p2759_p9, %p2982_p5 }
 0x7d4   : > { %p2765_p0 = por %p2764_p13, %p2763_p12 }
 0x7d5   : > { %p2761_p11 = pneg %p2760_p10 }
 0x7d6   : > { %p2767_p3 = por %p2766_p1, %p2765_p0 }
 0x7d8   : > { %p2768_p4 = pnand %p2767_p3, %p2761_p11 }
 0x7da   : > { %2771 = shalt.err (!%p2768_p4)
}
 0x7db   : > { %2646 = dma.vmem_to_hbm [thread:$0]  (%p2982_p5), %s3760_s14, 32, %s3756_s15, %s2341_s19  }
 0x7dc   : > { %s2772_s16 = scalar_lea.vmem %s2356_s24, 16  ;;  %s2778_s26 = scalar_lea.vmem %s2356_s24, 32 }
 0x7dd   : > { %p2773_p7 = scmp.ne.s32.totalorder %s2356_s24, %s2772_s16  ;;  %p2779_p10 = scmp.lt.s32.totalorder %s2356_s24, %s2356_s24 }
 0x7de   : > { %p2780_p12 = scmp.lt.s32.totalorder %s2778_s26, %s2772_s16 }
 0x7df   : > { %p2774_p8 = pnand %p2773_p7, %p269_p2 }
 0x7e0   : > { %p2781_p13 = por %p2780_p12, %p2779_p10 }
 0x7e1   : > { %p2775_p9 = pneg %p2774_p8 }
 0x7e3   : > { %p2782_p0 = pnand %p2781_p13, %p2775_p9 }
 0x7e5   : > { %2785 = shalt.err (!%p2782_p0)
}
 0x7e6   : > { %s2786_s27 = scalar_lea.hbm %s3871_s9, 16 }
 0x7e7   : > { %p2787_p5 = scmp.ne.s32.totalorder %s3871_s9, %s2786_s27  ;;  %p2792_p3 = scmp.lt.u32.totalorder %s2786_s27, %s3871_s9 }
 0x7e9   : > { %p2788_p11 = pnand %p2787_p5, %p269_p2 }
 0x7eb   : > { %p2789_p1 = pneg %p2788_p11 }
 0x7ed   : > { %p2794_p4 = pnand %p2792_p3, %p2789_p1 }
 0x7ef   : > { %2797 = shalt.err (!%p2794_p4)
}
 0x7f0   : > { %2645 = dma.vmem_to_hbm [thread:$0]  (%p269_p2), %s2356_s24, 16, %s3871_s9, [#allocation6]   ;;  %v2324_v0 = vrot.slane %v3727_v34, 4  ;;  %v2241_v26 = vld [vmem:[#allocation9] sm:$0x1] }
 0x7f1   : > { %s2882_s12 = smov [#allocation9]  }
 0x7f2   : > { %v2325_v62 = vadd.f32 %v2324_v0, %v3727_v34  ;;  %s2380_s18 = sshll.u32 %s2882_s12, 4  ;;  %s2381_s18 = int_to_ptr.vmem [resolvable:$true] %s2380_s18 }
 0x7f3   : > { %s2798_s17 = scalar_lea.vmem %s2381_s18, 16  ;;  %s2804_s16 = scalar_lea.vmem %s2381_s18, 32 }
 0x7f4   : > { %v2326_v40 = vrot.slane %v2325_v62, 2  ;;  %p2799_p7 = scmp.ne.s32.totalorder %s2381_s18, %s2798_s17  ;;  %p2805_p10 = scmp.lt.s32.totalorder %s2381_s18, %s2381_s18 }
 0x7f5   : > { %p2806_p12 = scmp.lt.s32.totalorder %s2804_s16, %s2798_s17 }
 0x7f6   : > { %v2327_v22 = vadd.f32 %v2326_v40, %v2325_v62  ;;  %p2800_p8 = pnand %p2799_p7, %p269_p2 }
 0x7f7   : > { %p2807_p13 = por %p2806_p12, %p2805_p10 }
 0x7f8   : > { %v2328_v58 = vrot.slane %v2327_v22, 1  ;;  %p2801_p9 = pneg %p2800_p8 }
 0x7fa   : > { %v2329_v2 = vadd.f32 %v2328_v58, %v2327_v22  ;;  %p2808_p0 = pnand %p2807_p13, %p2801_p9 }
 0x828   : > { %v2306_v24 = vpop.xlane.xlu0 %2305 }
 0x829   : > { %v2307_v3 = vrot.slane %v2306_v24, 4 }
 0x82b   : > { %v2308_v60 = vadd.f32 %v2307_v3, %v2306_v24 }
 0x82c   : > { %v1045_v23 = vpop.permute.xlu0 %1044 }
 0x82d   : > { %v2309_v6 = vrot.slane %v2308_v60, 2  ;;  %1069 = vst.msk [vmem:[#allocation2] sm:$0xff] %vm1068_vm11, %v1045_v23 }
 0x82e   : > { %1110 = vst.msk [vmem:[#allocation2] sm:$0xff] %vm1109_vm5, %v3747_v27 }
 0x82f   : > { %v2310_v18 = vadd.f32 %v2309_v6, %v2308_v60 }
 0x830   : > { %v1051_v46 = vpop.permute.xlu0 %1050 }
 0x831   : > { %v2311_v38 = vrot.slane %v2310_v18, 1  ;;  %1072 = vst.msk [vmem:[#allocation2 + $0x18] sm:$0xff] %vm1068_vm11, %v1051_v46 }
 0x833   : > { %v2312_v33 = vadd.f32 %v2311_v38, %v2310_v18 }
 0x834   : > { %v1055_v19 = vpop.permute.xlu0 %1054 }
 0x835   : > { %2640 = vpush %v2312_v33 }
 0x836   : > { %1074 = vst.msk [vmem:[#allocation2 + $0x28] sm:$0xff] %vm1068_vm11, %v1055_v19 }
 0x837   : > { %2642 = vpush %v2329_v2 }
 0x838   : > { %v1059_v12 = vpop.permute.xlu0 %1058 }
 0x839   : > { %1076 = vst.msk [vmem:[#allocation2 + $0x38] sm:$0xff] %vm1068_vm11, %v1059_v12 }
 0x83c   : > { %v1088_v15 = vpop.permute.xlu0 %1087 }
 0x83d   : > { %1111 = vst.msk [vmem:[#allocation2 + $0x8] sm:$0xff] %vm1109_vm5, %v1088_v15 }
 0x840   : > { %v1092_v36 = vpop.permute.xlu0 %1091 }
 0x841   : > { %1113 = vst.msk [vmem:[#allocation2 + $0x18] sm:$0xff] %vm1109_vm5, %v1092_v36 }
 0x844   : > { %v1096_v17 = vpop.permute.xlu0 %1095 }
 0x845   : > { %1115 = vst.msk [vmem:[#allocation2 + $0x28] sm:$0xff] %vm1109_vm5, %v1096_v17 }
 0x848   : > { %v1100_v47 = vpop.permute.xlu0 %1099 }
 0x849   : > { %1117 = vst.msk [vmem:[#allocation2 + $0x38] sm:$0xff] %vm1109_vm5, %v1100_v47 }
 0x866   : > { %s2641_s24 = spop %2640 }
 0x867   : > { %v2314_v52 = vstv %s2641_s24 }
 0x868   : > { %s2643_s23 = spop %2642  ;;  %v2316_v43 = vmul.f32 0.00390625, %v2314_v52 }
 0x869   : > { %v2331_v63 = vstv %s2643_s23 }
 0x86a   : > { %v2317_v41 = vadd.f32 %v2316_v43, %v2241_v26  ;;  %v2332_v57 = vmul.f32 0.00390625, %v2331_v63 }
 0x86c   : > { %v2333_v44 = vadd.f32 %v2332_v57, %v2317_v41 }
 0x86e   : > { %2334 = vst.msk [vmem:[#allocation9] sm:$0x1] %vm993_vm6, %v2333_v44 }
 0x86f   : > { %2811 = shalt.err (!%p2808_p0)
}
 0x870   : > { %s2812_s30 = scalar_lea.hbm %s3873_s11, 16 }
 0x871   : > { %p2813_p5 = scmp.ne.s32.totalorder %s3873_s11, %s2812_s30  ;;  %p2818_p3 = scmp.lt.u32.totalorder %s2812_s30, %s3873_s11 }
 0x873   : > { %p2814_p11 = pnand %p2813_p5, %p269_p2 }
 0x875   : > { %p2815_p1 = pneg %p2814_p11 }
 0x877   : > { %p2820_p4 = pnand %p2818_p3, %p2815_p1 }
 0x879   : > { %2823 = shalt.err (!%p2820_p4)
}
 0x87a   : > { %2648 = dma.vmem_to_hbm [thread:$0]  (%p269_p2), %s2381_s18, 16, %s3873_s11, [#allocation8]  }
 0x87b   : > { %2841 = dma.done.wait (%p269_p2), [#allocation6], 16  }
 0x87c   : > { %2843 = vsyncadd (%p269_p2), [#allocation6], 4294967280 }
 0x87d   : > { %2845 = dma.done.wait (%p269_p2), [#allocation8], 16  }
 0x87e   : > { %2847 = vsyncadd (%p269_p2), [#allocation8], 4294967280 }
 0x87f PF: > { %p2662_p7 = scmp.ge.s32.totalorder %s2866_s20, 2  ;;  %s3903_s22 = sadd.s32 4294967294, %s2866_s20  }
 0x880   : > { %s2408_s24 = sand.u32 1, %s3903_s22  }
 0x881   : > { %p2655_p8 = pnand %p2662_p7, %p2986_p6  ;;  %s2409_s23 = scalar_lea.sflag [#allocation8], %s2408_s24 }
 0x883   : > { %2849 = dma.done.wait (!%p2655_p8), %s2409_s23, 32  }
 0x884   : > { %2851 = vsyncadd (!%p2655_p8), %s2409_s23, 4294967264  ;;  %s3904_s20 = sld [smem:[#allocation15_spill]]  ;;  %s3905_s17 = sld [smem:[#allocation13_spill]] }
 0x885   : > { %s3906_s18 = sld [smem:[#allocation14_spill]]  ;;  %s3907_s19 = sld [smem:[#allocation16_spill]] }
 0x88a   : > { %p23_p9 = scmp.ge.s32.totalorder %s3904_s20, 4  }
 0x88c   :  { %25 = sbr.rel (!%p23_p9) target bundleno = 4 (0x4), region = 135 }
 0x893   :  { %2414 = vsyncpa [#allocation6], 1 }
 0x894   :  { %2416 = vsyncpa [#allocation6 + $0x1], 1 }
 0x895   :  { %2417 = vsyncpa [#allocation8], 1 }
 0x896   :  { %2419 = vsyncpa [#allocation8 + $0x1], 1 }

</bundles_post_ra>
